<compile_context>
chip_gen: v5e
topology: v5e:2x2
jax: 0.10.0
libtpu: 0.0.40
codegen_flags: <defaults>
</compile_context>

<pallas_src>
import jax
import jax.numpy as jnp
from jax.experimental import pallas as pl
from jax.experimental.pallas import tpu as pltpu

# ----------------------- configuration -----------------------
BS, SEQ = 2, 128                           # n_tok = 256
N_AGENTS, N_ENEMIES = 4, 4
N_ENTITIES = N_AGENTS + N_ENEMIES
STATE_NF_AL, STATE_NF_EN = 12, 10          # per-entity state feature sizes
ENTITY_EMBED_DIM = 32                      # main_args.entity_embed_dim
ATTN_EMBED_DIM = 16                        # main_args.attn_embed_dim
MIXING_EMBED_DIM = 32                      # main_args.mixing_embed_dim


# ----------------------- Pallas kernel -----------------------
def _make_kernel(A, En, E, D, M):
    """Kernel closure over the (small, static) problem dimensions."""
    NE = A + En
    F = E + 2 * D + M

    def kernel(ent_ref, qs_ref, wf_ref, bf_ref, wh_ref, bh_ref,
               wv2_ref, bv2_ref, out_ref):
        T = ent_ref.shape[-1]                     # tokens in this block (lanes)

        # ---- one fused MXU pass: all entities x [embed | q | k | w1_bot] ----
        y = jnp.dot(wf_ref[...], ent_ref[...],
                    preferred_element_type=jnp.float32)        # (NE*F, T)
        y = y.reshape(NE, F, T) + bf_ref[...]                  # (NE, F, T) + (NE, F, 1)

        ee = y[:, :E, :]                       # (NE, E, T)  entity embeddings (values)
        q = y[:, E:E + D, :]                   # (NE, D, T)  query, 1/sqrt(D) pre-folded
        k = y[:, E + D:E + 2 * D, :]           # (NE, D, T)  key
        ally_part = y[:A, E + 2 * D:, :]       # (A, M, T)   hyper_w1 bottom-half term

        # ---- attention: softmax over key entities, mean over query entities ----
        avg_score = jnp.zeros((NE, T), jnp.float32)
        for qe in range(NE):                                   # NE small & static
            logits = jnp.sum(q[qe][None, :, :] * k, axis=1)    # (NE, T)
            mx = jnp.max(logits, axis=0, keepdims=True)        # (1, T)
            p = jnp.exp(logits - mx)                           # (NE, T)
            denom = jnp.sum(p, axis=0, keepdims=True)          # (1, T)
            avg_score = avg_score + p * pl.reciprocal(denom, approx=True)
        avg_score = avg_score * (1.0 / NE)

        # ---- out = (mean_q score) @ V   (elementwise over lanes) ----
        out_tok = jnp.zeros((E, T), jnp.float32)
        for ke in range(NE):
            out_tok = out_tok + avg_score[ke:ke + 1, :] * ee[ke]   # (E, T)

        # ---- fused hypernet heads on out_tok: [w1_top | b1 | w_final | V hidden] ----
        heads = (jnp.dot(wh_ref[...], out_tok,
                         preferred_element_type=jnp.float32)
                 + bh_ref[...])                                # (4M, T)
        w1_base = heads[:M]                                    # (M, T)  (b_hw1 included)
        b1 = heads[M:2 * M]                                    # (M, T)
        w_final = jnp.abs(heads[2 * M:3 * M])                  # (M, T)
        v_h = jnp.maximum(heads[3 * M:], 0.0)                  # (M, T)  ReLU(V[0])

        # ---- mixing network ----
        w1 = jnp.abs(w1_base[None, :, :] + ally_part)          # (A, M, T)
        qs = qs_ref[...]                                       # (A, T)
        hidden_pre = jnp.sum(qs[:, None, :] * w1, axis=0) + b1 # (M, T)
        hidden = jnp.where(hidden_pre > 0, hidden_pre,
                           jnp.exp(jnp.minimum(hidden_pre, 0.0)) - 1.0)  # ELU(alpha=1)

        z = hidden * w_final + v_h * wv2_ref[...]              # (M, T)
        out_ref[...] = (jnp.sum(z, axis=0, keepdims=True)
                        + bv2_ref[...]).astype(out_ref.dtype)  # (1, T) lane-dense

    return kernel


# ----------------------- one-time weight fusion (hoisted out of forward) -----------------------
def prepare_mixer_params(params, n_agents, n_enemies):
    (w_al, b_al, w_en, b_en, w_q, b_q, w_k, b_k,
     w_hw1, b_hw1, w_hb1, b_hb1, w_hwf, b_hwf,
     w_v1, b_v1, w_v2, b_v2) = params

    A, En = n_agents, n_enemies
    NE = A + En
    nf_al, nf_en = w_al.shape[0], w_en.shape[0]
    E = w_al.shape[1]
    D = w_q.shape[1]
    M = w_hb1.shape[1]
    F = E + 2 * D + M
    s = 1.0 / jnp.sqrt(jnp.float32(D))
    w_hw1_top, w_hw1_bot = w_hw1[:E], w_hw1[E:]

    # per-entity-type fused front-end weights: features -> [ee | q*s | k | w1_bot]
    wf_al = jnp.concatenate([w_al, (w_al @ w_q) * s, w_al @ w_k, w_al @ w_hw1_bot], axis=1)
    wf_en = jnp.concatenate([w_en, (w_en @ w_q) * s, w_en @ w_k, w_en @ w_hw1_bot], axis=1)
    bf_al = jnp.concatenate([b_al, (b_al @ w_q + b_q) * s,
                             b_al @ w_k + b_k, b_al @ w_hw1_bot], axis=1)        # (1, F)
    bf_en = jnp.concatenate([b_en, (b_en @ w_q + b_q) * s,
                             b_en @ w_k + b_k, b_en @ w_hw1_bot], axis=1)        # (1, F)

    # block-diagonal front-end weight: one MXU pass covers every entity & every head
    K = A * nf_al + En * nf_en
    w_front = jnp.zeros((NE * F, K), jnp.float32)
    for a in range(A):
        w_front = w_front.at[a * F:(a + 1) * F,
                             a * nf_al:(a + 1) * nf_al].set(wf_al.T)
    for e in range(En):
        r0, c0 = (A + e) * F, A * nf_al + e * nf_en
        w_front = w_front.at[r0:r0 + F, c0:c0 + nf_en].set(wf_en.T)
    b_front = jnp.concatenate([jnp.tile(bf_al, (A, 1)),
                               jnp.tile(bf_en, (En, 1))], axis=0)[:, :, None]    # (NE, F, 1)

    # fused out_tok hypernet heads: [hyper_w1_top | hyper_b1 | hyper_w_final | V[0]]
    w_heads = jnp.concatenate([w_hw1_top, w_hb1, w_hwf, w_v1], axis=1).T          # (4M, E)
    b_heads = jnp.concatenate([b_hw1, b_hb1, b_hwf, b_v1], axis=1).T              # (4M, 1)

    return (w_front, b_front, w_heads, b_heads, w_v2, b_v2)


# ----------------------- wrapper -----------------------
def _pick_t_block(n_tok):
    """grid=1 on single-TensorCore chips (v5e/v6e); 2 parallel blocks otherwise."""
    try:
        kind = jax.devices()[0].device_kind.lower()
    except Exception:
        kind = ""
    single_core = any(s in kind for s in ("v5 lite", "v5e", "v6 lite", "v6e"))
    if (not single_core) and n_tok % 256 == 0:
        return n_tok // 2
    return n_tok


def mt_qmixer_forward(agent_qs, ally_states, enemy_states, fused, *, t_block=None):
    """agent_qs: (bs, seq, A); ally_states: (A, bs, seq, nf_al);
    enemy_states: (En, bs, seq, nf_en). Returns q_tot: (bs, seq, 1)."""
    w_front, b_front, w_heads, b_heads, w_v2, b_v2 = fused

    bs, seq, A = agent_qs.shape
    En = enemy_states.shape[0]
    NE = A + En
    nf_al, nf_en = ally_states.shape[-1], enemy_states.shape[-1]
    n_tok = bs * seq

    M = w_heads.shape[0] // 4
    E = w_heads.shape[1]
    F = w_front.shape[0] // NE
    D = (F - E - M) // 2

    if t_block is None:
        t_block = _pick_t_block(n_tok)
    assert n_tok % t_block == 0 and t_block % 128 == 0

    # --- glue: stack per-entity feature rows, tokens on the (lane) minor axis ---
    ally_t = jnp.transpose(ally_states, (0, 3, 1, 2)).reshape(A * nf_al, n_tok)
    enemy_t = jnp.transpose(enemy_states, (0, 3, 1, 2)).reshape(En * nf_en, n_tok)
    ent_stack = jnp.concatenate([ally_t, enemy_t], axis=0)        # (A*nf_al+En*nf_en, n_tok)
    qs_t = agent_qs.reshape(n_tok, A).T                           # (A, n_tok)

    kernel = _make_kernel(A, En, E, D, M)

    def full_spec(x):
        return pl.BlockSpec(x.shape, lambda i: (0,) * x.ndim)

    out = pl.pallas_call(
        kernel,
        out_shape=jax.ShapeDtypeStruct((1, n_tok), jnp.float32),  # lane-dense output row
        grid=(n_tok // t_block,),
        in_specs=[
            pl.BlockSpec((ent_stack.shape[0], t_block), lambda i: (0, i)),
            pl.BlockSpec((A, t_block), lambda i: (0, i)),
            full_spec(w_front), full_spec(b_front),
            full_spec(w_heads), full_spec(b_heads),
            full_spec(w_v2), full_spec(b_v2),
        ],
        out_specs=pl.BlockSpec((1, t_block), lambda i: (0, i)),
        compiler_params=pltpu.CompilerParams(dimension_semantics=("parallel",)),
    )(ent_stack, qs_t, w_front, b_front, w_heads, b_heads, w_v2, b_v2)

    return out.reshape(bs, seq, 1)


# ----------------------- pure-JAX reference -----------------------
def mt_qmixer_reference(agent_qs, ally_states, enemy_states, params):
    (w_al, b_al, w_en, b_en, w_q, b_q, w_k, b_k,
     w_hw1, b_hw1, w_hb1, b_hb1, w_hwf, b_hwf,
     w_v1, b_v1, w_v2, b_v2) = params
    bs, seq, A = agent_qs.shape
    En = enemy_states.shape[0]
    NE = A + En

    ally_embed = ally_states @ w_al + b_al            # (A, bs, seq, E)
    enemy_embed = enemy_states @ w_en + b_en          # (En, bs, seq, E)
    entity_embed = jnp.concatenate([ally_embed, enemy_embed], axis=0)

    proj_q = (entity_embed @ w_q + b_q).transpose(1, 2, 0, 3).reshape(bs * seq, NE, -1)
    proj_k = (entity_embed @ w_k + b_k).transpose(1, 2, 0, 3).reshape(bs * seq, NE, -1)
    energy = jnp.einsum("bqd,bkd->bqk", proj_q, proj_k) / jnp.sqrt(
        jnp.float32(proj_q.shape[-1]))
    score = jax.nn.softmax(energy, axis=-1)
    proj_v = entity_embed.transpose(1, 2, 0, 3).reshape(bs * seq, NE, -1)
    out = jnp.einsum("bqk,bke->bqe", score, proj_v).mean(axis=1).reshape(bs, seq, -1)

    emi = jnp.concatenate(
        [jnp.broadcast_to(out[:, :, None, :], (bs, seq, A, out.shape[-1])),
         ally_embed.transpose(1, 2, 0, 3)], axis=-1)
    w1 = jnp.abs(emi @ w_hw1 + b_hw1).reshape(bs * seq, A, -1)
    b1 = (out @ w_hb1 + b_hb1).reshape(bs * seq, 1, -1)
    qs = agent_qs.reshape(bs * seq, 1, A)
    hidden = jax.nn.elu(jnp.einsum("bij,bjk->bik", qs, w1) + b1)
    w_final = jnp.abs(out @ w_hwf + b_hwf).reshape(bs * seq, -1, 1)
    v = (jnp.maximum(out @ w_v1 + b_v1, 0.0) @ w_v2 + b_v2).reshape(bs * seq, 1, 1)
    y = jnp.einsum("bij,bjk->bik", hidden, w_final) + v
    return y.reshape(bs, seq, 1)


# ----------------------- deterministic parameter init -----------------------
def init_params(key):
    def linear(k, fan_in, fan_out):
        kw, kb = jax.random.split(k)
        bound = 1.0 / jnp.sqrt(jnp.float32(fan_in))
        w = jax.random.uniform(kw, (fan_in, fan_out), jnp.float32, -bound, bound)
        b = jax.random.uniform(kb, (1, fan_out), jnp.float32, -bound, bound)
        return w, b

    ks = jax.random.split(key, 9)
    w_al, b_al = linear(ks[0], STATE_NF_AL, ENTITY_EMBED_DIM)             # ally_encoder
    w_en, b_en = linear(ks[1], STATE_NF_EN, ENTITY_EMBED_DIM)             # enemy_encoder
    w_q, b_q = linear(ks[2], ENTITY_EMBED_DIM, ATTN_EMBED_DIM)            # query
    w_k, b_k = linear(ks[3], ENTITY_EMBED_DIM, ATTN_EMBED_DIM)            # key
    w_hw1, b_hw1 = linear(ks[4], 2 * ENTITY_EMBED_DIM, MIXING_EMBED_DIM)  # hyper_w_1
    w_hb1, b_hb1 = linear(ks[5], ENTITY_EMBED_DIM, MIXING_EMBED_DIM)      # hyper_b_1
    w_hwf, b_hwf = linear(ks[6], ENTITY_EMBED_DIM, MIXING_EMBED_DIM)      # hyper_w_final
    w_v1, b_v1 = linear(ks[7], ENTITY_EMBED_DIM, MIXING_EMBED_DIM)        # V[0]
    w_v2, b_v2 = linear(ks[8], MIXING_EMBED_DIM, 1)                       # V[2]
    return (w_al, b_al, w_en, b_en, w_q, b_q, w_k, b_k,
            w_hw1, b_hw1, w_hb1, b_hb1, w_hwf, b_hwf,
            w_v1, b_v1, w_v2, b_v2)


# ----------------------- main -----------------------
if __name__ == "__main__":
    key = jax.random.PRNGKey(0)
    k_par, k_al, k_en, k_qs = jax.random.split(key, 4)

    params = init_params(k_par)
    # inputs match the post-stack shapes of the PyTorch forward
    ally_states = jax.random.normal(k_al, (N_AGENTS, BS, SEQ, STATE_NF_AL), jnp.float32)
    enemy_states = jax.random.normal(k_en, (N_ENEMIES, BS, SEQ, STATE_NF_EN), jnp.float32)
    agent_qs = jax.random.normal(k_qs, (BS, SEQ, N_AGENTS), jnp.float32)

    fused = prepare_mixer_params(params, N_AGENTS, N_ENEMIES)   # once, outside forward
    fwd = jax.jit(mt_qmixer_forward)

    q_tot = jax.block_until_ready(fwd(agent_qs, ally_states, enemy_states, fused))
    q_ref = jax.block_until_ready(
        mt_qmixer_reference(agent_qs, ally_states, enemy_states, params))

    assert q_tot.shape == (BS, SEQ, 1)
    max_err = float(jnp.max(jnp.abs(q_tot - q_ref)))
    assert jnp.allclose(q_tot, q_ref, rtol=1e-2, atol=2e-2), (
        f"mismatch: max abs err {max_err}")
    print("KERNEL_OK")
</pallas_src>

<mosaic_0001>
module attributes {stable_mosaic.version = 11 : i64} {
  func.func @kernel(%arg0: i32, %arg1: memref<88x128xf32, #tpu.memory_space<vmem>>, %arg2: memref<4x128xf32, #tpu.memory_space<vmem>>, %arg3: memref<768x88xf32, #tpu.memory_space<vmem>>, %arg4: memref<8x96x1xf32, #tpu.memory_space<vmem>>, %arg5: memref<128x32xf32, #tpu.memory_space<vmem>>, %arg6: memref<128x1xf32, #tpu.memory_space<vmem>>, %arg7: memref<32x1xf32, #tpu.memory_space<vmem>>, %arg8: memref<1x1xf32, #tpu.memory_space<vmem>>, %arg9: memref<1x128xf32, #tpu.memory_space<vmem>>) attributes {dimension_semantics = [#tpu.dimension_semantics<parallel>], iteration_bounds = array<i64: 2>, scalar_prefetch = 0 : i64, scratch_operands = 0 : i64, tpu.core_type = #tpu.core_type<tc>, window_params = [{transform_indices = @transform_0, window_bounds = array<i64: 88, 128>}, {transform_indices = @transform_1, window_bounds = array<i64: 4, 128>}, {pipeline_mode = #tpu.pipeline_mode<synchronous>, transform_indices = @transform_2, window_bounds = array<i64: 768, 88>}, {pipeline_mode = #tpu.pipeline_mode<synchronous>, transform_indices = @transform_3, window_bounds = array<i64: 8, 96, 1>}, {pipeline_mode = #tpu.pipeline_mode<synchronous>, transform_indices = @transform_4, window_bounds = array<i64: 128, 32>}, {pipeline_mode = #tpu.pipeline_mode<synchronous>, transform_indices = @transform_5, window_bounds = array<i64: 128, 1>}, {pipeline_mode = #tpu.pipeline_mode<synchronous>, transform_indices = @transform_6, window_bounds = array<i64: 32, 1>}, {pipeline_mode = #tpu.pipeline_mode<synchronous>, transform_indices = @transform_7, window_bounds = array<i64: 1, 1>}, {transform_indices = @transform_8, window_bounds = array<i64: 1, 128>}]} {
    %c0 = arith.constant 0 : index
    %c0_0 = arith.constant 0 : index
    %0 = vector.load %arg3[%c0, %c0_0] : memref<768x88xf32, #tpu.memory_space<vmem>>, vector<768x88xf32>
    %c0_1 = arith.constant 0 : index
    %c0_2 = arith.constant 0 : index
    %1 = vector.load %arg1[%c0_1, %c0_2] : memref<88x128xf32, #tpu.memory_space<vmem>>, vector<88x128xf32>
    %cst = arith.constant dense<0.000000e+00> : vector<768x128xf32>
    %2 = tpu.matmul %0, %1, %cst {dimension_numbers = #tpu.dot_dimension_numbers<[1], [0], [0], [1], [0, 0, 1, 1], [], []>} : vector<768x88xf32>, vector<88x128xf32>, vector<768x128xf32> -> vector<768x128xf32>
    %3 = vector.shape_cast %2 : vector<768x128xf32> to vector<8x96x128xf32>
    %c0_3 = arith.constant 0 : index
    %c0_4 = arith.constant 0 : index
    %c0_5 = arith.constant 0 : index
    %4 = vector.load %arg4[%c0_3, %c0_4, %c0_5] : memref<8x96x1xf32, #tpu.memory_space<vmem>>, vector<8x96x1xf32>
    %5 = vector.broadcast %4 : vector<8x96x1xf32> to vector<8x96x128xf32>
    %6 = arith.addf %3, %5 : vector<8x96x128xf32>
    %7 = vector.extract_strided_slice %6 {offsets = [0, 0, 0], sizes = [8, 32, 128], strides = [1, 1, 1]} : vector<8x96x128xf32> to vector<8x32x128xf32>
    %8 = vector.extract_strided_slice %6 {offsets = [0, 32, 0], sizes = [8, 16, 128], strides = [1, 1, 1]} : vector<8x96x128xf32> to vector<8x16x128xf32>
    %9 = vector.extract_strided_slice %6 {offsets = [0, 48, 0], sizes = [8, 16, 128], strides = [1, 1, 1]} : vector<8x96x128xf32> to vector<8x16x128xf32>
    %10 = vector.extract_strided_slice %6 {offsets = [0, 64, 0], sizes = [4, 32, 128], strides = [1, 1, 1]} : vector<8x96x128xf32> to vector<4x32x128xf32>
    %cst_6 = arith.constant 0.000000e+00 : f32
    %11 = vector.broadcast %cst_6 : f32 to vector<8x128xf32>
    %12 = vector.extract_strided_slice %8 {offsets = [0, 0, 0], sizes = [1, 16, 128], strides = [1, 1, 1]} : vector<8x16x128xf32> to vector<1x16x128xf32>
    %13 = vector.shape_cast %12 : vector<1x16x128xf32> to vector<16x128xf32>
    %14 = vector.shape_cast %13 : vector<16x128xf32> to vector<1x16x128xf32>
    %15 = vector.broadcast %14 : vector<1x16x128xf32> to vector<8x16x128xf32>
    %16 = arith.mulf %15, %9 : vector<8x16x128xf32>
    %cst_7 = arith.constant dense<0.000000e+00> : vector<8x128xf32>
    %17 = vector.multi_reduction <add>, %16, %cst_7 [1] : vector<8x16x128xf32> to vector<8x128xf32>
    %cst_8 = arith.constant dense<0xFF800000> : vector<128xf32>
    %18 = vector.multi_reduction <maximumf>, %17, %cst_8 [0] : vector<8x128xf32> to vector<128xf32>
    %19 = vector.shape_cast %18 : vector<128xf32> to vector<1x128xf32>
    %20 = vector.broadcast %19 : vector<1x128xf32> to vector<8x128xf32>
    %21 = arith.subf %17, %20 : vector<8x128xf32>
    %22 = math.exp %21 : vector<8x128xf32>
    %cst_9 = arith.constant dense<0.000000e+00> : vector<128xf32>
    %23 = vector.multi_reduction <add>, %22, %cst_9 [0] : vector<8x128xf32> to vector<128xf32>
    %24 = vector.shape_cast %23 : vector<128xf32> to vector<1x128xf32>
    %25 = tpu.reciprocal %24 {approx = true} : vector<1x128xf32> -> vector<1x128xf32>
    %26 = vector.broadcast %25 : vector<1x128xf32> to vector<8x128xf32>
    %27 = arith.mulf %22, %26 : vector<8x128xf32>
    %28 = arith.addf %11, %27 : vector<8x128xf32>
    %29 = vector.extract_strided_slice %8 {offsets = [1, 0, 0], sizes = [1, 16, 128], strides = [1, 1, 1]} : vector<8x16x128xf32> to vector<1x16x128xf32>
    %30 = vector.shape_cast %29 : vector<1x16x128xf32> to vector<16x128xf32>
    %31 = vector.shape_cast %30 : vector<16x128xf32> to vector<1x16x128xf32>
    %32 = vector.broadcast %31 : vector<1x16x128xf32> to vector<8x16x128xf32>
    %33 = arith.mulf %32, %9 : vector<8x16x128xf32>
    %cst_10 = arith.constant dense<0.000000e+00> : vector<8x128xf32>
    %34 = vector.multi_reduction <add>, %33, %cst_10 [1] : vector<8x16x128xf32> to vector<8x128xf32>
    %cst_11 = arith.constant dense<0xFF800000> : vector<128xf32>
    %35 = vector.multi_reduction <maximumf>, %34, %cst_11 [0] : vector<8x128xf32> to vector<128xf32>
    %36 = vector.shape_cast %35 : vector<128xf32> to vector<1x128xf32>
    %37 = vector.broadcast %36 : vector<1x128xf32> to vector<8x128xf32>
    %38 = arith.subf %34, %37 : vector<8x128xf32>
    %39 = math.exp %38 : vector<8x128xf32>
    %cst_12 = arith.constant dense<0.000000e+00> : vector<128xf32>
    %40 = vector.multi_reduction <add>, %39, %cst_12 [0] : vector<8x128xf32> to vector<128xf32>
    %41 = vector.shape_cast %40 : vector<128xf32> to vector<1x128xf32>
    %42 = tpu.reciprocal %41 {approx = true} : vector<1x128xf32> -> vector<1x128xf32>
    %43 = vector.broadcast %42 : vector<1x128xf32> to vector<8x128xf32>
    %44 = arith.mulf %39, %43 : vector<8x128xf32>
    %45 = arith.addf %28, %44 : vector<8x128xf32>
    %46 = vector.extract_strided_slice %8 {offsets = [2, 0, 0], sizes = [1, 16, 128], strides = [1, 1, 1]} : vector<8x16x128xf32> to vector<1x16x128xf32>
    %47 = vector.shape_cast %46 : vector<1x16x128xf32> to vector<16x128xf32>
    %48 = vector.shape_cast %47 : vector<16x128xf32> to vector<1x16x128xf32>
    %49 = vector.broadcast %48 : vector<1x16x128xf32> to vector<8x16x128xf32>
    %50 = arith.mulf %49, %9 : vector<8x16x128xf32>
    %cst_13 = arith.constant dense<0.000000e+00> : vector<8x128xf32>
    %51 = vector.multi_reduction <add>, %50, %cst_13 [1] : vector<8x16x128xf32> to vector<8x128xf32>
    %cst_14 = arith.constant dense<0xFF800000> : vector<128xf32>
    %52 = vector.multi_reduction <maximumf>, %51, %cst_14 [0] : vector<8x128xf32> to vector<128xf32>
    %53 = vector.shape_cast %52 : vector<128xf32> to vector<1x128xf32>
    %54 = vector.broadcast %53 : vector<1x128xf32> to vector<8x128xf32>
    %55 = arith.subf %51, %54 : vector<8x128xf32>
    %56 = math.exp %55 : vector<8x128xf32>
    %cst_15 = arith.constant dense<0.000000e+00> : vector<128xf32>
    %57 = vector.multi_reduction <add>, %56, %cst_15 [0] : vector<8x128xf32> to vector<128xf32>
    %58 = vector.shape_cast %57 : vector<128xf32> to vector<1x128xf32>
    %59 = tpu.reciprocal %58 {approx = true} : vector<1x128xf32> -> vector<1x128xf32>
    %60 = vector.broadcast %59 : vector<1x128xf32> to vector<8x128xf32>
    %61 = arith.mulf %56, %60 : vector<8x128xf32>
    %62 = arith.addf %45, %61 : vector<8x128xf32>
    %63 = vector.extract_strided_slice %8 {offsets = [3, 0, 0], sizes = [1, 16, 128], strides = [1, 1, 1]} : vector<8x16x128xf32> to vector<1x16x128xf32>
    %64 = vector.shape_cast %63 : vector<1x16x128xf32> to vector<16x128xf32>
    %65 = vector.shape_cast %64 : vector<16x128xf32> to vector<1x16x128xf32>
    %66 = vector.broadcast %65 : vector<1x16x128xf32> to vector<8x16x128xf32>
    %67 = arith.mulf %66, %9 : vector<8x16x128xf32>
    %cst_16 = arith.constant dense<0.000000e+00> : vector<8x128xf32>
    %68 = vector.multi_reduction <add>, %67, %cst_16 [1] : vector<8x16x128xf32> to vector<8x128xf32>
    %cst_17 = arith.constant dense<0xFF800000> : vector<128xf32>
    %69 = vector.multi_reduction <maximumf>, %68, %cst_17 [0] : vector<8x128xf32> to vector<128xf32>
    %70 = vector.shape_cast %69 : vector<128xf32> to vector<1x128xf32>
    %71 = vector.broadcast %70 : vector<1x128xf32> to vector<8x128xf32>
    %72 = arith.subf %68, %71 : vector<8x128xf32>
    %73 = math.exp %72 : vector<8x128xf32>
    %cst_18 = arith.constant dense<0.000000e+00> : vector<128xf32>
    %74 = vector.multi_reduction <add>, %73, %cst_18 [0] : vector<8x128xf32> to vector<128xf32>
    %75 = vector.shape_cast %74 : vector<128xf32> to vector<1x128xf32>
    %76 = tpu.reciprocal %75 {approx = true} : vector<1x128xf32> -> vector<1x128xf32>
    %77 = vector.broadcast %76 : vector<1x128xf32> to vector<8x128xf32>
    %78 = arith.mulf %73, %77 : vector<8x128xf32>
    %79 = arith.addf %62, %78 : vector<8x128xf32>
    %80 = vector.extract_strided_slice %8 {offsets = [4, 0, 0], sizes = [1, 16, 128], strides = [1, 1, 1]} : vector<8x16x128xf32> to vector<1x16x128xf32>
    %81 = vector.shape_cast %80 : vector<1x16x128xf32> to vector<16x128xf32>
    %82 = vector.shape_cast %81 : vector<16x128xf32> to vector<1x16x128xf32>
    %83 = vector.broadcast %82 : vector<1x16x128xf32> to vector<8x16x128xf32>
    %84 = arith.mulf %83, %9 : vector<8x16x128xf32>
    %cst_19 = arith.constant dense<0.000000e+00> : vector<8x128xf32>
    %85 = vector.multi_reduction <add>, %84, %cst_19 [1] : vector<8x16x128xf32> to vector<8x128xf32>
    %cst_20 = arith.constant dense<0xFF800000> : vector<128xf32>
    %86 = vector.multi_reduction <maximumf>, %85, %cst_20 [0] : vector<8x128xf32> to vector<128xf32>
    %87 = vector.shape_cast %86 : vector<128xf32> to vector<1x128xf32>
    %88 = vector.broadcast %87 : vector<1x128xf32> to vector<8x128xf32>
    %89 = arith.subf %85, %88 : vector<8x128xf32>
    %90 = math.exp %89 : vector<8x128xf32>
    %cst_21 = arith.constant dense<0.000000e+00> : vector<128xf32>
    %91 = vector.multi_reduction <add>, %90, %cst_21 [0] : vector<8x128xf32> to vector<128xf32>
    %92 = vector.shape_cast %91 : vector<128xf32> to vector<1x128xf32>
    %93 = tpu.reciprocal %92 {approx = true} : vector<1x128xf32> -> vector<1x128xf32>
    %94 = vector.broadcast %93 : vector<1x128xf32> to vector<8x128xf32>
    %95 = arith.mulf %90, %94 : vector<8x128xf32>
    %96 = arith.addf %79, %95 : vector<8x128xf32>
    %97 = vector.extract_strided_slice %8 {offsets = [5, 0, 0], sizes = [1, 16, 128], strides = [1, 1, 1]} : vector<8x16x128xf32> to vector<1x16x128xf32>
    %98 = vector.shape_cast %97 : vector<1x16x128xf32> to vector<16x128xf32>
    %99 = vector.shape_cast %98 : vector<16x128xf32> to vector<1x16x128xf32>
    %100 = vector.broadcast %99 : vector<1x16x128xf32> to vector<8x16x128xf32>
    %101 = arith.mulf %100, %9 : vector<8x16x128xf32>
    %cst_22 = arith.constant dense<0.000000e+00> : vector<8x128xf32>
    %102 = vector.multi_reduction <add>, %101, %cst_22 [1] : vector<8x16x128xf32> to vector<8x128xf32>
    %cst_23 = arith.constant dense<0xFF800000> : vector<128xf32>
    %103 = vector.multi_reduction <maximumf>, %102, %cst_23 [0] : vector<8x128xf32> to vector<128xf32>
    %104 = vector.shape_cast %103 : vector<128xf32> to vector<1x128xf32>
    %105 = vector.broadcast %104 : vector<1x128xf32> to vector<8x128xf32>
    %106 = arith.subf %102, %105 : vector<8x128xf32>
    %107 = math.exp %106 : vector<8x128xf32>
    %cst_24 = arith.constant dense<0.000000e+00> : vector<128xf32>
    %108 = vector.multi_reduction <add>, %107, %cst_24 [0] : vector<8x128xf32> to vector<128xf32>
    %109 = vector.shape_cast %108 : vector<128xf32> to vector<1x128xf32>
    %110 = tpu.reciprocal %109 {approx = true} : vector<1x128xf32> -> vector<1x128xf32>
    %111 = vector.broadcast %110 : vector<1x128xf32> to vector<8x128xf32>
    %112 = arith.mulf %107, %111 : vector<8x128xf32>
    %113 = arith.addf %96, %112 : vector<8x128xf32>
    %114 = vector.extract_strided_slice %8 {offsets = [6, 0, 0], sizes = [1, 16, 128], strides = [1, 1, 1]} : vector<8x16x128xf32> to vector<1x16x128xf32>
    %115 = vector.shape_cast %114 : vector<1x16x128xf32> to vector<16x128xf32>
    %116 = vector.shape_cast %115 : vector<16x128xf32> to vector<1x16x128xf32>
    %117 = vector.broadcast %116 : vector<1x16x128xf32> to vector<8x16x128xf32>
    %118 = arith.mulf %117, %9 : vector<8x16x128xf32>
    %cst_25 = arith.constant dense<0.000000e+00> : vector<8x128xf32>
    %119 = vector.multi_reduction <add>, %118, %cst_25 [1] : vector<8x16x128xf32> to vector<8x128xf32>
    %cst_26 = arith.constant dense<0xFF800000> : vector<128xf32>
    %120 = vector.multi_reduction <maximumf>, %119, %cst_26 [0] : vector<8x128xf32> to vector<128xf32>
    %121 = vector.shape_cast %120 : vector<128xf32> to vector<1x128xf32>
    %122 = vector.broadcast %121 : vector<1x128xf32> to vector<8x128xf32>
    %123 = arith.subf %119, %122 : vector<8x128xf32>
    %124 = math.exp %123 : vector<8x128xf32>
    %cst_27 = arith.constant dense<0.000000e+00> : vector<128xf32>
    %125 = vector.multi_reduction <add>, %124, %cst_27 [0] : vector<8x128xf32> to vector<128xf32>
    %126 = vector.shape_cast %125 : vector<128xf32> to vector<1x128xf32>
    %127 = tpu.reciprocal %126 {approx = true} : vector<1x128xf32> -> vector<1x128xf32>
    %128 = vector.broadcast %127 : vector<1x128xf32> to vector<8x128xf32>
    %129 = arith.mulf %124, %128 : vector<8x128xf32>
    %130 = arith.addf %113, %129 : vector<8x128xf32>
    %131 = vector.extract_strided_slice %8 {offsets = [7, 0, 0], sizes = [1, 16, 128], strides = [1, 1, 1]} : vector<8x16x128xf32> to vector<1x16x128xf32>
    %132 = vector.shape_cast %131 : vector<1x16x128xf32> to vector<16x128xf32>
    %133 = vector.shape_cast %132 : vector<16x128xf32> to vector<1x16x128xf32>
    %134 = vector.broadcast %133 : vector<1x16x128xf32> to vector<8x16x128xf32>
    %135 = arith.mulf %134, %9 : vector<8x16x128xf32>
    %cst_28 = arith.constant dense<0.000000e+00> : vector<8x128xf32>
    %136 = vector.multi_reduction <add>, %135, %cst_28 [1] : vector<8x16x128xf32> to vector<8x128xf32>
    %cst_29 = arith.constant dense<0xFF800000> : vector<128xf32>
    %137 = vector.multi_reduction <maximumf>, %136, %cst_29 [0] : vector<8x128xf32> to vector<128xf32>
    %138 = vector.shape_cast %137 : vector<128xf32> to vector<1x128xf32>
    %139 = vector.broadcast %138 : vector<1x128xf32> to vector<8x128xf32>
    %140 = arith.subf %136, %139 : vector<8x128xf32>
    %141 = math.exp %140 : vector<8x128xf32>
    %cst_30 = arith.constant dense<0.000000e+00> : vector<128xf32>
    %142 = vector.multi_reduction <add>, %141, %cst_30 [0] : vector<8x128xf32> to vector<128xf32>
    %143 = vector.shape_cast %142 : vector<128xf32> to vector<1x128xf32>
    %144 = tpu.reciprocal %143 {approx = true} : vector<1x128xf32> -> vector<1x128xf32>
    %145 = vector.broadcast %144 : vector<1x128xf32> to vector<8x128xf32>
    %146 = arith.mulf %141, %145 : vector<8x128xf32>
    %147 = arith.addf %130, %146 : vector<8x128xf32>
    %cst_31 = arith.constant 1.250000e-01 : f32
    %148 = vector.broadcast %cst_31 : f32 to vector<8x128xf32>
    %149 = arith.mulf %147, %148 : vector<8x128xf32>
    %cst_32 = arith.constant 0.000000e+00 : f32
    %150 = vector.broadcast %cst_32 : f32 to vector<32x128xf32>
    %151 = vector.extract_strided_slice %149 {offsets = [0, 0], sizes = [1, 128], strides = [1, 1]} : vector<8x128xf32> to vector<1x128xf32>
    %152 = vector.extract_strided_slice %7 {offsets = [0, 0, 0], sizes = [1, 32, 128], strides = [1, 1, 1]} : vector<8x32x128xf32> to vector<1x32x128xf32>
    %153 = vector.shape_cast %152 : vector<1x32x128xf32> to vector<32x128xf32>
    %154 = vector.broadcast %151 : vector<1x128xf32> to vector<32x128xf32>
    %155 = arith.mulf %154, %153 : vector<32x128xf32>
    %156 = arith.addf %150, %155 : vector<32x128xf32>
    %157 = vector.extract_strided_slice %149 {offsets = [1, 0], sizes = [1, 128], strides = [1, 1]} : vector<8x128xf32> to vector<1x128xf32>
    %158 = vector.extract_strided_slice %7 {offsets = [1, 0, 0], sizes = [1, 32, 128], strides = [1, 1, 1]} : vector<8x32x128xf32> to vector<1x32x128xf32>
    %159 = vector.shape_cast %158 : vector<1x32x128xf32> to vector<32x128xf32>
    %160 = vector.broadcast %157 : vector<1x128xf32> to vector<32x128xf32>
    %161 = arith.mulf %160, %159 : vector<32x128xf32>
    %162 = arith.addf %156, %161 : vector<32x128xf32>
    %163 = vector.extract_strided_slice %149 {offsets = [2, 0], sizes = [1, 128], strides = [1, 1]} : vector<8x128xf32> to vector<1x128xf32>
    %164 = vector.extract_strided_slice %7 {offsets = [2, 0, 0], sizes = [1, 32, 128], strides = [1, 1, 1]} : vector<8x32x128xf32> to vector<1x32x128xf32>
    %165 = vector.shape_cast %164 : vector<1x32x128xf32> to vector<32x128xf32>
    %166 = vector.broadcast %163 : vector<1x128xf32> to vector<32x128xf32>
    %167 = arith.mulf %166, %165 : vector<32x128xf32>
    %168 = arith.addf %162, %167 : vector<32x128xf32>
    %169 = vector.extract_strided_slice %149 {offsets = [3, 0], sizes = [1, 128], strides = [1, 1]} : vector<8x128xf32> to vector<1x128xf32>
    %170 = vector.extract_strided_slice %7 {offsets = [3, 0, 0], sizes = [1, 32, 128], strides = [1, 1, 1]} : vector<8x32x128xf32> to vector<1x32x128xf32>
    %171 = vector.shape_cast %170 : vector<1x32x128xf32> to vector<32x128xf32>
    %172 = vector.broadcast %169 : vector<1x128xf32> to vector<32x128xf32>
    %173 = arith.mulf %172, %171 : vector<32x128xf32>
    %174 = arith.addf %168, %173 : vector<32x128xf32>
    %175 = vector.extract_strided_slice %149 {offsets = [4, 0], sizes = [1, 128], strides = [1, 1]} : vector<8x128xf32> to vector<1x128xf32>
    %176 = vector.extract_strided_slice %7 {offsets = [4, 0, 0], sizes = [1, 32, 128], strides = [1, 1, 1]} : vector<8x32x128xf32> to vector<1x32x128xf32>
    %177 = vector.shape_cast %176 : vector<1x32x128xf32> to vector<32x128xf32>
    %178 = vector.broadcast %175 : vector<1x128xf32> to vector<32x128xf32>
    %179 = arith.mulf %178, %177 : vector<32x128xf32>
    %180 = arith.addf %174, %179 : vector<32x128xf32>
    %181 = vector.extract_strided_slice %149 {offsets = [5, 0], sizes = [1, 128], strides = [1, 1]} : vector<8x128xf32> to vector<1x128xf32>
    %182 = vector.extract_strided_slice %7 {offsets = [5, 0, 0], sizes = [1, 32, 128], strides = [1, 1, 1]} : vector<8x32x128xf32> to vector<1x32x128xf32>
    %183 = vector.shape_cast %182 : vector<1x32x128xf32> to vector<32x128xf32>
    %184 = vector.broadcast %181 : vector<1x128xf32> to vector<32x128xf32>
    %185 = arith.mulf %184, %183 : vector<32x128xf32>
    %186 = arith.addf %180, %185 : vector<32x128xf32>
    %187 = vector.extract_strided_slice %149 {offsets = [6, 0], sizes = [1, 128], strides = [1, 1]} : vector<8x128xf32> to vector<1x128xf32>
    %188 = vector.extract_strided_slice %7 {offsets = [6, 0, 0], sizes = [1, 32, 128], strides = [1, 1, 1]} : vector<8x32x128xf32> to vector<1x32x128xf32>
    %189 = vector.shape_cast %188 : vector<1x32x128xf32> to vector<32x128xf32>
    %190 = vector.broadcast %187 : vector<1x128xf32> to vector<32x128xf32>
    %191 = arith.mulf %190, %189 : vector<32x128xf32>
    %192 = arith.addf %186, %191 : vector<32x128xf32>
    %193 = vector.extract_strided_slice %149 {offsets = [7, 0], sizes = [1, 128], strides = [1, 1]} : vector<8x128xf32> to vector<1x128xf32>
    %194 = vector.extract_strided_slice %7 {offsets = [7, 0, 0], sizes = [1, 32, 128], strides = [1, 1, 1]} : vector<8x32x128xf32> to vector<1x32x128xf32>
    %195 = vector.shape_cast %194 : vector<1x32x128xf32> to vector<32x128xf32>
    %196 = vector.broadcast %193 : vector<1x128xf32> to vector<32x128xf32>
    %197 = arith.mulf %196, %195 : vector<32x128xf32>
    %198 = arith.addf %192, %197 : vector<32x128xf32>
    %c0_33 = arith.constant 0 : index
    %c0_34 = arith.constant 0 : index
    %199 = vector.load %arg5[%c0_33, %c0_34] : memref<128x32xf32, #tpu.memory_space<vmem>>, vector<128x32xf32>
    %cst_35 = arith.constant dense<0.000000e+00> : vector<128x128xf32>
    %200 = tpu.matmul %199, %198, %cst_35 {dimension_numbers = #tpu.dot_dimension_numbers<[1], [0], [0], [1], [0, 0, 1, 1], [], []>} : vector<128x32xf32>, vector<32x128xf32>, vector<128x128xf32> -> vector<128x128xf32>
    %c0_36 = arith.constant 0 : index
    %c0_37 = arith.constant 0 : index
    %201 = vector.load %arg6[%c0_36, %c0_37] : memref<128x1xf32, #tpu.memory_space<vmem>>, vector<128x1xf32>
    %202 = vector.broadcast %201 : vector<128x1xf32> to vector<128x128xf32>
    %203 = arith.addf %200, %202 : vector<128x128xf32>
    %204 = vector.extract_strided_slice %203 {offsets = [0, 0], sizes = [32, 128], strides = [1, 1]} : vector<128x128xf32> to vector<32x128xf32>
    %205 = vector.extract_strided_slice %203 {offsets = [32, 0], sizes = [32, 128], strides = [1, 1]} : vector<128x128xf32> to vector<32x128xf32>
    %206 = vector.extract_strided_slice %203 {offsets = [64, 0], sizes = [32, 128], strides = [1, 1]} : vector<128x128xf32> to vector<32x128xf32>
    %207 = math.absf %206 : vector<32x128xf32>
    %208 = vector.extract_strided_slice %203 {offsets = [96, 0], sizes = [32, 128], strides = [1, 1]} : vector<128x128xf32> to vector<32x128xf32>
    %cst_38 = arith.constant 0.000000e+00 : f32
    %209 = vector.broadcast %cst_38 : f32 to vector<32x128xf32>
    %210 = arith.maximumf %208, %209 : vector<32x128xf32>
    %211 = vector.shape_cast %204 : vector<32x128xf32> to vector<1x32x128xf32>
    %212 = vector.broadcast %211 : vector<1x32x128xf32> to vector<4x32x128xf32>
    %213 = arith.addf %212, %10 : vector<4x32x128xf32>
    %214 = math.absf %213 : vector<4x32x128xf32>
    %c0_39 = arith.constant 0 : index
    %c0_40 = arith.constant 0 : index
    %215 = vector.load %arg2[%c0_39, %c0_40] : memref<4x128xf32, #tpu.memory_space<vmem>>, vector<4x128xf32>
    %216 = vector.shape_cast %215 : vector<4x128xf32> to vector<4x1x128xf32>
    %217 = vector.broadcast %216 : vector<4x1x128xf32> to vector<4x32x128xf32>
    %218 = arith.mulf %217, %214 : vector<4x32x128xf32>
    %cst_41 = arith.constant dense<0.000000e+00> : vector<32x128xf32>
    %219 = vector.multi_reduction <add>, %218, %cst_41 [0] : vector<4x32x128xf32> to vector<32x128xf32>
    %220 = arith.addf %219, %205 : vector<32x128xf32>
    %cst_42 = arith.constant 0.000000e+00 : f32
    %221 = vector.broadcast %cst_42 : f32 to vector<32x128xf32>
    %222 = arith.cmpf ogt, %220, %221 : vector<32x128xf32>
    %cst_43 = arith.constant 0.000000e+00 : f32
    %223 = vector.broadcast %cst_43 : f32 to vector<32x128xf32>
    %224 = arith.minimumf %220, %223 : vector<32x128xf32>
    %225 = math.exp %224 : vector<32x128xf32>
    %cst_44 = arith.constant 1.000000e+00 : f32
    %226 = vector.broadcast %cst_44 : f32 to vector<32x128xf32>
    %227 = arith.subf %225, %226 : vector<32x128xf32>
    %228 = arith.select %222, %220, %227 : vector<32x128xi1>, vector<32x128xf32>
    %229 = arith.mulf %228, %207 : vector<32x128xf32>
    %c0_45 = arith.constant 0 : index
    %c0_46 = arith.constant 0 : index
    %230 = vector.load %arg7[%c0_45, %c0_46] : memref<32x1xf32, #tpu.memory_space<vmem>>, vector<32x1xf32>
    %231 = vector.broadcast %230 : vector<32x1xf32> to vector<32x128xf32>
    %232 = arith.mulf %210, %231 : vector<32x128xf32>
    %233 = arith.addf %229, %232 : vector<32x128xf32>
    %cst_47 = arith.constant dense<0.000000e+00> : vector<128xf32>
    %234 = vector.multi_reduction <add>, %233, %cst_47 [0] : vector<32x128xf32> to vector<128xf32>
    %235 = vector.shape_cast %234 : vector<128xf32> to vector<1x128xf32>
    %c0_48 = arith.constant 0 : index
    %c0_49 = arith.constant 0 : index
    %236 = vector.load %arg8[%c0_48, %c0_49] : memref<1x1xf32, #tpu.memory_space<vmem>>, vector<1x1xf32>
    %237 = vector.broadcast %236 : vector<1x1xf32> to vector<1x128xf32>
    %238 = arith.addf %235, %237 : vector<1x128xf32>
    %c0_50 = arith.constant 0 : index
    %c0_51 = arith.constant 0 : index
    %239 = vector.load %arg9[%c0_50, %c0_51] : memref<1x128xf32, #tpu.memory_space<vmem>>, vector<1x128xf32>
    tpu.vector_store %arg9[%c0_50, %c0_51], %238 {strides = array<i32>} : memref<1x128xf32, #tpu.memory_space<vmem>>, vector<1x128xf32>,
    return
  }
  func.func @transform_0(%arg0: i32) -> (i32, i32) {
    %c0_i32 = arith.constant 0 : i32
    %c0_i32_0 = arith.constant 0 : i32
    return %c0_i32, %arg0 : i32, i32
  }
  func.func @transform_1(%arg0: i32) -> (i32, i32) {
    %c0_i32 = arith.constant 0 : i32
    %c0_i32_0 = arith.constant 0 : i32
    return %c0_i32, %arg0 : i32, i32
  }
  func.func @transform_2(%arg0: i32) -> (i32, i32) {
    %c0_i32 = arith.constant 0 : i32
    %c0_i32_0 = arith.constant 0 : i32
    %c0_i32_1 = arith.constant 0 : i32
    return %c0_i32, %c0_i32_0 : i32, i32
  }
  func.func @transform_3(%arg0: i32) -> (i32, i32, i32) {
    %c0_i32 = arith.constant 0 : i32
    %c0_i32_0 = arith.constant 0 : i32
    %c0_i32_1 = arith.constant 0 : i32
    %c0_i32_2 = arith.constant 0 : i32
    return %c0_i32, %c0_i32_0, %c0_i32_1 : i32, i32, i32
  }
  func.func @transform_4(%arg0: i32) -> (i32, i32) {
    %c0_i32 = arith.constant 0 : i32
    %c0_i32_0 = arith.constant 0 : i32
    %c0_i32_1 = arith.constant 0 : i32
    return %c0_i32, %c0_i32_0 : i32, i32
  }
  func.func @transform_5(%arg0: i32) -> (i32, i32) {
    %c0_i32 = arith.constant 0 : i32
    %c0_i32_0 = arith.constant 0 : i32
    %c0_i32_1 = arith.constant 0 : i32
    return %c0_i32, %c0_i32_0 : i32, i32
  }
  func.func @transform_6(%arg0: i32) -> (i32, i32) {
    %c0_i32 = arith.constant 0 : i32
    %c0_i32_0 = arith.constant 0 : i32
    %c0_i32_1 = arith.constant 0 : i32
    return %c0_i32, %c0_i32_0 : i32, i32
  }
  func.func @transform_7(%arg0: i32) -> (i32, i32) {
    %c0_i32 = arith.constant 0 : i32
    %c0_i32_0 = arith.constant 0 : i32
    %c0_i32_1 = arith.constant 0 : i32
    return %c0_i32, %c0_i32_0 : i32, i32
  }
  func.func @transform_8(%arg0: i32) -> (i32, i32) {
    %c0_i32 = arith.constant 0 : i32
    %c0_i32_0 = arith.constant 0 : i32
    return %c0_i32, %arg0 : i32, i32
  }
}

</mosaic_0001>

<bundles_post_ra>
// kernel: mt_qmixer_forward.1
= control target key start
LH: loop header
LB: loop body
LE: loop exit
PB: predicated region body
PF: predicated region fallthrough
CT: control target
= control target key end

     0   :  { %s6347_s0 = inlined_call_operand.vmem [shape: f32[88,256], index: 0, kind: input, shape index: {}]   ;;  %s6348_s1 = inlined_call_operand.vmem [shape: f32[4,256], index: 1, kind: input, shape index: {}]   ;;  %s6349_s2 = inlined_call_operand.vmem [shape: f32[768,88], index: 2, kind: input, shape index: {}]   ;;  %s6350_s3 = inlined_call_operand.vmem [shape: f32[8,96,1], index: 3, kind: input, shape index: {}]   ;;  %s6351_s4 = inlined_call_operand.vmem [shape: f32[128,32], index: 4, kind: input, shape index: {}]   ;;  %s6352_s5 = inlined_call_operand.vmem [shape: f32[128,1], index: 5, kind: input, shape index: {}]   ;;  %s6353_s6 = inlined_call_operand.vmem [shape: f32[32,1], index: 6, kind: input, shape index: {}]   ;;  %s6354_s7 = inlined_call_operand.<no memory space> [shape: f32[1,1], index: 7, kind: input, shape index: {}]   ;;  %s6355_s8 = inlined_call_operand.hbm [shape: f32[1,256], index: 8, kind: output, shape index: {}]  }
   0x1   :  { %v13_v0 = vstv %s6354_s7 }
   0x2   :  { %14 = vst [vmem:[#allocation2] sm:$0x1] %v13_v0 }
   0x3   :  { %15 = vsyncpa [#allocation5], 0 }
   0x4   :  { %17 = vsyncpa [#allocation5 + $0x1], 0  ;;  %s3871_s29 = smov 0   ;;  %s3873_s30 = smov 0  }
   0x5   :  { %s3875_s9 = smov 0   ;;  %s3877_s10 = smov 0  }
   0x6 LB: > { %s3892_s7 = sadd.s32 4294967295, %s3820_s10   ;;  %s3404_s11 = sadd.s32 4294967294, %s3820_s10   ;;  %s3820_s10 = sphi %s3877_s10, %s6706_s10   ;;  %s3816_s9 = sphi %s3875_s9, %s6705_s9   ;;  %s3812_s30 = sphi %s3873_s30, %s6704_s30   ;;  %s3808_s29 = sphi %s3871_s29, %s6703_s29  }
   0x7   : > { %s3896_s12 = sadd.s32 1, %s3820_s10   ;;  %s30_s13 = sadd.s32 1, %s3816_s9 }
   0x8   : > { %s27_s14 = ssub.s32 %s3820_s10, %s3896_s12  ;;  %p37_p0 = scmp.ne.s32.totalorder %s3816_s9, %s3812_s30 }
   0x9   : > { %p28_p1 = scmp.eq.s32.totalorder %s27_s14, 0  ;;  %p38_p2 = scmp.eq.s32.totalorder %s3820_s10, 0 }
   0xa   : > { %p219_p3 = scmp.eq.s32.totalorder %s3892_s7, 1  ;;  %p224_p4 = scmp.ne.s32.totalorder %s3812_s30, %s3808_s29 }
   0xb   : > { %s3908_s15 = scalar_select %p28_p1, %s3816_s9, %s30_s13  }
   0xc   : > { %p39_p5 = por %p38_p2, %p37_p0  ;;  %p3910_p6 = por %p219_p3, %p37_p0 }
   0xd   : > { %p225_p7 = scmp.eq.s32.totalorder %s3404_s11, 1  ;;  %p3406_p9 = scmp.ge.s32.totalorder %s3820_s10, 2 }
   0xf   : > { %p3914_p8 = por %p225_p7, %p224_p4  ;;  %259 = sbr.rel (%p3406_p9) target bundleno = 35 (0x23), region = 40 }
  0x14   : > { %262 = sbr.rel (!%p39_p5) target bundleno = 35 (0x23), region = 44  ;;  %s264_s18 = sand.u32 (%p39_p5), 1, %s3816_s9  }
  0x15   : > { %s3407_s19 = sshll.u32 (%p39_p5), %s3820_s10, 3  ;;  %s3561_s20 = smul.u32 (%p39_p5), 88, %s264_s18 }
  0x16   : > { %s268_s23 = scalar_lea.vmem (%p39_p5), %s6347_s0, %s3407_s19 }
  0x17   : > { %v317_v1 = vld [vmem:[%s268_s23] sm:$0xff] (%p39_p5)  ;;  %v319_v2 = vld [vmem:[%s268_s23 + $0x10] sm:$0xff] (%p39_p5)  ;;  %s266_s24 = scalar_lea.vmem (%p39_p5), [#allocation3], %s3561_s20 }
  0x18   : > { %v321_v3 = vld [vmem:[%s268_s23 + $0x20] sm:$0xff] (%p39_p5)  ;;  %318 = vst [vmem:[%s266_s24] sm:$0xff] (%p39_p5), %v317_v1  ;;  %v323_v4 = vld [vmem:[%s268_s23 + $0x30] sm:$0xff] (%p39_p5) }
  0x19   : > { %320 = vst [vmem:[%s266_s24 + $0x8] sm:$0xff] %v319_v2  ;;  %v325_v5 = vld [vmem:[%s268_s23 + $0x40] sm:$0xff]  ;;  %v327_v6 = vld [vmem:[%s268_s23 + $0x50] sm:$0xff] }
  0x1a   : > { %322 = vst [vmem:[%s266_s24 + $0x10] sm:$0xff] %v321_v3  ;;  %v329_v7 = vld [vmem:[%s268_s23 + $0x60] sm:$0xff]  ;;  %v331_v8 = vld [vmem:[%s268_s23 + $0x70] sm:$0xff] }
  0x1b   : > { %324 = vst [vmem:[%s266_s24 + $0x18] sm:$0xff] %v323_v4  ;;  %v333_v9 = vld [vmem:[%s268_s23 + $0x80] sm:$0xff]  ;;  %v335_v10 = vld [vmem:[%s268_s23 + $0x90] sm:$0xff] }
  0x1c   : > { %326 = vst [vmem:[%s266_s24 + $0x20] sm:$0xff] %v325_v5  ;;  %v337_v11 = vld [vmem:[%s268_s23 + $0xa0] sm:$0xff] }
  0x1d   : > { %328 = vst [vmem:[%s266_s24 + $0x28] sm:$0xff] %v327_v6 }
  0x1e   : > { %330 = vst [vmem:[%s266_s24 + $0x30] sm:$0xff] %v329_v7 }
  0x1f   : > { %332 = vst [vmem:[%s266_s24 + $0x38] sm:$0xff] %v331_v8 }
  0x20   : > { %334 = vst [vmem:[%s266_s24 + $0x40] sm:$0xff] %v333_v9 }
  0x21   : > { %336 = vst [vmem:[%s266_s24 + $0x48] sm:$0xff] %v335_v10 }
  0x22   : > { %338 = vst [vmem:[%s266_s24 + $0x50] sm:$0xff] %v337_v11 }
  0x23 PF: > { %p3408_p10 = scmp.ge.s32.totalorder %s3820_s10, 1  ;;  %p350_p11 = scmp.lt.s32.totalorder %s3820_s10, 3 }
  0x25   : > { %p351_p12 = pnand %p3408_p10, %p350_p11 }
  0x27   : > { %354 = sbr.rel (%p351_p12) target bundleno = 980 (0x3d4), region = 86 }
  0x2c   : > { %v1086_v12 = vld [vmem:[%s6350_s3 + $0x20] sm:$0xff]  ;;  %v1084_v13 = vld [vmem:[%s6350_s3 + $0x10] sm:$0xff]  ;;  %s3938_s14 = sand.u32 1, %s3812_s30   ;;  %v3822_v15 = vmov 0   ;;  %v1087_v19 = vld [vmem:[%s6350_s3 + $0x28] sm:$0xff]  ;;  %vm504_vm0 = vcmask 719872   ;;  %s3327_s11 = scalar_lea.hbm %s6355_s8, %s3892_s7 }
  0x2d   : > { %v1082_v14 = vld [vmem:[%s6350_s3] sm:$0xff]  ;;  %3605 = vset.pattern.permute.xlu2 %v3822_v15  ;;  %3604 = vset.pattern.permute.xlu1 %v3822_v15  ;;  %s3562_s18 = smul.u32 88, %s3938_s14  ;;  %v1085_v20 = vld [vmem:[%s6350_s3 + $0x18] sm:$0xff]  ;;  %v1083_v21 = vld [vmem:[%s6350_s3 + $0x8] sm:$0xff]  ;;  %vm1754_vm1 = vcmask 1041409   ;;  %vm1757_vm2 = vcmask 1042434  }
  0x2e   : > { %3603 = vset.pattern.permute.xlu0 %v3822_v15  ;;  %1184 = vperm.xlu2 %3605, %v1086_v12   ;;  %v1090_v26 = vld [vmem:[%s6350_s3 + $0x40] sm:$0xff]  ;;  %v1089_v27 = vld [vmem:[%s6350_s3 + $0x38] sm:$0xff]  ;;  %v1088_v28 = vld [vmem:[%s6350_s3 + $0x30] sm:$0xff]  ;;  %vm1760_vm3 = vcmask 1043459   ;;  %vm1763_vm4 = vcmask 1044484   ;;  %vm1766_vm5 = vcmask 1045509  }
  0x2f   : > { %1174 = vperm.xlu1 %3604, %v1084_v13   ;;  %1164 = vperm.xlu0 %3603, %v1082_v14   ;;  %s3941_s19 = scalar_lea.vmem [#allocation3], %s3562_s18  ;;  %v1093_v33 = vld [vmem:[%s6350_s3 + $0x58] sm:$0xff]  ;;  %v1092_v34 = vld [vmem:[%s6350_s3 + $0x50] sm:$0xff]  ;;  %v1091_v35 = vld [vmem:[%s6350_s3 + $0x48] sm:$0xff]  ;;  %vm1769_vm6 = vcmask 1046534   ;;  %vm1772_vm7 = vcmask 1047559  }
  0x30   : > { %v503_v16 = vld [vmem:[%s3941_s19 + $0x50] sm:$0xff]  ;;  %v502_v17 = vld [vmem:[%s3941_s19 + $0x48] sm:$0xff]  ;;  %v501_v18 = vld [vmem:[%s3941_s19 + $0x40] sm:$0xff]  ;;  %vm3041_vm8 = vcmask 261120   ;;  %p393_p13 = scmp.lt.s32.totalorder %s3892_s7, 1  ;;  %s392_s13 = scalar_lea.vmem [#allocation4], %s3938_s14 }
  0x31   : > { %798 = vmatpush.msra.mxu0 %v503_v16  ;;  %3529 = vmatpush.msra.mxu2 %v503_v16  ;;  %v500_v22 = vld [vmem:[%s3941_s19 + $0x38] sm:$0xff]  ;;  %v499_v23 = vld [vmem:[%s3941_s19 + $0x30] sm:$0xff]  ;;  %v498_v24 = vld [vmem:[%s3941_s19 + $0x28] sm:$0xff]  ;;  %s3331_s20 = sshll.u32 %s3327_s11, 4  ;;  %s3319_s21 = scalar_lea.sflag [#allocation5], %s3938_s14  ;;  %s3332_s20 = int_to_ptr.hbm [resolvable:$true] %s3331_s20 }
  0x32   : > { %3530 = vmatpush.msra.mxu3 %v503_v16  ;;  %3528 = vmatpush.msra.mxu1 %v503_v16  ;;  %v497_v25 = vld [vmem:[%s3941_s19 + $0x20] sm:$0xff]  ;;  %v496_v29 = vld [vmem:[%s3941_s19 + $0x18] sm:$0xff]  ;;  %v495_v30 = vld [vmem:[%s3941_s19 + $0x10] sm:$0xff]  ;;  %s3772_s22 = sshra.s32 %s3332_s20, 4  ;;  %s3778_s25 = scalar_lea.hbm %s6355_s8, 2  ;;  %s3773_s22 = int_to_ptr.hbm [resolvable:$true] %s3772_s22 }
  0x33   : > { %799 = vmatpush.msra.mxu0 %v502_v17  ;;  %3532 = vmatpush.msra.mxu2 %v502_v17  ;;  %v494_v31 = vld [vmem:[%s3941_s19 + $0x8] sm:$0xff]  ;;  %v493_v32 = vld [vmem:[%s3941_s19] sm:$0xff]  ;;  %s394_s19 = scalar_select %p393_p13, %s3892_s7, 1 }
  0x34   : > { %3533 = vmatpush.msra.mxu3 %v502_v17  ;;  %3531 = vmatpush.msra.mxu1 %v502_v17  ;;  %v397_v36 = vld [vmem:[%s6349_s2] sm:$0xff]  ;;  %v1096_v39 = vld [vmem:[%s6350_s3 + $0x70] sm:$0xff]  ;;  %v1095_v41 = vld [vmem:[%s6350_s3 + $0x68] sm:$0xff]  ;;  %s3774_s23 = scalar_lea.hbm %s3773_s22, 1  ;;  %p3779_p3 = scmp.lt.s32.totalorder %s3773_s22, %s6355_s8 }
  0x35   : > { %800 = vmatpush.msra.mxu0 %v501_v18  ;;  %3535 = vmatpush.msra.mxu2 %v501_v18  ;;  %v437_v37 = vld [vmem:[%s6349_s2 + $0x140] sm:$0xff]  ;;  %v398_v43 = vld [vmem:[%s6349_s2 + $0x8] sm:$0xff]  ;;  %v1097_v49 = vld [vmem:[%s6350_s3 + $0x78] sm:$0xff]  ;;  %s3409_s28 = sshll.u32 %s394_s19, 2  ;;  %p3775_p0 = scmp.ne.s32.totalorder %s3773_s22, %s3774_s23 }
  0x36   : > { %3536 = vmatpush.msra.mxu3 %v501_v18  ;;  %1189 = vperm.xlu2 %3605, %v1087_v19   ;;  %v465_v38 = vld [vmem:[%s6349_s2 + $0x220] sm:$0xff]  ;;  %v438_v44 = vld [vmem:[%s6349_s2 + $0x148] sm:$0xff]  ;;  %v399_v50 = vld [vmem:[%s6349_s2 + $0x10] sm:$0xff]  ;;  %s396_s18 = scalar_lea.vmem %s6348_s1, %s3409_s28  ;;  %p3780_p4 = scmp.lt.s32.totalorder %s3778_s25, %s3774_s23 }
  0x37   : > { %1179 = vperm.xlu1 %3604, %v1085_v20   ;;  %1169 = vperm.xlu0 %3603, %v1083_v21   ;;  %v425_v40 = vld [vmem:[%s6349_s2 + $0xe0] sm:$0xff]  ;;  %v466_v45 = vld [vmem:[%s6349_s2 + $0x228] sm:$0xff]  ;;  %v439_v51 = vld [vmem:[%s6349_s2 + $0x150] sm:$0xff]  ;;  %p3776_p1 = pnand %p3775_p0, %p3910_p6 }
  0x38   : > { %801 = vmatpush.msra.mxu0 %v500_v22  ;;  %3538 = vmatpush.msra.mxu2 %v500_v22  ;;  %v1094_v42 = vld [vmem:[%s6350_s3 + $0x60] sm:$0xff]  ;;  %v1099_v46 = vld [vmem:[%s6350_s3 + $0x88] sm:$0xff]  ;;  %v467_v52 = vld [vmem:[%s6349_s2 + $0x230] sm:$0xff]  ;;  %p3781_p5 = por %p3780_p4, %p3779_p3 }
  0x39   : > { %3539 = vmatpush.msra.mxu3 %v500_v22  ;;  %3534 = vmatpush.msra.mxu1 %v501_v18  ;;  %v426_v47 = vld [vmem:[%s6349_s2 + $0xe8] sm:$0xff]  ;;  %v1098_v48 = vld [vmem:[%s6350_s3 + $0x80] sm:$0xff]  ;;  %v427_v54 = vld [vmem:[%s6349_s2 + $0xf0] sm:$0xff]  ;;  %p3777_p2 = pneg %p3776_p1 }
  0x3a   : > { %802 = vmatpush.msra.mxu0 %v499_v23  ;;  %3541 = vmatpush.msra.mxu2 %v499_v23  ;;  %v1102_v53 = vld [vmem:[%s6350_s3 + $0xa0] sm:$0xff]  ;;  %v1101_v55 = vld [vmem:[%s6350_s3 + $0x98] sm:$0xff]  ;;  %v1100_v56 = vld [vmem:[%s6350_s3 + $0x90] sm:$0xff] }
  0x3b   : > { %3542 = vmatpush.msra.mxu3 %v499_v23  ;;  %3537 = vmatpush.msra.mxu1 %v500_v22  ;;  %v400_v57 = vld [vmem:[%s6349_s2 + $0x18] sm:$0xff]  ;;  %v1104_v62 = vld [vmem:[%s6350_s3 + $0xb0] sm:$0xff]  ;;  %v1103_v63 = vld [vmem:[%s6350_s3 + $0xa8] sm:$0xff]  ;;  %p3782_p7 = pnand %p3781_p5, %p3777_p2 }
  0x3c   : > { %803 = vmatpush.msra.mxu0 %v498_v24  ;;  %3544 = vmatpush.msra.mxu2 %v498_v24  ;;  %v440_v58 = vld [vmem:[%s6349_s2 + $0x158] sm:$0xff]  ;;  %v401_v0 = vld [vmem:[%s6349_s2 + $0x20] sm:$0xff]  ;;  %v1108_v3 = vld [vmem:[%s6350_s3 + $0xd0] sm:$0xff] }
  0x3d   : > { %3545 = vmatpush.msra.mxu3 %v498_v24  ;;  %3540 = vmatpush.msra.mxu1 %v499_v23  ;;  %v468_v59 = vld [vmem:[%s6349_s2 + $0x238] sm:$0xff]  ;;  %v441_v1 = vld [vmem:[%s6349_s2 + $0x160] sm:$0xff]  ;;  %v1107_v5 = vld [vmem:[%s6350_s3 + $0xc8] sm:$0xff] }
  0x3e   : > { %804 = vmatpush.msra.mxu0 %v497_v25  ;;  %3547 = vmatpush.msra.mxu2 %v497_v25  ;;  %v1105_v60 = vld [vmem:[%s6350_s3 + $0xb8] sm:$0xff]  ;;  %v469_v2 = vld [vmem:[%s6349_s2 + $0x240] sm:$0xff]  ;;  %v402_v7 = vld [vmem:[%s6349_s2 + $0x28] sm:$0xff] }
  0x3f   : > { %3548 = vmatpush.msra.mxu3 %v497_v25  ;;  %1204 = vperm.xlu2 %3605, %v1090_v26   ;;  %v428_v61 = vld [vmem:[%s6349_s2 + $0xf8] sm:$0xff]  ;;  %v429_v4 = vld [vmem:[%s6349_s2 + $0x100] sm:$0xff]  ;;  %v442_v8 = vld [vmem:[%s6349_s2 + $0x168] sm:$0xff] }
  0x40   : > { %1199 = vperm.xlu1 %3604, %v1089_v27   ;;  %1194 = vperm.xlu0 %3603, %v1088_v28   ;;  %v1106_v6 = vld [vmem:[%s6350_s3 + $0xc0] sm:$0xff]  ;;  %v470_v9 = vld [vmem:[%s6349_s2 + $0x248] sm:$0xff]  ;;  %v1109_v13 = vld [vmem:[%s6350_s3 + $0xd8] sm:$0xff] }
  0x41   : > { %805 = vmatpush.msra.mxu0 %v496_v29  ;;  %3550 = vmatpush.msra.mxu2 %v496_v29  ;;  %v1111_v10 = vld [vmem:[%s6350_s3 + $0xe8] sm:$0xff]  ;;  %v1110_v12 = vld [vmem:[%s6350_s3 + $0xe0] sm:$0xff]  ;;  %v403_v14 = vld [vmem:[%s6349_s2 + $0x30] sm:$0xff] }
  0x42   : > { %3551 = vmatpush.msra.mxu3 %v496_v29  ;;  %3543 = vmatpush.msra.mxu1 %v498_v24  ;;  %v430_v11 = vld [vmem:[%s6349_s2 + $0x108] sm:$0xff]  ;;  %v443_v15 = vld [vmem:[%s6349_s2 + $0x170] sm:$0xff]  ;;  %v1113_v19 = vld [vmem:[%s6350_s3 + $0xf8] sm:$0xff] }
  0x43   : > { %806 = vmatpush.msra.mxu0 %v495_v30  ;;  %3553 = vmatpush.msra.mxu2 %v495_v30  ;;  %v471_v16 = vld [vmem:[%s6349_s2 + $0x250] sm:$0xff]  ;;  %v404_v21 = vld [vmem:[%s6349_s2 + $0x38] sm:$0xff]  ;;  %v405_v28 = vld [vmem:[%s6349_s2 + $0x40] sm:$0xff] }
  0x44   : > { %3554 = vmatpush.msra.mxu3 %v495_v30  ;;  %3546 = vmatpush.msra.mxu1 %v497_v25  ;;  %v1124_v17 = vld [vmem:[%s6350_s3 + $0x150] sm:$0xff]  ;;  %v444_v22 = vld [vmem:[%s6349_s2 + $0x178] sm:$0xff] }
  0x45   : > { %807 = vmatpush.msra.mxu0 %v494_v31  ;;  %3556 = vmatpush.msra.mxu2 %v494_v31  ;;  %v431_v18 = vld [vmem:[%s6349_s2 + $0x110] sm:$0xff]  ;;  %v472_v23 = vld [vmem:[%s6349_s2 + $0x258] sm:$0xff] }
  0x46   : > { %3557 = vmatpush.msra.mxu3 %v494_v31  ;;  %3549 = vmatpush.msra.mxu1 %v496_v29  ;;  %v1112_v20 = vld [vmem:[%s6350_s3 + $0xf0] sm:$0xff]  ;;  %v1137_v24 = vld [vmem:[%s6350_s3 + $0x1b8] sm:$0xff]  ;;  %v445_v29 = vld [vmem:[%s6349_s2 + $0x180] sm:$0xff] }
  0x47   : > { %808 = vmatpush.msra.mxu0 %v493_v32  ;;  %3559 = vmatpush.msra.mxu2 %v493_v32  ;;  %v432_v25 = vld [vmem:[%s6349_s2 + $0x118] sm:$0xff]  ;;  %v1136_v26 = vld [vmem:[%s6350_s3 + $0x1b0] sm:$0xff] }
  0x48   : > { %3560 = vmatpush.msra.mxu3 %v493_v32  ;;  %1219 = vperm.xlu2 %3605, %v1093_v33   ;;  %v1125_v27 = vld [vmem:[%s6350_s3 + $0x158] sm:$0xff]  ;;  %v433_v33 = vld [vmem:[%s6349_s2 + $0x120] sm:$0xff] }
  0x49   : > { %1214 = vperm.xlu1 %3604, %v1092_v34   ;;  %1209 = vperm.xlu0 %3603, %v1091_v35   ;;  %v1145_v34 = vld [vmem:[%s6350_s3 + $0x218] sm:$0xff]  ;;  %v1144_v35 = vld [vmem:[%s6350_s3 + $0x210] sm:$0xff] }
  0x4a   : > { %3410 = vmatmul.msk.f32.vlgmr.msra.gmra.mxu0 %vm504_vm0, %v397_v36  ;;  %3450 = vmatmul.msk.f32.vlgmr.msra.gmra.mxu2 %vm504_vm0, %v437_v37  ;;  %v406_v36 = vld [vmem:[%s6349_s2 + $0x48] sm:$0xff] }
  0x4b   : > { %3478 = vmatmul.msk.f32.vlgmr.msra.gmra.mxu3 %vm504_vm0, %v465_v38  ;;  %3552 = vmatpush.msra.mxu1 %v495_v30  ;;  %v473_v30 = vld [vmem:[%s6349_s2 + $0x260] sm:$0xff]  ;;  %v446_v37 = vld [vmem:[%s6349_s2 + $0x188] sm:$0xff] }
  0x4c   : > { %v474_v38 = vld [vmem:[%s6349_s2 + $0x268] sm:$0xff] }
  0x4d   : > { %3555 = vmatpush.msra.mxu1 %v494_v31 }
  0x4f   : > { %3558 = vmatpush.msra.mxu1 %v493_v32  ;;  %v1152_v32 = vld [vmem:[%s6350_s3 + $0x270] sm:$0xff] }
  0x50   : > { %1234 = vperm.xlu2 %3605, %v1096_v39   ;;  %3438 = vmatmul.msk.f32.vlgmr.msra.gmra.mxu1 %vm504_vm0, %v425_v40  ;;  %v1161_v40 = vld [vmem:[%s6350_s3 + $0x2d8] sm:$0xff] }
  0x51   : > { %1229 = vperm.xlu1 %3604, %v1095_v41   ;;  %1224 = vperm.xlu0 %3603, %v1094_v42   ;;  %v434_v41 = vld [vmem:[%s6349_s2 + $0x128] sm:$0xff]  ;;  %v1160_v42 = vld [vmem:[%s6350_s3 + $0x2d0] sm:$0xff] }
  0x52   : > { %3411 = vmatmul.msk.f32.gmra.mxu0 %vm504_vm0, %v398_v43  ;;  %3451 = vmatmul.msk.f32.gmra.mxu2 %vm504_vm0, %v438_v44  ;;  %v1153_v43 = vld [vmem:[%s6350_s3 + $0x278] sm:$0xff]  ;;  %v407_v44 = vld [vmem:[%s6349_s2 + $0x50] sm:$0xff] }
  0x53   : > { %3479 = vmatmul.msk.f32.gmra.mxu3 %vm504_vm0, %v466_v45  ;;  %v447_v45 = vld [vmem:[%s6349_s2 + $0x190] sm:$0xff] }
  0x58   : > { %1249 = vperm.xlu2 %3605, %v1099_v46   ;;  %3439 = vmatmul.msk.f32.gmra.mxu1 %vm504_vm0, %v426_v47  ;;  %v475_v46 = vld [vmem:[%s6349_s2 + $0x270] sm:$0xff] }
  0x59   : > { %1244 = vperm.xlu1 %3604, %v1098_v48   ;;  %1239 = vperm.xlu0 %3603, %v1097_v49   ;;  %v1134_v48 = vld [vmem:[%s6350_s3 + $0x1a0] sm:$0xff]  ;;  %v435_v49 = vld [vmem:[%s6349_s2 + $0x130] sm:$0xff] }
  0x5a   : > { %3412 = vmatmul.msk.f32.gmra.mxu0 %vm504_vm0, %v399_v50  ;;  %3452 = vmatmul.msk.f32.gmra.mxu2 %vm504_vm0, %v439_v51  ;;  %v1123_v50 = vld [vmem:[%s6350_s3 + $0x148] sm:$0xff]  ;;  %v1122_v51 = vld [vmem:[%s6350_s3 + $0x140] sm:$0xff] }
  0x5b   : > { %3480 = vmatmul.msk.f32.gmra.mxu3 %vm504_vm0, %v467_v52  ;;  %v408_v52 = vld [vmem:[%s6349_s2 + $0x58] sm:$0xff] }
  0x60   : > { %1264 = vperm.xlu2 %3605, %v1102_v53   ;;  %3440 = vmatmul.msk.f32.gmra.mxu1 %vm504_vm0, %v427_v54  ;;  %v448_v53 = vld [vmem:[%s6349_s2 + $0x198] sm:$0xff] }
  0x61   : > { %1259 = vperm.xlu1 %3604, %v1101_v55   ;;  %1254 = vperm.xlu0 %3603, %v1100_v56   ;;  %v476_v54 = vld [vmem:[%s6349_s2 + $0x278] sm:$0xff] }
  0x62   : > { %3413 = vmatmul.msk.f32.gmra.mxu0 %vm504_vm0, %v400_v57  ;;  %3453 = vmatmul.msk.f32.gmra.mxu2 %vm504_vm0, %v440_v58  ;;  %v1143_v58 = vld [vmem:[%s6350_s3 + $0x208] sm:$0xff] }
  0x63   : > { %3481 = vmatmul.msk.f32.gmra.mxu3 %vm504_vm0, %v468_v59  ;;  %v436_v59 = vld [vmem:[%s6349_s2 + $0x138] sm:$0xff] }
  0x68   : > { %1279 = vperm.xlu2 %3605, %v1105_v60   ;;  %3441 = vmatmul.msk.f32.gmra.mxu1 %vm504_vm0, %v428_v61  ;;  %v1142_v60 = vld [vmem:[%s6350_s3 + $0x200] sm:$0xff]  ;;  %v1135_v61 = vld [vmem:[%s6350_s3 + $0x1a8] sm:$0xff] }
  0x69   : > { %1274 = vperm.xlu1 %3604, %v1104_v62   ;;  %1269 = vperm.xlu0 %3603, %v1103_v63   ;;  %v409_v62 = vld [vmem:[%s6349_s2 + $0x60] sm:$0xff] }
  0x6a   : > { %3414 = vmatmul.msk.f32.gmra.mxu0 %vm504_vm0, %v401_v0  ;;  %3454 = vmatmul.msk.f32.gmra.mxu2 %vm504_vm0, %v441_v1  ;;  %v449_v63 = vld [vmem:[%s6349_s2 + $0x1a0] sm:$0xff] }
  0x6b   : > { %3482 = vmatmul.msk.f32.gmra.mxu3 %vm504_vm0, %v469_v2  ;;  %v477_v0 = vld [vmem:[%s6349_s2 + $0x280] sm:$0xff] }
  0x70   : > { %1294 = vperm.xlu2 %3605, %v1108_v3   ;;  %3442 = vmatmul.msk.f32.gmra.mxu1 %vm504_vm0, %v429_v4  ;;  %v1158_v4 = vld [vmem:[%s6350_s3 + $0x2c0] sm:$0xff] }
  0x71   : > { %1289 = vperm.xlu1 %3604, %v1107_v5   ;;  %1284 = vperm.xlu0 %3603, %v1106_v6   ;;  %v1151_v5 = vld [vmem:[%s6350_s3 + $0x268] sm:$0xff]  ;;  %v1150_v6 = vld [vmem:[%s6350_s3 + $0x260] sm:$0xff] }
  0x72   : > { %3415 = vmatmul.msk.f32.gmra.mxu0 %vm504_vm0, %v402_v7  ;;  %3455 = vmatmul.msk.f32.gmra.mxu2 %vm504_vm0, %v442_v8  ;;  %v410_v7 = vld [vmem:[%s6349_s2 + $0x68] sm:$0xff] }
  0x73   : > { %3483 = vmatmul.msk.f32.gmra.mxu3 %vm504_vm0, %v470_v9  ;;  %v450_v8 = vld [vmem:[%s6349_s2 + $0x1a8] sm:$0xff] }
  0x74   : > { %v478_v9 = vld [vmem:[%s6349_s2 + $0x288] sm:$0xff] }
  0x78   : > { %1309 = vperm.xlu2 %3605, %v1111_v10   ;;  %3443 = vmatmul.msk.f32.gmra.mxu1 %vm504_vm0, %v430_v11 }
  0x79   : > { %1304 = vperm.xlu1 %3604, %v1110_v12   ;;  %1299 = vperm.xlu0 %3603, %v1109_v13   ;;  %v1120_v13 = vld [vmem:[%s6350_s3 + $0x130] sm:$0xff] }
  0x7a   : > { %3416 = vmatmul.msk.f32.gmra.mxu0 %vm504_vm0, %v403_v14  ;;  %3456 = vmatmul.msk.f32.gmra.mxu2 %vm504_vm0, %v443_v15  ;;  %v1121_v14 = vld [vmem:[%s6350_s3 + $0x138] sm:$0xff]  ;;  %v1159_v15 = vld [vmem:[%s6350_s3 + $0x2c8] sm:$0xff] }
  0x7b   : > { %3484 = vmatmul.msk.f32.gmra.mxu3 %vm504_vm0, %v471_v16  ;;  %v411_v16 = vld [vmem:[%s6349_s2 + $0x70] sm:$0xff] }
  0x80   : > { %1374 = vperm.xlu2 %3605, %v1124_v17   ;;  %3444 = vmatmul.msk.f32.gmra.mxu1 %vm504_vm0, %v431_v18  ;;  %v451_v17 = vld [vmem:[%s6349_s2 + $0x1b0] sm:$0xff] }
  0x81   : > { %1319 = vperm.xlu1 %3604, %v1113_v19   ;;  %1314 = vperm.xlu0 %3603, %v1112_v20   ;;  %v479_v18 = vld [vmem:[%s6349_s2 + $0x290] sm:$0xff] }
  0x82   : > { %3417 = vmatmul.msk.f32.gmra.mxu0 %vm504_vm0, %v404_v21  ;;  %3457 = vmatmul.msk.f32.gmra.mxu2 %vm504_vm0, %v444_v22  ;;  %v1132_v22 = vld [vmem:[%s6350_s3 + $0x190] sm:$0xff] }
  0x83   : > { %3485 = vmatmul.msk.f32.gmra.mxu3 %vm504_vm0, %v472_v23  ;;  %v1119_v23 = vld [vmem:[%s6350_s3 + $0x128] sm:$0xff] }
  0x88   : > { %1439 = vperm.xlu2 %3605, %v1137_v24   ;;  %v4189_v31 = vpop.permute.xlu2 %1184  ;;  %3445 = vmatmul.msk.f32.gmra.mxu1 %vm504_vm0, %v432_v25  ;;  %v1133_v24 = vld [vmem:[%s6350_s3 + $0x198] sm:$0xff] }
  0x89   : > { %1434 = vperm.xlu1 %3604, %v1136_v26   ;;  %1379 = vperm.xlu0 %3603, %v1125_v27   ;;  %v412_v25 = vld [vmem:[%s6349_s2 + $0x78] sm:$0xff] }
  0x8a   : > { %3418 = vmatmul.msk.f32.gmra.mxu0 %vm504_vm0, %v405_v28  ;;  %3458 = vmatmul.msk.f32.gmra.mxu2 %vm504_vm0, %v445_v29  ;;  %v452_v26 = vld [vmem:[%s6349_s2 + $0x1b8] sm:$0xff] }
  0x8b   : > { %3486 = vmatmul.msk.f32.gmra.mxu3 %vm504_vm0, %v473_v30  ;;  %v480_v27 = vld [vmem:[%s6349_s2 + $0x298] sm:$0xff]  ;;  %v1131_v30 = vld [vmem:[%s6350_s3 + $0x188] sm:$0xff] }
  0x90   : > { %1514 = vperm.xlu2 %3605, %v1152_v32   ;;  %v4216_v39 = vpop.permute.xlu2 %1189  ;;  %3446 = vmatmul.msk.f32.gmra.mxu1 %vm504_vm0, %v433_v33  ;;  %v1118_v33 = vld [vmem:[%s6350_s3 + $0x120] sm:$0xff] }
  0x91   : > { %1479 = vperm.xlu1 %3604, %v1145_v34   ;;  %1474 = vperm.xlu0 %3603, %v1144_v35   ;;  %v1141_v34 = vld [vmem:[%s6350_s3 + $0x1f8] sm:$0xff] }
  0x92   : > { %3419 = vmatmul.msk.f32.gmra.mxu0 %vm504_vm0, %v406_v36  ;;  %3459 = vmatmul.msk.f32.gmra.mxu2 %vm504_vm0, %v446_v37  ;;  %v413_v36 = vld [vmem:[%s6349_s2 + $0x80] sm:$0xff] }
  0x93   : > { %3487 = vmatmul.msk.f32.gmra.mxu3 %vm504_vm0, %v474_v38  ;;  %v453_v37 = vld [vmem:[%s6349_s2 + $0x1c0] sm:$0xff] }
  0x94   : > { %v481_v38 = vld [vmem:[%s6349_s2 + $0x2a0] sm:$0xff] }
  0x98   : > { %1559 = vperm.xlu2 %3605, %v1161_v40   ;;  %3447 = vmatmul.msk.f32.gmra.mxu1 %vm504_vm0, %v434_v41 }
  0x99   : > { %1554 = vperm.xlu1 %3604, %v1160_v42   ;;  %1519 = vperm.xlu0 %3603, %v1153_v43   ;;  %v4244_v47 = vpop.permute.xlu2 %1204  ;;  %v1130_v43 = vld [vmem:[%s6350_s3 + $0x180] sm:$0xff] }
  0x9a   : > { %6438 = vst [vmem:[#allocation7_spill] sm:$0xff] %v4244_v47  ;;  %3420 = vmatmul.msk.f32.gmra.mxu0 %vm504_vm0, %v407_v44  ;;  %3460 = vmatmul.msk.f32.gmra.mxu2 %vm504_vm0, %v447_v45  ;;  %v1149_v45 = vld [vmem:[%s6350_s3 + $0x258] sm:$0xff]  ;;  %v463_v47 = vld [vmem:[%s6349_s2 + $0x210] sm:$0xff] }
  0x9b   : > { %3488 = vmatmul.msk.f32.gmra.mxu3 %vm504_vm0, %v475_v46  ;;  %v1140_v46 = vld [vmem:[%s6350_s3 + $0x1f0] sm:$0xff] }
  0xa0   : > { %1424 = vperm.xlu2 %3605, %v1134_v48   ;;  %3448 = vmatmul.msk.f32.gmra.mxu1 %vm504_vm0, %v435_v49  ;;  %v414_v49 = vld [vmem:[%s6349_s2 + $0x88] sm:$0xff] }
  0xa1   : > { %1369 = vperm.xlu1 %3604, %v1123_v50   ;;  %1364 = vperm.xlu0 %3603, %v1122_v51   ;;  %v4271_v55 = vpop.permute.xlu1 %1174  ;;  %v4273_v56 = vpop.permute.xlu0 %1164  ;;  %v454_v50 = vld [vmem:[%s6349_s2 + $0x1c8] sm:$0xff] }
  0xa2   : > { %6439 = vst [vmem:[#allocation8_spill] sm:$0xff] %v4271_v55  ;;  %3421 = vmatmul.msk.f32.gmra.mxu0 %vm504_vm0, %v408_v52  ;;  %3461 = vmatmul.msk.f32.gmra.mxu2 %vm504_vm0, %v448_v53  ;;  %v4277_v57 = vpop.permute.xlu2 %1219  ;;  %v482_v52 = vld [vmem:[%s6349_s2 + $0x2a8] sm:$0xff] }
  0xa3   : > { %6440 = vst [vmem:[#allocation9_spill] sm:$0xff] %v4273_v56  ;;  %3489 = vmatmul.msk.f32.gmra.mxu3 %vm504_vm0, %v476_v54 }
  0xa4   : > { %6441 = vst [vmem:[#allocation10_spill] sm:$0xff] %v4277_v57 }
  0xa8   : > { %1469 = vperm.xlu2 %3605, %v1143_v58   ;;  %3449 = vmatmul.msk.f32.gmra.mxu1 %vm504_vm0, %v436_v59 }
  0xa9   : > { %1464 = vperm.xlu1 %3604, %v1142_v60   ;;  %1429 = vperm.xlu0 %3603, %v1135_v61   ;;  %v4302_v1 = vpop.permute.xlu1 %1179  ;;  %v4304_v2 = vpop.permute.xlu0 %1169  ;;  %v1157_v60 = vld [vmem:[%s6350_s3 + $0x2b8] sm:$0xff] }
  0xaa   : > { %6442 = vst [vmem:[#allocation11_spill] sm:$0xff] %v4302_v1  ;;  %3422 = vmatmul.msk.f32.gmra.mxu0 %vm504_vm0, %v409_v62  ;;  %3462 = vmatmul.msk.f32.gmra.mxu2 %vm504_vm0, %v449_v63  ;;  %v4308_v3 = vpop.permute.xlu2 %1234  ;;  %v1148_v62 = vld [vmem:[%s6350_s3 + $0x250] sm:$0xff]  ;;  %v1139_v63 = vld [vmem:[%s6350_s3 + $0x1e8] sm:$0xff] }
  0xab   : > { %6443 = vst [vmem:[#allocation12_spill] sm:$0xff] %v4304_v2  ;;  %3490 = vmatmul.msk.f32.gmra.mxu3 %vm504_vm0, %v477_v0 }
  0xac   : > { %6444 = vst [vmem:[#allocation13_spill] sm:$0xff] %v4308_v3 }
  0xb0   : > { %1544 = vperm.xlu2 %3605, %v1158_v4   ;;  %v415_v4 = vld [vmem:[%s6349_s2 + $0x90] sm:$0xff] }
  0xb1   : > { %1509 = vperm.xlu1 %3604, %v1151_v5   ;;  %1504 = vperm.xlu0 %3603, %v1150_v6   ;;  %v455_v5 = vld [vmem:[%s6349_s2 + $0x1d0] sm:$0xff] }
  0xb2   : > { %3423 = vmatmul.msk.f32.gmra.mxu0 %vm504_vm0, %v410_v7  ;;  %3463 = vmatmul.msk.f32.gmra.mxu2 %vm504_vm0, %v450_v8  ;;  %v4331_v10 = vpop.permute.xlu2 %1249  ;;  %v4333_v11 = vpop.permute.xlu1 %1199  ;;  %v483_v6 = vld [vmem:[%s6349_s2 + $0x2b0] sm:$0xff] }
  0xb3   : > { %3491 = vmatmul.msk.f32.gmra.mxu3 %vm504_vm0, %v478_v9  ;;  %v4336_v12 = vpop.permute.xlu0 %1194 }
  0xb8   : > { %1354 = vperm.xlu2 %3605, %v1120_v13  }
  0xb9   : > { %1359 = vperm.xlu1 %3604, %v1121_v14   ;;  %1549 = vperm.xlu0 %3603, %v1159_v15   ;;  %v1156_v14 = vld [vmem:[%s6350_s3 + $0x2b0] sm:$0xff] }
  0xba   : > { %3424 = vmatmul.msk.f32.gmra.mxu0 %vm504_vm0, %v411_v16  ;;  %3464 = vmatmul.msk.f32.gmra.mxu2 %vm504_vm0, %v451_v17  ;;  %v4363_v21 = vpop.permute.xlu2 %1264  ;;  %v1147_v17 = vld [vmem:[%s6350_s3 + $0x248] sm:$0xff] }
  0xbb   : > { %3492 = vmatmul.msk.f32.gmra.mxu3 %vm504_vm0, %v479_v18  ;;  %v4359_v19 = vpop.permute.xlu1 %1214  ;;  %v4361_v20 = vpop.permute.xlu0 %1209  ;;  %6447 = vst [vmem:[#allocation16_spill] sm:$0xff] %v4363_v21  ;;  %v1138_v18 = vld [vmem:[%s6350_s3 + $0x1e0] sm:$0xff]  ;;  %v423_v21 = vld [vmem:[%s6349_s2 + $0xd0] sm:$0xff] }
  0xbc   : > { %6445 = vst [vmem:[#allocation14_spill] sm:$0xff] %v4359_v19 }
  0xbd   : > { %6446 = vst [vmem:[#allocation15_spill] sm:$0xff] %v4361_v20 }
  0xc0   : > { %1414 = vperm.xlu2 %3605, %v1132_v22  }
  0xc1   : > { %1349 = vperm.xlu1 %3604, %v1119_v23   ;;  %1419 = vperm.xlu0 %3603, %v1133_v24   ;;  %v416_v23 = vld [vmem:[%s6349_s2 + $0x98] sm:$0xff] }
  0xc2   : > { %3425 = vmatmul.msk.f32.gmra.mxu0 %vm504_vm0, %v412_v25  ;;  %3465 = vmatmul.msk.f32.gmra.mxu2 %vm504_vm0, %v452_v26  ;;  %v4393_v32 = vpop.permute.xlu2 %1279  ;;  %v456_v24 = vld [vmem:[%s6349_s2 + $0x1d8] sm:$0xff] }
  0xc3   : > { %3493 = vmatmul.msk.f32.gmra.mxu3 %vm504_vm0, %v480_v27  ;;  %v4386_v28 = vpop.permute.xlu1 %1229  ;;  %v4388_v29 = vpop.permute.xlu0 %1224  ;;  %6450 = vst [vmem:[#allocation19_spill] sm:$0xff] %v4393_v32  ;;  %v484_v25 = vld [vmem:[%s6349_s2 + $0x2b8] sm:$0xff] }
  0xc4   : > { %6448 = vst [vmem:[#allocation17_spill] sm:$0xff] %v4386_v28 }
  0xc5   : > { %6449 = vst [vmem:[#allocation18_spill] sm:$0xff] %v4388_v29 }
  0xc7   : > { %v4401_v35 = vpop.f32.mrf.mxu0 }
  0xc8   : > { %6451 = vst [vmem:[#allocation20_spill] sm:$0xff] %v4401_v35  ;;  %1409 = vperm.xlu2 %3605, %v1131_v30   ;;  %v3309_v35 = vld [vmem:[#allocation2] sm:$0x1] }
  0xc9   : > { %1344 = vperm.xlu1 %3604, %v1118_v33   ;;  %1459 = vperm.xlu0 %3603, %v1141_v34   ;;  %v1154_v34 = vld [vmem:[%s6350_s3 + $0x2a0] sm:$0xff] }
  0xca   : > { %3426 = vmatmul.msk.f32.gmra.mxu0 %vm504_vm0, %v413_v36  ;;  %3466 = vmatmul.msk.f32.gmra.mxu2 %vm504_vm0, %v453_v37  ;;  %v4438_v51 = vpop.permute.xlu2 %1294  ;;  %v1155_v37 = vld [vmem:[%s6350_s3 + $0x2a8] sm:$0xff] }
  0xcb   : > { %3494 = vmatmul.msk.f32.gmra.mxu3 %vm504_vm0, %v481_v38  ;;  %v4415_v40 = vpop.permute.xlu1 %1244  ;;  %v4417_v41 = vpop.permute.xlu0 %1239  ;;  %6454 = vst [vmem:[#allocation23_spill] sm:$0xff] %v4438_v51  ;;  %v1146_v38 = vld [vmem:[%s6350_s3 + $0x240] sm:$0xff] }
  0xcc   : > { %6452 = vst [vmem:[#allocation21_spill] sm:$0xff] %v4417_v41 }
  0xcd   : > { %v4419_v42 = vpop.f32.mrf.mxu2  ;;  %v4450_v58 = vpop.f32.mrf.mxu1 }
  0xce   : > { %v1010_v44 = vpop.f32.mrf.mxu3 }
  0xcf   : > { %v4430_v48 = vpop.f32.mrf.mxu0  ;;  %v417_v44 = vld [vmem:[%s6349_s2 + $0xa0] sm:$0xff] }
  0xd0   : > { %6453 = vst [vmem:[#allocation22_spill] sm:$0xff] %v4430_v48  ;;  %1404 = vperm.xlu2 %3605, %v1130_v43  }
  0xd1   : > { %1499 = vperm.xlu1 %3604, %v1149_v45   ;;  %1454 = vperm.xlu0 %3603, %v1140_v46   ;;  %v457_v45 = vld [vmem:[%s6349_s2 + $0x1e0] sm:$0xff] }
  0xd2   : > { %3427 = vmatmul.msk.f32.gmra.mxu0 %vm504_vm0, %v414_v49  ;;  %3467 = vmatmul.msk.f32.gmra.mxu2 %vm504_vm0, %v454_v50  ;;  %v4474_v7 = vpop.permute.xlu2 %1309 }
  0xd3   : > { %3495 = vmatmul.msk.f32.gmra.mxu3 %vm504_vm0, %v482_v52  ;;  %v4446_v53 = vpop.permute.xlu1 %1259  ;;  %v4448_v54 = vpop.permute.xlu0 %1254  ;;  %v485_v52 = vld [vmem:[%s6349_s2 + $0x2c0] sm:$0xff] }
  0xd5   : > { %v4452_v59 = vpop.f32.mrf.mxu2  ;;  %v4486_v16 = vpop.f32.mrf.mxu1 }
  0xd6   : > { %v1012_v61 = vpop.f32.mrf.mxu3 }
  0xd7   : > { %v4463_v0 = vpop.f32.mrf.mxu0 }
  0xd8   : > { %6455 = vst [vmem:[#allocation24_spill] sm:$0xff] %v4463_v0  ;;  %1539 = vperm.xlu2 %3605, %v1157_v60  }
  0xd9   : > { %1494 = vperm.xlu1 %3604, %v1148_v62   ;;  %1449 = vperm.xlu0 %3603, %v1139_v63   ;;  %v1116_v63 = vld [vmem:[%s6350_s3 + $0x110] sm:$0xff] }
  0xda   : > { %3428 = vmatmul.msk.f32.gmra.mxu0 %vm504_vm0, %v415_v4  ;;  %3468 = vmatmul.msk.f32.gmra.mxu2 %vm504_vm0, %v455_v5  ;;  %v1375_v30 = vpop.permute.xlu2 %1374  ;;  %v1115_v5 = vld [vmem:[%s6350_s3 + $0x108] sm:$0xff] }
  0xdb   : > { %3496 = vmatmul.msk.f32.gmra.mxu3 %vm504_vm0, %v483_v6  ;;  %v4479_v8 = vpop.permute.xlu1 %1274  ;;  %v4481_v9 = vpop.permute.xlu0 %1269  ;;  %v1114_v6 = vld [vmem:[%s6350_s3 + $0x100] sm:$0xff] }
  0xdc   : > { %6456 = vst [vmem:[#allocation25_spill] sm:$0xff] %v4479_v8 }
  0xdd   : > { %6457 = vst [vmem:[#allocation26_spill] sm:$0xff] %v4481_v9  ;;  %v936_v13 = vpop.f32.mrf.mxu2  ;;  %v900_v50 = vpop.f32.mrf.mxu1 }
  0xde   : > { %v1014_v15 = vpop.f32.mrf.mxu3  ;;  %v4529_v46 = vadd.f32 %v1375_v30, %v936_v13 }
  0xdf   : > { %v4494_v22 = vpop.f32.mrf.mxu0  ;;  %v458_v15 = vld [vmem:[%s6349_s2 + $0x1e8] sm:$0xff] }
  0xe0   : > { %6458 = vst [vmem:[#allocation27_spill] sm:$0xff] %v4494_v22  ;;  %1534 = vperm.xlu2 %3605, %v1156_v14   ;;  %v418_v14 = vld [vmem:[%s6349_s2 + $0xa8] sm:$0xff] }
  0xe1   : > { %1489 = vperm.xlu1 %3604, %v1147_v17   ;;  %1444 = vperm.xlu0 %3603, %v1138_v18   ;;  %6461 = vst [vmem:[#allocation30_spill] sm:$0xff] %v4529_v46  ;;  %v486_v17 = vld [vmem:[%s6349_s2 + $0x2c8] sm:$0xff] }
  0xe2   : > { %3429 = vmatmul.msk.f32.gmra.mxu0 %vm504_vm0, %v416_v23  ;;  %3469 = vmatmul.msk.f32.gmra.mxu2 %vm504_vm0, %v456_v24  ;;  %v4711_v57 = vpop.permute.xlu2 %1439 }
  0xe3   : > { %3497 = vmatmul.msk.f32.gmra.mxu3 %vm504_vm0, %v484_v25  ;;  %v4508_v26 = vpop.permute.xlu1 %1289  ;;  %v4510_v27 = vpop.permute.xlu0 %1284 }
  0xe4   : > { %6459 = vst [vmem:[#allocation28_spill] sm:$0xff] %v4508_v26 }
  0xe5   : > { %6460 = vst [vmem:[#allocation29_spill] sm:$0xff] %v4510_v27  ;;  %v4512_v33 = vpop.f32.mrf.mxu2  ;;  %v903_v18 = vpop.f32.mrf.mxu1 }
  0xe6   : > { %v1016_v36 = vpop.f32.mrf.mxu3 }
  0xe7   : > { %v822_v43 = vpop.f32.mrf.mxu0 }
  0xe8   : > { %v4532_v49 = vadd.f32 %v4189_v31, %v822_v43  ;;  %1524 = vperm.xlu2 %3605, %v1154_v34  }
  0xe9   : > { %1529 = vperm.xlu1 %3604, %v1155_v37   ;;  %1484 = vperm.xlu0 %3603, %v1146_v38   ;;  %v1127_v37 = vld [vmem:[%s6350_s3 + $0x168] sm:$0xff] }
  0xea   : > { %v4539_v60 = vmul.f32 %v4529_v46, %v4532_v49  ;;  %3430 = vmatmul.msk.f32.gmra.mxu0 %vm504_vm0, %v417_v44  ;;  %3470 = vmatmul.msk.f32.gmra.mxu2 %vm504_vm0, %v457_v45  ;;  %v1117_v45 = vld [vmem:[%s6350_s3 + $0x118] sm:$0xff] }
  0xeb   : > { %3498 = vmatmul.msk.f32.gmra.mxu3 %vm504_vm0, %v485_v52  ;;  %v1305_v31 = vpop.permute.xlu1 %1304  ;;  %v4544_v61 = vpop.permute.xlu0 %1299  ;;  %v419_v52 = vld [vmem:[%s6349_s2 + $0xb0] sm:$0xff] }
  0xec   : > { %6462 = vst [vmem:[#allocation31_spill] sm:$0xff] %v4544_v61 }
  0xed   : > { %v4546_v62 = vpop.f32.mrf.mxu2 }
  0xee   : > { %6463 = vst [vmem:[#allocation32_spill] sm:$0xff] %v4546_v62  ;;  %v4551_v4 = vpop.f32.mrf.mxu3 }
  0xef   : > { %6464 = vst [vmem:[#allocation33_spill] sm:$0xff] %v4551_v4  ;;  %v825_v13 = vpop.f32.mrf.mxu0 }
  0xf0   : > { %1334 = vperm.xlu2 %3605, %v1116_v63   ;;  %v4572_v25 = vadd.f32 %v4216_v39, %v825_v13  ;;  %v1126_v39 = vld [vmem:[%s6350_s3 + $0x160] sm:$0xff]  ;;  %v459_v63 = vld [vmem:[%s6349_s2 + $0x1f0] sm:$0xff] }
  0xf1   : > { %1329 = vperm.xlu1 %3604, %v1115_v5   ;;  %1324 = vperm.xlu0 %3603, %v1114_v6   ;;  %v487_v13 = vld [vmem:[%s6349_s2 + $0x2d0] sm:$0xff] }
  0xf2   : > { %3431 = vmatmul.msk.f32.gmra.mxu0 %vm504_vm0, %v418_v14  ;;  %3471 = vmatmul.msk.f32.gmra.mxu2 %vm504_vm0, %v458_v15  ;;  %v4611_v14 = vadd.f32 %v4474_v7, %v4486_v16  ;;  %v4614_v15 = vadd.f32 %v1305_v31, %v4450_v58  ;;  %v2945_v58 = vld [vmem:[%s6352_s5] sm:$0xff] }
  0xf3   : > { %3499 = vmatmul.msk.f32.gmra.mxu3 %vm504_vm0, %v486_v17  ;;  %v1320_v23 = vpop.permute.xlu1 %1319  ;;  %v1315_v24 = vpop.permute.xlu0 %1314 }
  0xf4   : > { %v4574_v30 = vadd.f32 %v1320_v23, %v903_v18  ;;  %v4576_v34 = vadd.f32 %v1315_v24, %v900_v50  ;;  %6469 = vst [vmem:[#allocation38_spill] sm:$0xff] %v4611_v14  ;;  %v1955_v16 = vmul.f32 %v4529_v46, %v4614_v15 }
  0xf5   : > { %v4578_v36 = vpop.f32.mrf.mxu2 }
  0xf6   : > { %6465 = vst [vmem:[#allocation34_spill] sm:$0xff] %v4574_v30  ;;  %v1647_v38 = vmul.f32 %v4574_v30, %v4572_v25  ;;  %v1646_v43 = vmul.f32 %v4576_v34, %v4532_v49  ;;  %v4587_v44 = vpop.f32.mrf.mxu3 }
  0xf7   : > { %6466 = vst [vmem:[#allocation35_spill] sm:$0xff] %v4576_v34  ;;  %v828_v50 = vpop.f32.mrf.mxu0 }
  0xf8   : > { %6467 = vst [vmem:[#allocation36_spill] sm:$0xff] %v4578_v36  ;;  %v4601_v5 = vadd.f32 %v1647_v38, %v1646_v43  ;;  %v4604_v6 = vadd.f32 %v4336_v12, %v828_v50  ;;  %1389 = vperm.xlu2 %3605, %v1127_v37   ;;  %v1128_v38 = vld [vmem:[%s6350_s3 + $0x170] sm:$0xff] }
  0xf9   : > { %6468 = vst [vmem:[#allocation37_spill] sm:$0xff] %v4587_v44  ;;  %1384 = vperm.xlu1 %3604, %v1126_v39   ;;  %1339 = vperm.xlu0 %3603, %v1117_v45   ;;  %v420_v39 = vld [vmem:[%s6349_s2 + $0xb8] sm:$0xff] }
  0xfa   : > { %v1642_v17 = vmul.f32 %v4604_v6, %v4532_v49  ;;  %3432 = vmatmul.msk.f32.gmra.mxu0 %vm504_vm0, %v419_v52  ;;  %3472 = vmatmul.msk.f32.gmra.mxu2 %vm504_vm0, %v459_v63  ;;  %v460_v45 = vld [vmem:[%s6349_s2 + $0x1f8] sm:$0xff] }
  0xfb   : > { %3500 = vmatmul.msk.f32.gmra.mxu3 %vm504_vm0, %v487_v13  ;;  %v4621_v12 = vpop.permute.xlu1 %1434  ;;  %v1380_v18 = vpop.permute.xlu0 %1379  ;;  %v488_v63 = vld [vmem:[%s6349_s2 + $0x2d8] sm:$0xff]  ;;  %v1949_v13 = vmul.f32 %v4614_v15, %v4604_v6 }
  0xfc   : > { %v4624_v23 = vadd.f32 %v1380_v18, %v4512_v33  ;;  %v1129_v33 = vld [vmem:[%s6350_s3 + $0x178] sm:$0xff] }
  0xfd   : > { %v4626_v7 = vpop.f32.mrf.mxu2 }
  0xfe   : > { %6470 = vst [vmem:[#allocation39_spill] sm:$0xff] %v4624_v23  ;;  %v1649_v31 = vmul.f32 %v4624_v23, %v4572_v25  ;;  %v1956_v24 = vmul.f32 %v4624_v23, %v4611_v14  ;;  %v4637_v37 = vpop.f32.mrf.mxu3 }
  0xff   : > { %6471 = vst [vmem:[#allocation40_spill] sm:$0xff] %v4626_v7  ;;  %v831_v43 = vpop.f32.mrf.mxu0 }
 0x100   : > { %6472 = vst [vmem:[#allocation41_spill] sm:$0xff] %v4637_v37  ;;  %v4652_v50 = vadd.f32 %v1649_v31, %v4539_v60  ;;  %v4654_v52 = vadd.f32 %v1956_v24, %v1955_v16  ;;  %2963 = vperm.xlu2 %3605, %v2945_v58   ;;  %v4662_v18 = vadd.f32 %v4333_v11, %v831_v43 }
 0x101   : > { %1399 = vperm.xlu1 %3604, %v1129_v33   ;;  %1394 = vperm.xlu0 %3603, %v1128_v38   ;;  %v2948_v38 = vld [vmem:[%s6352_s5 + $0x18] sm:$0xff] }
 0x102   : > { %3433 = vmatmul.msk.f32.gmra.mxu0 %vm504_vm0, %v420_v39  ;;  %3473 = vmatmul.msk.f32.gmra.mxu2 %vm504_vm0, %v460_v45  ;;  %v1643_v60 = vmul.f32 %v4662_v18, %v4572_v25  ;;  %v1950_v58 = vmul.f32 %v4611_v14, %v4662_v18  ;;  %v2947_v39 = vld [vmem:[%s6352_s5 + $0x10] sm:$0xff]  ;;  %v2946_v45 = vld [vmem:[%s6352_s5 + $0x8] sm:$0xff] }
 0x103   : > { %3501 = vmatmul.msk.f32.gmra.mxu3 %vm504_vm0, %v488_v63  ;;  %v4671_v16 = vpop.permute.xlu1 %1479  ;;  %v4673_v31 = vpop.permute.xlu0 %1474  ;;  %v421_v63 = vld [vmem:[%s6349_s2 + $0xc0] sm:$0xff] }
 0x104   : > { %6473 = vst [vmem:[#allocation42_spill] sm:$0xff] %v4671_v16  ;;  %v4675_v11 = vadd.f32 %v1643_v60, %v1642_v17  ;;  %v4677_v24 = vadd.f32 %v1950_v58, %v1949_v13  ;;  %v461_v13 = vld [vmem:[%s6349_s2 + $0x200] sm:$0xff] }
 0x105   : > { %6474 = vst [vmem:[#allocation43_spill] sm:$0xff] %v4673_v31  ;;  %v4679_v33 = vpop.f32.mrf.mxu2 }
 0x106   : > { %6475 = vst [vmem:[#allocation44_spill] sm:$0xff] %v4679_v33  ;;  %v4684_v43 = vpop.f32.mrf.mxu3  ;;  %v2951_v33 = vld [vmem:[%s6352_s5 + $0x30] sm:$0xff] }
 0x107   : > { %6476 = vst [vmem:[#allocation45_spill] sm:$0xff] %v4684_v43  ;;  %v4692_v17 = vpop.f32.mrf.mxu0 }
 0x108   : > { %6477 = vst [vmem:[#allocation46_spill] sm:$0xff] %v4692_v17  ;;  %2978 = vperm.xlu2 %3605, %v2948_v38   ;;  %v2950_v38 = vld [vmem:[%s6352_s5 + $0x28] sm:$0xff]  ;;  %v1515_v17 = vpop.permute.xlu2 %1514 }
 0x109   : > { %2973 = vperm.xlu1 %3604, %v2947_v39   ;;  %2968 = vperm.xlu0 %3603, %v2946_v45   ;;  %v2949_v39 = vld [vmem:[%s6352_s5 + $0x20] sm:$0xff] }
 0x10a   : > { %3434 = vmatmul.msk.f32.gmra.mxu0 %vm504_vm0, %v421_v63  ;;  %3474 = vmatmul.msk.f32.gmra.mxu2 %vm504_vm0, %v461_v13  ;;  %v422_v63 = vld [vmem:[%s6349_s2 + $0xc8] sm:$0xff] }
 0x10b   : > { %v4702_v60 = vpop.permute.xlu1 %1554  ;;  %v4704_v58 = vpop.permute.xlu0 %1519  ;;  %v462_v13 = vld [vmem:[%s6349_s2 + $0x208] sm:$0xff] }
 0x10d   : > { %v4706_v32 = vpop.f32.mrf.mxu2 }
 0x10e   : > { %6478 = vst [vmem:[#allocation47_spill] sm:$0xff] %v4706_v32  ;;  %v1030_v7 = vpop.f32.mrf.mxu3  ;;  %v2959_v32 = vld [vmem:[%s6352_s5 + $0x70] sm:$0xff] }
 0x10f   : > { %v4719_v45 = vpop.f32.mrf.mxu0 }
 0x110   : > { %6479 = vst [vmem:[#allocation48_spill] sm:$0xff] %v4719_v45  ;;  %2993 = vperm.xlu2 %3605, %v2951_v33   ;;  %v2954_v33 = vld [vmem:[%s6352_s5 + $0x48] sm:$0xff] }
 0x111   : > { %2988 = vperm.xlu1 %3604, %v2950_v38   ;;  %2983 = vperm.xlu0 %3603, %v2949_v39  }
 0x112   : > { %3435 = vmatmul.msk.f32.gmra.mxu0 %vm504_vm0, %v422_v63  ;;  %3475 = vmatmul.msk.f32.gmra.mxu2 %vm504_vm0, %v462_v13 }
 0x113   : > { %v1370_v8 = vpop.permute.xlu1 %1369  ;;  %v1365_v19 = vpop.permute.xlu0 %1364 }
 0x114   : > { %v4730_v36 = vadd.f32 %v1370_v8, %v4452_v59  ;;  %v4733_v9 = vadd.f32 %v1365_v19, %v4419_v42  ;;  %v2953_v42 = vld [vmem:[%s6352_s5 + $0x40] sm:$0xff]  ;;  %v2952_v8 = vld [vmem:[%s6352_s5 + $0x38] sm:$0xff] }
 0x115   : > { %v4735_v20 = vpop.f32.mrf.mxu2 }
 0x116   : > { %6480 = vst [vmem:[#allocation49_spill] sm:$0xff] %v4730_v36  ;;  %v2100_v38 = vmul.f32 %v4730_v36, %v4662_v18  ;;  %v2104_v39 = vmul.f32 %v4730_v36, %v4574_v30  ;;  %v2106_v63 = vmul.f32 %v4624_v23, %v4730_v36  ;;  %v2099_v59 = vmul.f32 %v4733_v9, %v4604_v6  ;;  %v1033_v19 = vpop.f32.mrf.mxu3 }
 0x117   : > { %6481 = vst [vmem:[#allocation50_spill] sm:$0xff] %v4735_v20  ;;  %v2103_v13 = vmul.f32 %v4733_v9, %v4576_v34  ;;  %v2105_v45 = vmul.f32 %v4529_v46, %v4733_v9  ;;  %v4758_v62 = vpop.f32.mrf.mxu0 }
 0x118   : > { %6482 = vst [vmem:[#allocation51_spill] sm:$0xff] %v4758_v62  ;;  %v4766_v4 = vadd.f32 %v2100_v38, %v2099_v59  ;;  %3008 = vperm.xlu2 %3605, %v2954_v33   ;;  %v2955_v38 = vld [vmem:[%s6352_s5 + $0x50] sm:$0xff]  ;;  %v464_v59 = vld [vmem:[%s6349_s2 + $0x218] sm:$0xff] }
 0x119   : > { %v2129_v44 = vadd.f32 %v2104_v39, %v2103_v13  ;;  %v4768_v37 = vadd.f32 %v2106_v63, %v2105_v45  ;;  %3003 = vperm.xlu1 %3604, %v2953_v42   ;;  %2998 = vperm.xlu0 %3603, %v2952_v8   ;;  %v2958_v45 = vld [vmem:[%s6352_s5 + $0x68] sm:$0xff]  ;;  %v424_v63 = vld [vmem:[%s6349_s2 + $0xd8] sm:$0xff]  ;;  %v1673_v42 = vrot.slane %v4601_v5, 4  ;;  %v4802_v13 = vpop.permute.xlu2 %1559 }
 0x11a   : > { %3436 = vmatmul.msk.f32.gmra.mxu0 %vm504_vm0, %v423_v21  ;;  %3476 = vmatmul.msk.f32.gmra.mxu2 %vm504_vm0, %v463_v47  ;;  %v2957_v47 = vld [vmem:[%s6352_s5 + $0x60] sm:$0xff] }
 0x11b   : > { %v4772_v62 = vpop.permute.xlu1 %1464  ;;  %v4774_v27 = vpop.permute.xlu0 %1429  ;;  %v1674_v43 = vadd.f32 %v1673_v42, %v4601_v5  ;;  %v2956_v42 = vld [vmem:[%s6352_s5 + $0x58] sm:$0xff] }
 0x11c   : > { %6483 = vst [vmem:[#allocation52_spill] sm:$0xff] %v4772_v62 }
 0x11d   : > { %v4776_v61 = vpop.f32.mrf.mxu2 }
 0x11e   : > { %6484 = vst [vmem:[#allocation53_spill] sm:$0xff] %v4776_v61  ;;  %v1036_v33 = vpop.f32.mrf.mxu3 }
 0x11f   : > { %v4784_v39 = vadd.f32 %v1515_v17, %v1036_v33  ;;  %v4786_v21 = vpop.f32.mrf.mxu0 }
 0x120   : > { %6486 = vst [vmem:[#allocation55_spill] sm:$0xff] %v4786_v21  ;;  %3013 = vperm.xlu2 %3605, %v2955_v38   ;;  %v2130_v21 = vrot.slane %v2129_v44, 4 }
 0x121   : > { %6485 = vst [vmem:[#allocation54_spill] sm:$0xff] %v4784_v39  ;;  %v1654_v17 = vmul.f32 %v4784_v39, %v4532_v49  ;;  %v2111_v8 = vmul.f32 %v4784_v39, %v4733_v9  ;;  %3028 = vperm.xlu1 %3604, %v2958_v45   ;;  %3023 = vperm.xlu0 %3603, %v2957_v47   ;;  %v2960_v47 = vld [vmem:[%s6352_s5 + $0x78] sm:$0xff] }
 0x122   : > { %3437 = vmatmul.msk.f32.gmra.mxu0 %vm504_vm0, %v424_v63  ;;  %3477 = vmatmul.msk.f32.gmra.mxu2 %vm504_vm0, %v464_v59  ;;  %v1961_v41 = vmul.f32 %v4784_v39, %v4614_v15  ;;  %v2131_v29 = vadd.f32 %v2130_v21, %v2129_v44  ;;  %v1675_v21 = vrot.slane %v1674_v43, 2 }
 0x123   : > { %v1510_v38 = vpop.permute.xlu1 %1509  ;;  %v1505_v33 = vpop.permute.xlu0 %1504 }
 0x124   : > { %v4806_v51 = vadd.f32 %v1510_v38, %v1033_v19  ;;  %v4808_v26 = vadd.f32 %v1505_v33, %v1030_v7 }
 0x125   : > { %v4813_v45 = vpop.f32.mrf.mxu2 }
 0x126   : > { %6487 = vst [vmem:[#allocation56_spill] sm:$0xff] %v4806_v51  ;;  %v2550_v63 = vmul.f32 %v4806_v51, %v4662_v18  ;;  %v2554_v19 = vmul.f32 %v4806_v51, %v4574_v30  ;;  %v2556_v7 = vmul.f32 %v4806_v51, %v4624_v23  ;;  %v2549_v5 = vmul.f32 %v4808_v26, %v4604_v6  ;;  %v1039_v59 = vpop.f32.mrf.mxu3 }
 0x127   : > { %6488 = vst [vmem:[#allocation57_spill] sm:$0xff] %v4808_v26  ;;  %v2553_v38 = vmul.f32 %v4808_v26, %v4576_v34  ;;  %v2555_v33 = vmul.f32 %v4808_v26, %v4529_v46  ;;  %v4835_v3 = vmul.f32 %v4784_v39, %v4808_v26  ;;  %v4840_v28 = vpop.f32.mrf.mxu0 }
 0x128   : > { %6489 = vst [vmem:[#allocation58_spill] sm:$0xff] %v4813_v45  ;;  %v4838_v45 = vadd.f32 %v4704_v58, %v1039_v59  ;;  %v4845_v20 = vadd.f32 %v2550_v63, %v2549_v5  ;;  %3038 = vperm.xlu2 %3605, %v2960_v47   ;;  %v2132_v5 = vrot.slane %v2131_v29, 2 }
 0x129   : > { %6490 = vst [vmem:[#allocation59_spill] sm:$0xff] %v4835_v3  ;;  %v4847_v61 = vadd.f32 %v2554_v19, %v2553_v38  ;;  %v4849_v1 = vadd.f32 %v2556_v7, %v2555_v33  ;;  %3018 = vperm.xlu1 %3604, %v2956_v42   ;;  %3033 = vperm.xlu0 %3603, %v2959_v32   ;;  %v1425_v7 = vpop.permute.xlu2 %1424  ;;  %v3270_v42 = vld [vmem:[%s6353_s6 + $0x10] sm:$0xff]  ;;  %v3269_v32 = vld [vmem:[%s6353_s6 + $0x8] sm:$0xff] }
 0x12a   : > { %6491 = vst [vmem:[#allocation60_spill] sm:$0xff] %v4838_v45  ;;  %v1655_v22 = vmul.f32 %v4838_v45, %v4572_v25  ;;  %v1962_v58 = vmul.f32 %v4838_v45, %v4611_v14  ;;  %v2112_v59 = vmul.f32 %v4838_v45, %v4730_v36  ;;  %v4859_v44 = vmul.f32 %v4838_v45, %v4806_v51 }
 0x12b   : > { %6492 = vst [vmem:[#allocation61_spill] sm:$0xff] %v4840_v28 }
 0x12c   : > { %6493 = vst [vmem:[#allocation62_spill] sm:$0xff] %v4845_v20  ;;  %v1700_v47 = vadd.f32 %v1655_v22, %v1654_v17  ;;  %v4861_v63 = vadd.f32 %v1962_v58, %v1961_v41  ;;  %v2157_v19 = vadd.f32 %v2112_v59, %v2111_v8  ;;  %v1676_v22 = vadd.f32 %v1675_v21, %v1674_v43  ;;  %v3268_v8 = vld [vmem:[%s6353_s6] sm:$0xff] }
 0x12d   : > { %6494 = vst [vmem:[#allocation63_spill] sm:$0xff] %v4847_v61  ;;  %v966_v33 = vpop.f32.mrf.mxu2 }
 0x12e   : > { %6495 = vst [vmem:[#allocation64_spill] sm:$0xff] %v4849_v1  ;;  %v1701_v38 = vrot.slane %v1700_v47, 4  ;;  %v2158_v28 = vrot.slane %v2157_v19, 4  ;;  %v4866_v55 = vadd.f32 %v1425_v7, %v966_v33  ;;  %v1042_v0 = vpop.f32.mrf.mxu3 }
 0x12f   : > { %6496 = vst [vmem:[#allocation65_spill] sm:$0xff] %v4859_v44  ;;  %v4871_v17 = vpop.f32.mrf.mxu0  ;;  %v2133_v0 = vadd.f32 %v2132_v5, %v2131_v29 }
 0x130   : > { %v1702_v41 = vadd.f32 %v1701_v38, %v1700_v47  ;;  %6497 = vst [vmem:[#allocation66_spill] sm:$0xff] %v4871_v17  ;;  %v2159_v58 = vadd.f32 %v2158_v28, %v2157_v19  ;;  %v2249_v59 = vmul.f32 %v4866_v55, %v4604_v6  ;;  %v2255_v7 = vmul.f32 %v4866_v55, %v4529_v46 }
 0x131   : > { %3284 = vperm.xlu2 %3605, %v3270_v42   ;;  %v2261_v43 = vmul.f32 %v4784_v39, %v4866_v55  ;;  %3279 = vperm.xlu1 %3604, %v3269_v32   ;;  %v1677_v47 = vrot.slane %v1676_v22, 1  ;;  %v2134_v19 = vrot.slane %v2133_v0, 1  ;;  %v2253_v5 = vmul.f32 %v4866_v55, %v4576_v34 }
 0x132   : > { %v1703_v33 = vrot.slane %v1702_v41, 2  ;;  %3274 = vperm.xlu0 %3603, %v3268_v8   ;;  %v2160_v21 = vrot.slane %v2159_v58, 2 }
 0x133   : > { %v4885_v29 = vadd.f32 %v1677_v47, %v1676_v22 }
 0x134   : > { %v1704_v38 = vadd.f32 %v1703_v33, %v1702_v41  ;;  %v2161_v17 = vadd.f32 %v2160_v21, %v2159_v58  ;;  %v3271_v41 = vld [vmem:[%s6353_s6 + $0x18] sm:$0xff]  ;;  %v4906_v33 = vadd.f32 %v2134_v19, %v2133_v0 }
 0x135   : > { %v969_v2 = vpop.f32.mrf.mxu2  ;;  %6498 = vst [vmem:[#allocation67_spill] sm:$0xff] %v4885_v29 }
 0x136   : > { %v1705_v28 = vrot.slane %v1704_v38, 1  ;;  %v4883_v48 = vadd.f32 %v4774_v27, %v969_v2  ;;  %v1044_v56 = vpop.f32.mrf.mxu3  ;;  %v2162_v42 = vrot.slane %v2161_v17, 1  ;;  %6501 = vst [vmem:[#allocation70_spill] sm:$0xff] %v4906_v33 }
 0x137   : > { %v4889_v32 = vpop.f32.mrf.mxu0 }
 0x138   : > { %6499 = vst [vmem:[#allocation68_spill] sm:$0xff] %v4889_v32  ;;  %v4894_v8 = vadd.f32 %v1705_v28, %v1704_v38  ;;  %v2250_v2 = vmul.f32 %v4883_v48, %v4662_v18  ;;  %v2254_v56 = vmul.f32 %v4883_v48, %v4574_v30  ;;  %v2256_v27 = vmul.f32 %v4883_v48, %v4624_v23 }
 0x139   : > { %v2262_v22 = vmul.f32 %v4838_v45, %v4883_v48  ;;  %3312 = vperm.xlu1 %3604, %v3309_v35   ;;  %v4908_v21 = vadd.f32 %v2162_v42, %v2161_v17  ;;  %v1659_v35 = vrot.slane %v4675_v11, 4 }
 0x13a   : > { %6500 = vst [vmem:[#allocation69_spill] sm:$0xff] %v4894_v8  ;;  %v4910_v47 = vadd.f32 %v2250_v2, %v2249_v59  ;;  %v4912_v38 = vadd.f32 %v2254_v56, %v2253_v5  ;;  %v4914_v28 = vadd.f32 %v2256_v27, %v2255_v7  ;;  %3289 = vperm.xlu0 %3603, %v3271_v41   ;;  %v1966_v59 = vrot.slane %v4677_v24, 4 }
 0x13b   : > { %6502 = vst [vmem:[#allocation71_spill] sm:$0xff] %v4908_v21  ;;  %v4916_v32 = vadd.f32 %v2262_v22, %v2261_v43  ;;  %v1660_v43 = vadd.f32 %v1659_v35, %v4675_v11  ;;  %v2116_v8 = vrot.slane %v4766_v4, 4 }
 0x13d   : > { %v972_v44 = vpop.f32.mrf.mxu2  ;;  %v1661_v41 = vrot.slane %v1660_v43, 2 }
 0x13e   : > { %v4922_v0 = vadd.f32 %v4621_v12, %v972_v44  ;;  %v1046_v17 = vpop.f32.mrf.mxu3  ;;  %v1967_v44 = vadd.f32 %v1966_v59, %v4677_v24 }
 0x13f   : > { %v4925_v19 = vpop.f32.mrf.mxu0 }
 0x140   : > { %6503 = vst [vmem:[#allocation72_spill] sm:$0xff] %v4925_v19  ;;  %v1650_v7 = vmul.f32 %v4922_v0, %v4532_v49  ;;  %v2107_v42 = vmul.f32 %v4922_v0, %v4733_v9  ;;  %v2257_v5 = vmul.f32 %v4922_v0, %v4866_v55  ;;  %v2557_v12 = vmul.f32 %v4808_v26, %v4922_v0 }
 0x141   : > { %v1968_v22 = vrot.slane %v1967_v44, 2  ;;  %v1957_v11 = vmul.f32 %v4922_v0, %v4614_v15 }
 0x143   : > { %v1969_v21 = vadd.f32 %v1968_v22, %v1967_v44  ;;  %v2117_v44 = vadd.f32 %v2116_v8, %v4766_v4 }
 0x145   : > { %v975_v2 = vpop.f32.mrf.mxu2 }
 0x146   : > { %v4938_v56 = vadd.f32 %v4711_v57, %v975_v2  ;;  %v1048_v27 = vpop.f32.mrf.mxu3  ;;  %v1662_v57 = vadd.f32 %v1661_v41, %v1660_v43 }
 0x147   : > { %v858_v35 = vpop.f32.mrf.mxu0 }
 0x148   : > { %v1651_v17 = vmul.f32 %v4938_v56, %v4572_v25  ;;  %v1958_v1 = vmul.f32 %v4938_v56, %v4611_v14  ;;  %v2108_v24 = vmul.f32 %v4938_v56, %v4730_v36  ;;  %v2258_v59 = vmul.f32 %v4938_v56, %v4883_v48 }
 0x149   : > { %v2558_v2 = vmul.f32 %v4806_v51, %v4938_v56  ;;  %v1663_v31 = vrot.slane %v1662_v57, 1  ;;  %v4958_v43 = vadd.f32 %v4415_v40, %v858_v35 }
 0x14a   : > { %v1686_v27 = vadd.f32 %v1651_v17, %v1650_v7  ;;  %v1993_v58 = vadd.f32 %v1958_v1, %v1957_v11  ;;  %v2143_v19 = vadd.f32 %v2108_v24, %v2107_v42  ;;  %v4952_v3 = vadd.f32 %v2258_v59, %v2257_v5 }
 0x14b   : > { %v4954_v16 = vadd.f32 %v2558_v2, %v2557_v12  ;;  %v1970_v7 = vrot.slane %v1969_v21, 1  ;;  %v4962_v12 = vadd.f32 %v1663_v31, %v1662_v57  ;;  %v1799_v40 = vmul.f32 %v4958_v43, %v4604_v6 }
 0x14c   : > { %v1687_v33 = vrot.slane %v1686_v27, 4  ;;  %v1994_v61 = vrot.slane %v1993_v58, 4  ;;  %v2144_v22 = vrot.slane %v2143_v19, 4  ;;  %v1811_v8 = vmul.f32 %v4784_v39, %v4958_v43 }
 0x14d   : > { %6504 = vst [vmem:[#allocation73_spill] sm:$0xff] %v4954_v16  ;;  %v978_v29 = vpop.f32.mrf.mxu2  ;;  %v2118_v16 = vrot.slane %v2117_v44, 2 }
 0x14e   : > { %v1688_v20 = vadd.f32 %v1687_v33, %v1686_v27  ;;  %v1995_v62 = vadd.f32 %v1994_v61, %v1993_v58  ;;  %v4960_v41 = vpop.f32.mrf.mxu3  ;;  %6506 = vst [vmem:[#allocation75_spill] sm:$0xff] %v4962_v12  ;;  %v1805_v61 = vmul.f32 %v4529_v46, %v4958_v43  ;;  %v1807_v58 = vmul.f32 %v4922_v0, %v4958_v43 }
 0x14f   : > { %6505 = vst [vmem:[#allocation74_spill] sm:$0xff] %v4960_v41  ;;  %v861_v1 = vpop.f32.mrf.mxu0  ;;  %v2145_v17 = vadd.f32 %v2144_v22, %v2143_v19  ;;  %v4986_v27 = vadd.f32 %v1970_v7, %v1969_v21  ;;  %v2280_v19 = vrot.slane %v4912_v38, 4  ;;  %v2308_v22 = vrot.slane %v4916_v32, 4 }
 0x150   : > { %v1689_v42 = vrot.slane %v1688_v20, 2  ;;  %v1996_v5 = vrot.slane %v1995_v62, 2  ;;  %v4966_v11 = vadd.f32 %v4331_v10, %v861_v1 }
 0x151   : > { %6507 = vst [vmem:[#allocation76_spill] sm:$0xff] %v4986_v27 }
 0x152   : > { %v1690_v29 = vadd.f32 %v1689_v42, %v1688_v20  ;;  %v1997_v33 = vadd.f32 %v1996_v5, %v1995_v62  ;;  %v1800_v31 = vmul.f32 %v4966_v11, %v4662_v18  ;;  %v1806_v4 = vmul.f32 %v4624_v23, %v4966_v11 }
 0x153   : > { %v1808_v10 = vmul.f32 %v4938_v56, %v4966_v11  ;;  %v1812_v35 = vmul.f32 %v4838_v45, %v4966_v11 }
 0x154   : > { %v1691_v20 = vrot.slane %v1690_v29, 1  ;;  %v1998_v62 = vrot.slane %v1997_v33, 1  ;;  %v1815_v24 = vadd.f32 %v1800_v31, %v1799_v40  ;;  %v4984_v59 = vadd.f32 %v1806_v4, %v1805_v61 }
 0x155   : > { %v1843_v57 = vadd.f32 %v1808_v10, %v1807_v58  ;;  %v980_v2 = vpop.f32.mrf.mxu2  ;;  %v4990_v42 = vadd.f32 %v1812_v35, %v1811_v8  ;;  %v2119_v58 = vadd.f32 %v2118_v16, %v2117_v44  ;;  %v2281_v10 = vadd.f32 %v2280_v19, %v4912_v38 }
 0x156   : > { %v4988_v1 = vadd.f32 %v1691_v20, %v1690_v29  ;;  %v4992_v5 = vpop.f32.mrf.mxu3  ;;  %v4994_v41 = vadd.f32 %v1998_v62, %v1997_v33  ;;  %v1816_v39 = vrot.slane %v1815_v24, 4  ;;  %v2146_v29 = vrot.slane %v2145_v17, 2 }
 0x157   : > { %6509 = vst [vmem:[#allocation78_spill] sm:$0xff] %v4992_v5  ;;  %v1844_v23 = vrot.slane %v1843_v57, 4  ;;  %v864_v45 = vpop.f32.mrf.mxu0  ;;  %v2266_v33 = vrot.slane %v4910_v47, 4  ;;  %v2294_v20 = vrot.slane %v4952_v3, 4  ;;  %v2309_v62 = vadd.f32 %v2308_v22, %v4916_v32 }
 0x158   : > { %6508 = vst [vmem:[#allocation77_spill] sm:$0xff] %v4988_v1  ;;  %v1817_v40 = vadd.f32 %v1816_v39, %v1815_v24  ;;  %v2147_v8 = vadd.f32 %v2146_v29, %v2145_v17  ;;  %v5007_v21 = vadd.f32 %v4448_v54, %v864_v45  ;;  %v2282_v38 = vrot.slane %v2281_v10, 2 }
 0x159   : > { %6510 = vst [vmem:[#allocation79_spill] sm:$0xff] %v4994_v41  ;;  %v1845_v61 = vadd.f32 %v1844_v23, %v1843_v57  ;;  %v2120_v23 = vrot.slane %v2119_v58, 1  ;;  %v2267_v16 = vadd.f32 %v2266_v33, %v4910_v47  ;;  %v2295_v19 = vadd.f32 %v2294_v20, %v4952_v3 }
 0x15a   : > { %v1818_v31 = vrot.slane %v1817_v40, 2  ;;  %6511 = vst [vmem:[#allocation80_spill] sm:$0xff] %v5007_v21  ;;  %v2310_v17 = vrot.slane %v2309_v62, 2  ;;  %v1644_v45 = vmul.f32 %v5007_v21, %v4532_v49  ;;  %v2101_v47 = vmul.f32 %v4733_v9, %v5007_v21 }
 0x15b   : > { %v1846_v4 = vrot.slane %v1845_v61, 2  ;;  %v2251_v29 = vmul.f32 %v4866_v55, %v5007_v21  ;;  %v2296_v5 = vrot.slane %v2295_v19, 2  ;;  %v2283_v41 = vadd.f32 %v2282_v38, %v2281_v10 }
 0x15c   : > { %v1819_v35 = vadd.f32 %v1818_v31, %v1817_v40  ;;  %v2311_v27 = vadd.f32 %v2310_v17, %v2309_v62 }
 0x15d   : > { %v1847_v2 = vadd.f32 %v1846_v4, %v1845_v61  ;;  %v982_v7 = vpop.f32.mrf.mxu2  ;;  %v2551_v61 = vmul.f32 %v4808_v26, %v5007_v21  ;;  %v2268_v4 = vrot.slane %v2267_v16, 2 }
 0x15e   : > { %v5009_v39 = vpop.f32.mrf.mxu3  ;;  %v1820_v44 = vrot.slane %v1819_v35, 1  ;;  %v2148_v7 = vrot.slane %v2147_v8, 1 }
 0x15f   : > { %6512 = vst [vmem:[#allocation81_spill] sm:$0xff] %v5009_v39  ;;  %v1848_v24 = vrot.slane %v1847_v2, 1  ;;  %v867_v57 = vpop.f32.mrf.mxu0  ;;  %v5050_v39 = vadd.f32 %v2120_v23, %v2119_v58 }
 0x160   : > { %v5014_v32 = vadd.f32 %v4446_v53, %v867_v57  ;;  %v5016_v22 = vadd.f32 %v1820_v44, %v1819_v35  ;;  %v5046_v57 = vadd.f32 %v2148_v7, %v2147_v8  ;;  %v1954_v8 = vmul.f32 %v4574_v30, %v4611_v14 }
 0x161   : > { %v5018_v54 = vadd.f32 %v1848_v24, %v1847_v2  ;;  %6519 = vst [vmem:[#allocation88_spill] sm:$0xff] %v5050_v39  ;;  %v1953_v7 = vmul.f32 %v4576_v34, %v4614_v15 }
 0x162   : > { %6513 = vst [vmem:[#allocation82_spill] sm:$0xff] %v5014_v32  ;;  %v1645_v3 = vmul.f32 %v5014_v32, %v4572_v25  ;;  %v2102_v53 = vmul.f32 %v4730_v36, %v5014_v32  ;;  %v2252_v33 = vmul.f32 %v4883_v48, %v5014_v32  ;;  %v2552_v31 = vmul.f32 %v4806_v51, %v5014_v32 }
 0x163   : > { %6514 = vst [vmem:[#allocation83_spill] sm:$0xff] %v5016_v22 }
 0x164   : > { %6515 = vst [vmem:[#allocation84_spill] sm:$0xff] %v5018_v54  ;;  %v5038_v20 = vadd.f32 %v1645_v3, %v1644_v45  ;;  %v5040_v35 = vadd.f32 %v2102_v53, %v2101_v47  ;;  %v5042_v2 = vadd.f32 %v2252_v33, %v2251_v29  ;;  %v5044_v44 = vadd.f32 %v2552_v31, %v2551_v61  ;;  %v5054_v47 = vpop.permute.xlu2 %1469 }
 0x165   : > { %v984_v24 = vpop.f32.mrf.mxu2  ;;  %6517 = vst [vmem:[#allocation86_spill] sm:$0xff] %v5046_v57  ;;  %v2269_v54 = vadd.f32 %v2268_v4, %v2267_v16  ;;  %v2284_v29 = vrot.slane %v2283_v41, 1  ;;  %v2297_v3 = vadd.f32 %v2296_v5, %v2295_v19  ;;  %v2312_v53 = vrot.slane %v2311_v27, 1 }
 0x166   : > { %6516 = vst [vmem:[#allocation85_spill] sm:$0xff] %v5044_v44  ;;  %v5048_v40 = vpop.f32.mrf.mxu3  ;;  %v1979_v61 = vadd.f32 %v1954_v8, %v1953_v7  ;;  %v1804_v33 = vmul.f32 %v4574_v30, %v4966_v11 }
 0x167   : > { %6518 = vst [vmem:[#allocation87_spill] sm:$0xff] %v5048_v40  ;;  %v2270_v58 = vrot.slane %v2269_v54, 1  ;;  %v2298_v10 = vrot.slane %v2297_v3, 1  ;;  %v5062_v16 = vadd.f32 %v2284_v29, %v2283_v41  ;;  %v5066_v17 = vadd.f32 %v2312_v53, %v2311_v27  ;;  %v1550_v53 = vpop.permute.xlu0 %1549 }
 0x168   : > { %v1980_v4 = vrot.slane %v1979_v61, 4  ;;  %v1680_v41 = vrot.slane %v4652_v50, 4  ;;  %v1987_v29 = vrot.slane %v4654_v52, 4  ;;  %v1803_v27 = vmul.f32 %v4576_v34, %v4958_v43 }
 0x169   : > { %6521 = vst [vmem:[#allocation90_spill] sm:$0xff] %v5062_v16  ;;  %v5064_v38 = vadd.f32 %v2298_v10, %v2297_v3  ;;  %v5068_v5 = vadd.f32 %v2270_v58, %v2269_v54 }
 0x16a   : > { %6523 = vst [vmem:[#allocation92_spill] sm:$0xff] %v5066_v17  ;;  %v1829_v7 = vadd.f32 %v1804_v33, %v1803_v27  ;;  %v1981_v10 = vadd.f32 %v1980_v4, %v1979_v61  ;;  %v1681_v19 = vadd.f32 %v1680_v41, %v4652_v50  ;;  %v1988_v45 = vadd.f32 %v1987_v29, %v4654_v52 }
 0x16b   : > { %6522 = vst [vmem:[#allocation91_spill] sm:$0xff] %v5064_v38  ;;  %v1858_v27 = vrot.slane %v4990_v42, 4  ;;  %v2137_v29 = vrot.slane %v4768_v37, 4 }
 0x16c   : > { %6524 = vst [vmem:[#allocation93_spill] sm:$0xff] %v5068_v5  ;;  %v1545_v24 = vpop.permute.xlu2 %1544  ;;  %v1830_v33 = vrot.slane %v1829_v7, 4  ;;  %v1982_v52 = vrot.slane %v1981_v10, 2  ;;  %v1682_v4 = vrot.slane %v1681_v19, 2  ;;  %v1989_v41 = vrot.slane %v1988_v45, 2 }
 0x16d   : > { %v5060_v23 = vpop.f32.mrf.mxu2 }
 0x16e   : > { %6520 = vst [vmem:[#allocation89_spill] sm:$0xff] %v5060_v23  ;;  %v1062_v62 = vpop.f32.mrf.mxu3  ;;  %v1831_v40 = vadd.f32 %v1830_v33, %v1829_v7  ;;  %v5107_v44 = vadd.f32 %v1982_v52, %v1981_v10 }
 0x16f   : > { %v5080_v54 = vadd.f32 %v1545_v24, %v1062_v62 }
 0x171   : > { %6525 = vst [vmem:[#allocation94_spill] sm:$0xff] %v5080_v54  ;;  %v2699_v31 = vmul.f32 %v5080_v54, %v4604_v6  ;;  %v2707_v62 = vmul.f32 %v5080_v54, %v4922_v0  ;;  %v1837_v54 = vrot.slane %v4984_v59, 4 }
 0x175   : > { %v5082_v3 = vpop.f32.mrf.mxu2 }
 0x176   : > { %6526 = vst [vmem:[#allocation95_spill] sm:$0xff] %v5082_v3  ;;  %v1065_v8 = vpop.f32.mrf.mxu3 }
 0x177   : > { %v5084_v58 = vadd.f32 %v1550_v53, %v1065_v8  ;;  %v2008_v8 = vrot.slane %v4861_v63, 4 }
 0x179   : > { %6527 = vst [vmem:[#allocation96_spill] sm:$0xff] %v5084_v58  ;;  %v2700_v23 = vmul.f32 %v5084_v58, %v4662_v18  ;;  %v2708_v24 = vmul.f32 %v5084_v58, %v4938_v56  ;;  %v1859_v58 = vadd.f32 %v1858_v27, %v4990_v42 }
 0x17b   : > { %v5097_v61 = vadd.f32 %v2700_v23, %v2699_v31  ;;  %v5099_v50 = vadd.f32 %v2708_v24, %v2707_v62  ;;  %v1683_v23 = vadd.f32 %v1682_v4, %v1681_v19  ;;  %v1990_v31 = vadd.f32 %v1989_v41, %v1988_v45 }
 0x17c   : > { %v2138_v62 = vadd.f32 %v2137_v29, %v4768_v37  ;;  %v2009_v24 = vadd.f32 %v2008_v8, %v4861_v63  ;;  %v2287_v45 = vrot.slane %v4914_v28, 4  ;;  %v1801_v37 = vmul.f32 %v5007_v21, %v4958_v43 }
 0x17d   : > { %6528 = vst [vmem:[#allocation97_spill] sm:$0xff] %v5097_v61  ;;  %v5102_v53 = vpop.f32.mrf.mxu2  ;;  %v1838_v61 = vadd.f32 %v1837_v54, %v4984_v59  ;;  %v1684_v33 = vrot.slane %v1683_v23, 1  ;;  %v1991_v10 = vrot.slane %v1990_v31, 1  ;;  %v1951_v63 = vmul.f32 %v4614_v15, %v5007_v21 }
 0x17e   : > { %6529 = vst [vmem:[#allocation98_spill] sm:$0xff] %v5099_v50  ;;  %v1068_v3 = vpop.f32.mrf.mxu3  ;;  %v1832_v50 = vrot.slane %v1831_v40, 2  ;;  %v2139_v5 = vrot.slane %v2138_v62, 2  ;;  %v2010_v19 = vrot.slane %v2009_v24, 2  ;;  %v1952_v8 = vmul.f32 %v4611_v14, %v5014_v32 }
 0x17f   : > { %6530 = vst [vmem:[#allocation99_spill] sm:$0xff] %v5102_v53  ;;  %v1860_v53 = vrot.slane %v1859_v58, 2  ;;  %v5113_v38 = vadd.f32 %v4702_v60, %v1068_v3  ;;  %v1839_v60 = vrot.slane %v1838_v61, 2 }
 0x180   : > { %v1833_v54 = vadd.f32 %v1832_v50, %v1831_v40 }
 0x181   : > { %6531 = vst [vmem:[#allocation100_spill] sm:$0xff] %v5113_v38  ;;  %v1861_v3 = vadd.f32 %v1860_v53, %v1859_v58  ;;  %v1656_v52 = vmul.f32 %v5113_v38, %v4532_v49  ;;  %v1813_v4 = vmul.f32 %v5113_v38, %v4958_v43  ;;  %v1963_v41 = vmul.f32 %v5113_v38, %v4614_v15 }
 0x182   : > { %v2113_v29 = vmul.f32 %v5113_v38, %v4733_v9  ;;  %v1802_v53 = vmul.f32 %v5014_v32, %v4966_v11  ;;  %v1834_v1 = vrot.slane %v1833_v54, 1  ;;  %v1840_v12 = vadd.f32 %v1839_v60, %v1838_v61 }
 0x183   : > { %v1862_v16 = vrot.slane %v1861_v3, 1  ;;  %v2288_v61 = vadd.f32 %v2287_v45, %v4914_v28  ;;  %v2011_v60 = vadd.f32 %v2010_v19, %v2009_v24 }
 0x184   : > { %v1822_v26 = vadd.f32 %v1802_v53, %v1801_v37 }
 0x185   : > { %v5116_v42 = vpop.f32.mrf.mxu2  ;;  %v5161_v37 = vadd.f32 %v1862_v16, %v1861_v3 }
 0x186   : > { %6532 = vst [vmem:[#allocation101_spill] sm:$0xff] %v5116_v42  ;;  %v1071_v59 = vpop.f32.mrf.mxu3 }
 0x187   : > { %v5124_v27 = vadd.f32 %v4802_v13, %v1071_v59  ;;  %v2263_v59 = vmul.f32 %v5113_v38, %v4866_v55  ;;  %v5152_v38 = vadd.f32 %v1684_v33, %v1683_v23  ;;  %v1666_v23 = vrot.slane %v5038_v20, 4 }
 0x189   : > { %6533 = vst [vmem:[#allocation102_spill] sm:$0xff] %v5124_v27  ;;  %v1657_v40 = vmul.f32 %v5124_v27, %v4572_v25  ;;  %v1814_v58 = vmul.f32 %v5124_v27, %v4966_v11  ;;  %v1964_v13 = vmul.f32 %v5124_v27, %v4611_v14  ;;  %v2114_v50 = vmul.f32 %v5124_v27, %v4730_v36 }
 0x18a   : > { %v2264_v7 = vmul.f32 %v5124_v27, %v4883_v48  ;;  %v1972_v36 = vadd.f32 %v1952_v8, %v1951_v63  ;;  %v5154_v14 = vadd.f32 %v1991_v10, %v1990_v31  ;;  %v1823_v31 = vrot.slane %v1822_v26, 4 }
 0x18b   : > { %v1707_v42 = vadd.f32 %v1657_v40, %v1656_v52  ;;  %v1864_v57 = vadd.f32 %v1814_v58, %v1813_v4  ;;  %v2014_v39 = vadd.f32 %v1964_v13, %v1963_v41  ;;  %v2164_v22 = vadd.f32 %v2114_v50, %v2113_v29 }
 0x18c   : > { %v5150_v17 = vadd.f32 %v2264_v7, %v2263_v59  ;;  %v1841_v7 = vrot.slane %v1840_v12, 1  ;;  %v5157_v40 = vadd.f32 %v2139_v5, %v2138_v62  ;;  %v5159_v58 = vadd.f32 %v1834_v1, %v1833_v54 }
 0x18d   : > { %v1708_v34 = vrot.slane %v1707_v42, 4  ;;  %v1865_v21 = vrot.slane %v1864_v57, 4  ;;  %v2015_v30 = vrot.slane %v2014_v39, 4  ;;  %v2165_v51 = vrot.slane %v2164_v22, 4  ;;  %v998_v32 = vpop.f32.mrf.mxu2 }
 0x18e   : > { %v2012_v1 = vrot.slane %v2011_v60, 1  ;;  %v2289_v5 = vrot.slane %v2288_v61, 2  ;;  %v1667_v19 = vadd.f32 %v1666_v23, %v5038_v20  ;;  %v1824_v45 = vadd.f32 %v1823_v31, %v1822_v26  ;;  %v6535_v20 = vld [vmem:[#allocation39_spill] sm:$0xff] }
 0x18f   : > { %v1709_v52 = vadd.f32 %v1708_v34, %v1707_v42  ;;  %v1866_v4 = vadd.f32 %v1865_v21, %v1864_v57  ;;  %v2016_v41 = vadd.f32 %v2015_v30, %v2014_v39  ;;  %v2166_v29 = vadd.f32 %v2165_v51, %v2164_v22  ;;  %v6534_v30 = vld [vmem:[#allocation52_spill] sm:$0xff] }
 0x190   : > { %v1973_v21 = vrot.slane %v1972_v36, 4  ;;  %v5165_v51 = vadd.f32 %v6534_v30, %v998_v32  ;;  %v2123_v22 = vrot.slane %v5040_v35, 4  ;;  %v5168_v57 = vadd.f32 %v1841_v7, %v1840_v12 }
 0x191   : > { %v1710_v13 = vrot.slane %v1709_v52, 2  ;;  %v1867_v50 = vrot.slane %v1866_v4, 2  ;;  %v2017_v33 = vrot.slane %v2016_v41, 2  ;;  %v2167_v34 = vrot.slane %v2166_v29, 2 }
 0x192   : > { %v1873_v42 = vmax.f32 %v5159_v58, %v5161_v37  ;;  %v1974_v54 = vadd.f32 %v1973_v21, %v1972_v36  ;;  %v2399_v12 = vmul.f32 %v5165_v51, %v4604_v6  ;;  %v2405_v8 = vmul.f32 %v5165_v51, %v4529_v46  ;;  %v6536_v36 = vld [vmem:[#allocation54_spill] sm:$0xff] }
 0x193   : > { %v1711_v28 = vadd.f32 %v1710_v13, %v1709_v52  ;;  %v1868_v39 = vadd.f32 %v1867_v50, %v1866_v4  ;;  %v2018_v10 = vadd.f32 %v2017_v33, %v2016_v41  ;;  %v2168_v63 = vadd.f32 %v2167_v34, %v2166_v29  ;;  %v6537_v4 = vld [vmem:[#allocation60_spill] sm:$0xff]  ;;  %v6540_v33 = vld [vmem:[#allocation62_spill] sm:$0xff] }
 0x194   : > { %v2407_v59 = vmul.f32 %v5165_v51, %v4922_v0  ;;  %v2411_v52 = vmul.f32 %v6536_v36, %v5165_v51  ;;  %v2566_v34 = vrot.slane %v6540_v33, 4  ;;  %v5210_v21 = vadd.f32 %v2012_v1, %v2011_v60 }
 0x195   : > { %v1001_v62 = vpop.f32.mrf.mxu2  ;;  %v1712_v16 = vrot.slane %v1711_v28, 1  ;;  %v1869_v24 = vrot.slane %v1868_v39, 1  ;;  %v2019_v29 = vrot.slane %v2018_v10, 1  ;;  %v2169_v0 = vrot.slane %v2168_v63, 1 }
 0x196   : > { %v5174_v32 = vadd.f32 %v5054_v47, %v1001_v62  ;;  %v2141_v30 = vrot.slane %v5157_v40, 1  ;;  %v2124_v60 = vadd.f32 %v2123_v22, %v5040_v35 }
 0x197   : > { %v5178_v3 = vadd.f32 %v1712_v16, %v1711_v28  ;;  %v5180_v53 = vadd.f32 %v1869_v24, %v1868_v39  ;;  %v2290_v28 = vadd.f32 %v2289_v5, %v2288_v61  ;;  %v2273_v39 = vrot.slane %v5042_v2, 4  ;;  %v6541_v16 = vld [vmem:[#allocation67_spill] sm:$0xff]  ;;  %v6542_v24 = vld [vmem:[#allocation69_spill] sm:$0xff] }
 0x198   : > { %v2400_v26 = vmul.f32 %v5174_v32, %v4662_v18  ;;  %v2406_v47 = vmul.f32 %v5174_v32, %v6535_v20  ;;  %v2408_v6 = vmul.f32 %v5174_v32, %v4938_v56  ;;  %v2412_v41 = vmul.f32 %v6537_v4, %v5174_v32 }
 0x199   : > { %v2315_v18 = vrot.slane %v5150_v17, 4  ;;  %v1717_v31 = vmax.f32 %v5152_v38, %v5178_v3  ;;  %v1874_v56 = vmax.f32 %v5168_v57, %v5180_v53  ;;  %v6545_v61 = vrot.slane %v5107_v44, 1 }
 0x19a   : > { %v5196_v7 = vadd.f32 %v2400_v26, %v2399_v12  ;;  %v5198_v13 = vadd.f32 %v2406_v47, %v2405_v8  ;;  %v5201_v50 = vadd.f32 %v2408_v6, %v2407_v59  ;;  %v5203_v23 = vadd.f32 %v2412_v41, %v2411_v52 }
 0x19b   : > { %v6543_v12 = vmax.f32 %v6541_v16, %v6542_v24  ;;  %v5219_v59 = vmax.f32 %v1873_v42, %v1874_v56  ;;  %v5221_v26 = vadd.f32 %v2019_v29, %v2018_v10  ;;  %v1668_v47 = vrot.slane %v1667_v19, 2 }
 0x19c   : > { %6538 = vst [vmem:[#allocation52_spill] sm:$0xff] %v5198_v13  ;;  %v1825_v52 = vrot.slane %v1824_v45, 2  ;;  %v2316_v1 = vadd.f32 %v2315_v18, %v5150_v17  ;;  %v1975_v6 = vrot.slane %v1974_v54, 2  ;;  %v5228_v5 = vadd.f32 %v6545_v61, %v5107_v44  ;;  %v6548_v61 = vld [vmem:[#allocation43_spill] sm:$0xff] }
 0x19d   : > { %6539 = vst [vmem:[#allocation103_spill] sm:$0xff] %v5203_v23  ;;  %v1004_v62 = vpop.f32.mrf.mxu2  ;;  %v5217_v8 = vmax.f32 %v6543_v12, %v1717_v31  ;;  %v2024_v41 = vmax.f32 %v5154_v14, %v5221_v26  ;;  %v5232_v31 = vadd.f32 %v2169_v0, %v2168_v63  ;;  %v5235_v42 = vadd.f32 %v2141_v30, %v5157_v40 }
 0x19e   : > { %6544 = vst [vmem:[#allocation62_spill] sm:$0xff] %v5221_v26  ;;  %v5238_v10 = vadd.f32 %v2566_v34, %v6540_v33  ;;  %v2274_v35 = vadd.f32 %v2273_v39, %v5042_v2  ;;  %v2023_v17 = vmax.f32 %v5228_v5, %v5210_v21  ;;  %v2291_v22 = vrot.slane %v2290_v28, 1  ;;  %v6555_v2 = vld [vmem:[#allocation42_spill] sm:$0xff] }
 0x19f   : > { %6546 = vst [vmem:[#allocation67_spill] sm:$0xff] %v5232_v31  ;;  %v1669_v29 = vadd.f32 %v1668_v47, %v1667_v19  ;;  %v1826_v44 = vadd.f32 %v1825_v52, %v1824_v45  ;;  %v2125_v18 = vrot.slane %v2124_v60, 2  ;;  %v2317_v56 = vrot.slane %v2316_v1, 2  ;;  %v6552_v19 = vld [vmem:[#allocation70_spill] sm:$0xff]  ;;  %v6553_v45 = vld [vmem:[#allocation71_spill] sm:$0xff] }
 0x1a0   : > { %6547 = vst [vmem:[#allocation69_spill] sm:$0xff] %v5235_v42  ;;  %v1976_v12 = vadd.f32 %v1975_v6, %v1974_v54  ;;  %v5244_v63 = vadd.f32 %v6548_v61, %v1004_v62  ;;  %v5246_v0 = vmax.f32 %v2023_v17, %v2024_v41  ;;  %v2174_v40 = vmax.f32 %v5235_v42, %v5232_v31 }
 0x1a1   : > { %v2275_v36 = vrot.slane %v2274_v35, 2  ;;  %v6554_v47 = vmax.f32 %v6552_v19, %v6553_v45  ;;  %v1670_v54 = vrot.slane %v1669_v29, 1  ;;  %v2126_v62 = vadd.f32 %v2125_v18, %v2124_v60 }
 0x1a2   : > { %6549 = vst [vmem:[#allocation43_spill] sm:$0xff] %v5244_v63  ;;  %v5258_v41 = vadd.f32 %v2291_v22, %v2290_v28  ;;  %v2318_v17 = vadd.f32 %v2317_v56, %v2316_v1  ;;  %v1827_v61 = vrot.slane %v1826_v44, 1  ;;  %v1977_v4 = vrot.slane %v1976_v12, 1  ;;  %v6557_v22 = vld [vmem:[#allocation38_spill] sm:$0xff]  ;;  %v6558_v56 = vld [vmem:[#allocation49_spill] sm:$0xff] }
 0x1a3   : > { %v5256_v52 = vmax.f32 %v6554_v47, %v2174_v40  ;;  %v1652_v34 = vmul.f32 %v5244_v63, %v4532_v49  ;;  %v1809_v39 = vmul.f32 %v5244_v63, %v4958_v43  ;;  %v1959_v40 = vmul.f32 %v5244_v63, %v4614_v15  ;;  %v6559_v15 = vld [vmem:[#allocation57_spill] sm:$0xff] }
 0x1a4   : > { %v2109_v60 = vmul.f32 %v5244_v63, %v4733_v9  ;;  %v2259_v28 = vmul.f32 %v5244_v63, %v4866_v55  ;;  %v6560_v55 = vld [vmem:[#allocation56_spill] sm:$0xff]  ;;  %v2127_v23 = vrot.slane %v2126_v62, 1  ;;  %v2276_v33 = vadd.f32 %v2275_v36, %v2274_v35  ;;  %v6563_v36 = vld [vmem:[#allocation82_spill] sm:$0xff] }
 0x1a5   : > { %v1007_v6 = vpop.f32.mrf.mxu2  ;;  %v5289_v19 = vadd.f32 %v1670_v54, %v1669_v29  ;;  %v5293_v26 = vadd.f32 %v1977_v4, %v1976_v12  ;;  %v2402_v35 = vmul.f32 %v5174_v32, %v6563_v36  ;;  %v6565_v12 = vld [vmem:[#allocation80_spill] sm:$0xff] }
 0x1a6   : > { %v5263_v46 = vadd.f32 %v6555_v2, %v1007_v6  ;;  %v2559_v2 = vmul.f32 %v6559_v15, %v5244_v63  ;;  %v2319_v6 = vrot.slane %v2318_v17, 1  ;;  %v6570_v36 = vld [vmem:[#allocation100_spill] sm:$0xff] }
 0x1a8   : > { %6556 = vst [vmem:[#allocation42_spill] sm:$0xff] %v5263_v46  ;;  %v1653_v1 = vmul.f32 %v5263_v46, %v4572_v25  ;;  %v1810_v49 = vmul.f32 %v5263_v46, %v4966_v11  ;;  %v1960_v18 = vmul.f32 %v5263_v46, %v6557_v22  ;;  %v2110_v43 = vmul.f32 %v5263_v46, %v6558_v56 }
 0x1a9   : > { %v2260_v9 = vmul.f32 %v5263_v46, %v4883_v48  ;;  %v2560_v47 = vmul.f32 %v6560_v55, %v5263_v46  ;;  %v5291_v48 = vadd.f32 %v1827_v61, %v1826_v44  ;;  %v5295_v55 = vadd.f32 %v2319_v6, %v2318_v17  ;;  %v6566_v61 = vld [vmem:[#allocation35_spill] sm:$0xff]  ;;  %v6568_v6 = vld [vmem:[#allocation92_spill] sm:$0xff] }
 0x1aa   : > { %v1693_v25 = vadd.f32 %v1653_v1, %v1652_v34  ;;  %v1850_v20 = vadd.f32 %v1810_v49, %v1809_v39  ;;  %v2000_v30 = vadd.f32 %v1960_v18, %v1959_v40  ;;  %v2150_v11 = vadd.f32 %v2110_v43, %v2109_v60 }
 0x1ab   : > { %v2300_v22 = vadd.f32 %v2260_v9, %v2259_v28  ;;  %v5287_v31 = vadd.f32 %v2560_v47, %v2559_v2  ;;  %6562 = vst [vmem:[#allocation49_spill] sm:$0xff] %v5295_v55  ;;  %v6564_v28 = vld [vmem:[#allocation34_spill] sm:$0xff]  ;;  %v5301_v18 = vadd.f32 %v2127_v23, %v2126_v62  ;;  %v2401_v17 = vmul.f32 %v5165_v51, %v6565_v12 }
 0x1ac   : > { %v1694_v56 = vrot.slane %v1693_v25, 4  ;;  %v1851_v45 = vrot.slane %v1850_v20, 4  ;;  %v2001_v42 = vrot.slane %v2000_v30, 4  ;;  %v2151_v15 = vrot.slane %v2150_v11, 4  ;;  %v6567_v47 = vld [vmem:[#allocation90_spill] sm:$0xff] }
 0x1ad   : > { %6561 = vst [vmem:[#allocation38_spill] sm:$0xff] %v5287_v31  ;;  %v2404_v1 = vmul.f32 %v5174_v32, %v6564_v28  ;;  %v2301_v49 = vrot.slane %v2300_v22, 4  ;;  %v2422_v23 = vadd.f32 %v2402_v35, %v2401_v17  ;;  %v5316_v31 = vmul.f32 %v6570_v36, %v5165_v51  ;;  %v6581_v36 = vld [vmem:[#allocation76_spill] sm:$0xff] }
 0x1ae   : > { %v1695_v34 = vadd.f32 %v1694_v56, %v1693_v25  ;;  %v1852_v39 = vadd.f32 %v1851_v45, %v1850_v20  ;;  %v2002_v40 = vadd.f32 %v2001_v42, %v2000_v30  ;;  %v2152_v60 = vadd.f32 %v2151_v15, %v2150_v11 }
 0x1af   : > { %v2403_v20 = vmul.f32 %v5165_v51, %v6566_v61  ;;  %v2277_v42 = vrot.slane %v2276_v33, 1  ;;  %v2324_v30 = vmax.f32 %v5258_v41, %v5295_v55  ;;  %v2302_v9 = vadd.f32 %v2301_v49, %v2300_v22  ;;  %6571 = vst [vmem:[#allocation90_spill] sm:$0xff] %v5316_v31  ;;  %v6584_v31 = vld [vmem:[#allocation88_spill] sm:$0xff] }
 0x1b0   : > { %v1696_v29 = vrot.slane %v1695_v34, 2  ;;  %v1853_v44 = vrot.slane %v1852_v39, 2  ;;  %v2003_v54 = vrot.slane %v2002_v40, 2  ;;  %v2153_v4 = vrot.slane %v2152_v60, 2 }
 0x1b1   : > { %v2429_v62 = vadd.f32 %v2404_v1, %v2403_v20  ;;  %v6569_v25 = vmax.f32 %v6567_v47, %v6568_v6  ;;  %v6573_v22 = vrot.slane %v5238_v10, 2  ;;  %v2410_v20 = vmul.f32 %v5263_v46, %v5174_v32 }
 0x1b2   : > { %v1697_v45 = vadd.f32 %v1696_v29, %v1695_v34  ;;  %v1854_v43 = vadd.f32 %v1853_v44, %v1852_v39  ;;  %v2004_v15 = vadd.f32 %v2003_v54, %v2002_v40  ;;  %v2154_v2 = vadd.f32 %v2153_v4, %v2152_v60 }
 0x1b3   : > { %v5312_v11 = vmax.f32 %v6569_v25, %v2324_v30  ;;  %v5320_v34 = vmul.f32 %v5124_v27, %v5174_v32  ;;  %v5322_v39 = vadd.f32 %v2277_v42, %v2276_v33  ;;  %v5327_v40 = vadd.f32 %v6573_v22, %v5238_v10  ;;  %v6575_v30 = vld [vmem:[#allocation75_spill] sm:$0xff]  ;;  %v6579_v25 = vld [vmem:[#allocation84_spill] sm:$0xff] }
 0x1b4   : > { %v1698_v56 = vrot.slane %v1697_v45, 1  ;;  %v1855_v28 = vrot.slane %v1854_v43, 1  ;;  %v2005_v12 = vrot.slane %v2004_v15, 1  ;;  %v2155_v61 = vrot.slane %v2154_v2, 1  ;;  %v6582_v27 = vld [vmem:[#allocation79_spill] sm:$0xff] }
 0x1b5   : > { %6572 = vst [vmem:[#allocation104_spill] sm:$0xff] %v5320_v34  ;;  %v2416_v29 = vrot.slane %v5196_v7, 4  ;;  %v2423_v44 = vrot.slane %v2422_v23, 4  ;;  %v2430_v54 = vrot.slane %v2429_v62, 4  ;;  %v2303_v4 = vrot.slane %v2302_v9, 2 }
 0x1b6   : > { %6574 = vst [vmem:[#allocation105_spill] sm:$0xff] %v5327_v40  ;;  %v1699_v60 = vadd.f32 %v1698_v56, %v1697_v45  ;;  %v5329_v35 = vadd.f32 %v1855_v28, %v1854_v43  ;;  %v5331_v1 = vadd.f32 %v2005_v12, %v2004_v15  ;;  %v5333_v49 = vadd.f32 %v2155_v61, %v2154_v2  ;;  %v6576_v45 = vld [vmem:[#allocation77_spill] sm:$0xff]  ;;  %v6578_v2 = vld [vmem:[#allocation83_spill] sm:$0xff]  ;;  %v6585_v12 = vld [vmem:[#allocation86_spill] sm:$0xff] }
 0x1b7   : > { %v2444_v61 = vrot.slane %v5201_v50, 4  ;;  %v2304_v42 = vadd.f32 %v2303_v4, %v2302_v9  ;;  %v6577_v43 = vmax.f32 %v6575_v30, %v6576_v45  ;;  %v6580_v56 = vmax.f32 %v6578_v2, %v6579_v25 }
 0x1b8   : > { %v1715_v33 = vmax.f32 %v5289_v19, %v1699_v60  ;;  %v1872_v17 = vmax.f32 %v5291_v48, %v5329_v35  ;;  %v2022_v10 = vmax.f32 %v5293_v26, %v5331_v1  ;;  %v2172_v28 = vmax.f32 %v5301_v18, %v5333_v49 }
 0x1b9   : > { %v6583_v40 = vmax.f32 %v6581_v36, %v6582_v27  ;;  %v6586_v13 = vmax.f32 %v6584_v31, %v6585_v12  ;;  %v5360_v6 = vadd.f32 %v2416_v29, %v5196_v7  ;;  %v5362_v32 = vadd.f32 %v2423_v44, %v2422_v23 }
 0x1ba   : > { %v1718_v15 = vmax.f32 %v6577_v43, %v1715_v33  ;;  %v1875_v22 = vmax.f32 %v6580_v56, %v1872_v17  ;;  %v2409_v9 = vmul.f32 %v5244_v63, %v5165_v51  ;;  %v2305_v4 = vrot.slane %v2304_v42, 1 }
 0x1bb   : > { %v2025_v34 = vmax.f32 %v6583_v40, %v2022_v10  ;;  %v2175_v55 = vmax.f32 %v6586_v13, %v2172_v28  ;;  %v5374_v13 = vadd.f32 %v2430_v54, %v2429_v62  ;;  %v5377_v7 = vadd.f32 %v2444_v61, %v5201_v50 }
 0x1bc   : > { %v1720_v33 = vmax.f32 %v1718_v15, %v5217_v8  ;;  %v1877_v17 = vmax.f32 %v1875_v22, %v5219_v59  ;;  %v5379_v23 = vadd.f32 %v2410_v20, %v2409_v9  ;;  %v5381_v29 = vadd.f32 %v2305_v4, %v2304_v42 }
 0x1bd   : > { %v5369_v43 = vmax.f32 %v2025_v34, %v5246_v0  ;;  %v5372_v40 = vmax.f32 %v2175_v55, %v5256_v52 }
 0x1be   : > { %v1721_v51 = vsub.f32 %v6575_v30, %v1720_v33  ;;  %v1722_v8 = vsub.f32 %v5289_v19, %v1720_v33  ;;  %v1723_v59 = vsub.f32 %v6541_v16, %v1720_v33  ;;  %v1724_v0 = vsub.f32 %v5152_v38, %v1720_v33 }
 0x1bf   : > { %v1725_v52 = vsub.f32 %v6576_v45, %v1720_v33  ;;  %v1726_v55 = vsub.f32 %v1699_v60, %v1720_v33  ;;  %v1727_v62 = vsub.f32 %v6542_v24, %v1720_v33  ;;  %v1728_v50 = vsub.f32 %v5178_v3, %v1720_v33 }
 0x1c0   : > { %v1729_v34 = vmul.f32 1.442695, %v1721_v51  ;;  %v1731_v44 = vmul.f32 1.442695, %v1722_v8  ;;  %v1733_v54 = vmul.f32 1.442695, %v1723_v59  ;;  %v1878_v10 = vsub.f32 %v6578_v2, %v1877_v17 }
 0x1c1   : > { %v1735_v28 = vmul.f32 1.442695, %v1724_v0  ;;  %v1737_v61 = vmul.f32 1.442695, %v1725_v52  ;;  %v1739_v20 = vmul.f32 1.442695, %v1726_v55  ;;  %v1879_v16 = vsub.f32 %v5291_v48, %v1877_v17 }
 0x1c2   : > { %3606 = vpow2.f32 %v1729_v34  ;;  %v1741_v38 = vmul.f32 1.442695, %v1727_v62  ;;  %v1743_v19 = vmul.f32 1.442695, %v1728_v50  ;;  %v1880_v60 = vsub.f32 %v5159_v58, %v1877_v17  ;;  %v6587_v51 = vld [vmem:[#allocation62_spill] sm:$0xff] }
 0x1c3   : > { %3608 = vpow2.f32 %v1731_v44  ;;  %v1881_v3 = vsub.f32 %v5168_v57, %v1877_v17  ;;  %v1882_v24 = vsub.f32 %v6579_v25, %v1877_v17  ;;  %v1883_v42 = vsub.f32 %v5329_v35, %v1877_v17 }
 0x1c4   : > { %3610 = vpow2.f32 %v1733_v54  ;;  %v1884_v30 = vsub.f32 %v5161_v37, %v1877_v17  ;;  %v1885_v48 = vsub.f32 %v5180_v53, %v1877_v17  ;;  %v1886_v45 = vmul.f32 1.442695, %v1878_v10 }
 0x1c5   : > { %3612 = vpow2.f32 %v1735_v28  ;;  %v1888_v15 = vmul.f32 1.442695, %v1879_v16  ;;  %v1890_v2 = vmul.f32 1.442695, %v1880_v60  ;;  %v1892_v58 = vmul.f32 1.442695, %v1881_v3 }
 0x1c6   : > { %3614 = vpow2.f32 %v1737_v61  ;;  %v1894_v56 = vmul.f32 1.442695, %v1882_v24  ;;  %v1896_v57 = vmul.f32 1.442695, %v1883_v42  ;;  %v1898_v22 = vmul.f32 1.442695, %v1884_v30 }
 0x1c7   : > { %3616 = vpow2.f32 %v1739_v20  ;;  %v1900_v35 = vmul.f32 1.442695, %v1885_v48  ;;  %v2028_v25 = vsub.f32 %v6581_v36, %v5369_v43  ;;  %v2029_v37 = vsub.f32 %v5293_v26, %v5369_v43 }
 0x1c8   : > { %v5402_v53 = vpop.eup %3606  ;;  %3618 = vpow2.f32 %v1741_v38  ;;  %v2030_v9 = vsub.f32 %v5228_v5, %v5369_v43  ;;  %v2031_v4 = vsub.f32 %v5154_v14, %v5369_v43  ;;  %v2032_v33 = vsub.f32 %v6582_v27, %v5369_v43 }
 0x1c9   : > { %v5410_v17 = vpop.eup %3608  ;;  %3620 = vpow2.f32 %v1743_v19  ;;  %v2033_v36 = vsub.f32 %v5331_v1, %v5369_v43  ;;  %v2034_v26 = vsub.f32 %v5210_v21, %v5369_v43  ;;  %v2035_v8 = vsub.f32 %v6587_v51, %v5369_v43 }
 0x1ca   : > { %v5418_v59 = vpop.eup %3610  ;;  %v1753_v5 = vrot.slane %v5410_v17, 7  ;;  %3622 = vpow2.f32 %v1886_v45  ;;  %v2036_v14 = vmul.f32 1.442695, %v2028_v25  ;;  %v2038_v0 = vmul.f32 1.442695, %v2029_v37 }
 0x1cb   : > { %v5421_v27 = vpop.eup %3612  ;;  %v1756_v52 = vrot.slane %v5418_v59, 6  ;;  %3624 = vpow2.f32 %v1888_v15  ;;  %v2040_v55 = vmul.f32 1.442695, %v2030_v9  ;;  %v2042_v1 = vmul.f32 1.442695, %v2031_v4 }
 0x1cc   : > { %v5424_v62 = vpop.eup %3614  ;;  %v1755_v21 = vsel %vm1754_vm1, %v1753_v5, %v5402_v53  ;;  %v1759_v43 = vrot.slane %v5421_v27, 5  ;;  %3626 = vpow2.f32 %v1890_v2  ;;  %v2044_v50 = vmul.f32 1.442695, %v2032_v33 }
 0x1cd   : > { %v5429_v34 = vpop.eup %3616  ;;  %v1758_v44 = vsel %vm1757_vm2, %v1756_v52, %v1755_v21  ;;  %v1762_v54 = vrot.slane %v5424_v62, 4  ;;  %3628 = vpow2.f32 %v1892_v58  ;;  %v2046_v10 = vmul.f32 1.442695, %v2033_v36  ;;  %v6588_v58 = vld [vmem:[#allocation70_spill] sm:$0xff] }
 0x1ce   : > { %v5433_v28 = vpop.eup %3618  ;;  %v1761_v61 = vsel %vm1760_vm3, %v1759_v43, %v1758_v44  ;;  %v1765_v20 = vrot.slane %v5429_v34, 3  ;;  %3630 = vpow2.f32 %v1894_v56  ;;  %v2048_v16 = vmul.f32 1.442695, %v2034_v26 }
 0x1cf   : > { %v5437_v38 = vpop.eup %3620  ;;  %v1764_v19 = vsel %vm1763_vm4, %v1762_v54, %v1761_v61  ;;  %v1768_v60 = vrot.slane %v5433_v28, 2  ;;  %3632 = vpow2.f32 %v1896_v57  ;;  %v2050_v3 = vmul.f32 1.442695, %v2035_v8 }
 0x1d0   : > { %v5441_v24 = vpop.eup %3622  ;;  %v1767_v42 = vsel %vm1766_vm5, %v1765_v20, %v1764_v19  ;;  %v1771_v30 = vrot.slane %v5437_v38, 1  ;;  %3634 = vpow2.f32 %v1898_v22  ;;  %v2178_v48 = vsub.f32 %v6584_v31, %v5372_v40  ;;  %v6589_v31 = vld [vmem:[#allocation69_spill] sm:$0xff] }
 0x1d1   : > { %v5447_v45 = vpop.eup %3624  ;;  %v1770_v15 = vsel %vm1769_vm6, %v1768_v60, %v1767_v42  ;;  %3636 = vpow2.f32 %v1900_v35  ;;  %v2179_v2 = vsub.f32 %v5301_v18, %v5372_v40  ;;  %v2180_v56 = vsub.f32 %v6588_v58, %v5372_v40 }
 0x1d2   : > { %v5454_v57 = vpop.eup %3626  ;;  %v1773_v25 = vsel %vm1772_vm7, %v1771_v30, %v1770_v15  ;;  %v1910_v22 = vrot.slane %v5447_v45, 7  ;;  %3638 = vpow2.f32 %v2036_v14  ;;  %v2181_v37 = vsub.f32 %v6589_v31, %v5372_v40 }
 0x1d3   : > { %v5460_v9 = vpop.eup %3628  ;;  %v1775_v4 = vrot.slane %v1773_v25, 4  ;;  %v1912_v35 = vrot.slane %v5454_v57, 6  ;;  %3640 = vpow2.f32 %v2038_v0  ;;  %v2182_v18 = vsub.f32 %v6585_v12, %v5372_v40 }
 0x1d4   : > { %v5465_v33 = vpop.eup %3630  ;;  %v1911_v36 = vsel %vm1754_vm1, %v1910_v22, %v5441_v24  ;;  %v1914_v26 = vrot.slane %v5460_v9, 5  ;;  %3642 = vpow2.f32 %v2040_v55  ;;  %v2183_v51 = vsub.f32 %v5333_v49, %v5372_v40  ;;  %v6590_v55 = vld [vmem:[#allocation71_spill] sm:$0xff] }
 0x1d5   : > { %v5472_v8 = vpop.eup %3632  ;;  %v1776_v5 = vadd.f32 %v1775_v4, %v1773_v25  ;;  %v1913_v14 = vsel %vm1757_vm2, %v1912_v35, %v1911_v36  ;;  %v1916_v0 = vrot.slane %v5465_v33, 4  ;;  %3644 = vpow2.f32 %v2042_v1 }
 0x1d6   : > { %v5476_v12 = vpop.eup %3634  ;;  %v1915_v52 = vsel %vm1760_vm3, %v1914_v26, %v1913_v14  ;;  %v1918_v21 = vrot.slane %v5472_v8, 3  ;;  %3646 = vpow2.f32 %v2044_v50  ;;  %v2184_v43 = vsub.f32 %v6590_v55, %v5372_v40  ;;  %v6591_v50 = vld [vmem:[#allocation67_spill] sm:$0xff] }
 0x1d7   : > { %v5482_v44 = vpop.eup %3636  ;;  %v1777_v49 = vrot.slane %v1776_v5, 2  ;;  %v1917_v54 = vsel %vm1763_vm4, %v1916_v0, %v1915_v52  ;;  %v1920_v61 = vrot.slane %v5476_v12, 2  ;;  %3648 = vpow2.f32 %v2046_v10 }
 0x1d8   : > { %v5486_v20 = vpop.eup %3638  ;;  %v1919_v1 = vsel %vm1766_vm5, %v1918_v21, %v1917_v54  ;;  %v1922_v19 = vrot.slane %v5482_v44, 1  ;;  %3650 = vpow2.f32 %v2048_v16  ;;  %v2185_v60 = vsub.f32 %v6591_v50, %v5372_v40 }
 0x1d9   : > { %v5492_v42 = vpop.eup %3640  ;;  %v1778_v30 = vadd.f32 %v1777_v49, %v1776_v5  ;;  %v1921_v15 = vsel %vm1769_vm6, %v1920_v61, %v1919_v1  ;;  %3652 = vpow2.f32 %v2050_v3  ;;  %v2186_v58 = vmul.f32 1.442695, %v2178_v48 }
 0x1da   : > { %v5495_v25 = vpop.eup %3642  ;;  %v1923_v10 = vsel %vm1772_vm7, %v1922_v19, %v1921_v15  ;;  %v2060_v22 = vrot.slane %v5492_v42, 7  ;;  %v2188_v31 = vmul.f32 1.442695, %v2179_v2  ;;  %v2190_v4 = vmul.f32 1.442695, %v2180_v56 }
 0x1db   : > { %v5499_v35 = vpop.eup %3644  ;;  %v1779_v16 = vrot.slane %v1778_v30, 1  ;;  %v1925_v36 = vrot.slane %v1923_v10, 4  ;;  %v2062_v40 = vrot.slane %v5495_v25, 6  ;;  %3654 = vpow2.f32 %v2186_v58 }
 0x1dc   : > { %v5502_v26 = vpop.eup %3646  ;;  %v2061_v3 = vsel %vm1754_vm1, %v2060_v22, %v5486_v20  ;;  %v2064_v48 = vrot.slane %v5499_v35, 5  ;;  %3656 = vpow2.f32 %v2188_v31  ;;  %v2192_v5 = vmul.f32 1.442695, %v2181_v37 }
 0x1dd   : > { %v5507_v14 = vpop.eup %3648  ;;  %v1780_v2 = vadd.f32 %v1779_v16, %v1778_v30  ;;  %v1926_v56 = vadd.f32 %v1925_v36, %v1923_v10  ;;  %v2063_v0 = vsel %vm1757_vm2, %v2062_v40, %v2061_v3  ;;  %v2066_v52 = vrot.slane %v5502_v26, 4 }
 0x1de   : > { %v5511_v21 = vpop.eup %3650  ;;  %v2065_v55 = vsel %vm1760_vm3, %v2064_v48, %v2063_v0  ;;  %v2068_v49 = vrot.slane %v5507_v14, 3  ;;  %3658 = vpow2.f32 %v2190_v4  ;;  %v2194_v54 = vmul.f32 1.442695, %v2182_v18 }
 0x1df   : > { %v5515_v61 = vpop.eup %3652  ;;  %3660 = vrcp.f32 %v1780_v2  ;;  %v1927_v37 = vrot.slane %v1926_v56, 2  ;;  %v2067_v1 = vsel %vm1763_vm4, %v2066_v52, %v2065_v55  ;;  %v2070_v19 = vrot.slane %v5511_v21, 2  ;;  %v6592_v2 = vld [vmem:[#allocation93_spill] sm:$0xff] }
 0x1e0   : > { %v2069_v50 = vsel %vm1766_vm5, %v2068_v49, %v2067_v1  ;;  %v2072_v30 = vrot.slane %v5515_v61, 1  ;;  %3662 = vpow2.f32 %v2192_v5  ;;  %v2196_v15 = vmul.f32 1.442695, %v2183_v51 }
 0x1e1   : > { %v5521_v58 = vpop.eup %3654  ;;  %v1928_v10 = vadd.f32 %v1927_v37, %v1926_v56  ;;  %v2071_v22 = vsel %vm1769_vm6, %v2070_v19, %v2069_v50  ;;  %3664 = vpow2.f32 %v2194_v54  ;;  %v2198_v18 = vmul.f32 1.442695, %v2184_v43  ;;  %v6593_v56 = vld [vmem:[#allocation91_spill] sm:$0xff] }
 0x1e2   : > { %v5524_v31 = vpop.eup %3656  ;;  %v2073_v4 = vsel %vm1772_vm7, %v2072_v30, %v2071_v22  ;;  %3666 = vpow2.f32 %v2196_v15  ;;  %v2200_v16 = vmul.f32 1.442695, %v2185_v60  ;;  %v2322_v36 = vmax.f32 %v5322_v39, %v5381_v29  ;;  %v6595_v15 = vld [vmem:[#allocation63_spill] sm:$0xff] }
 0x1e3   : > { %v1929_v40 = vrot.slane %v1928_v10, 1  ;;  %v2075_v3 = vrot.slane %v2073_v4, 4  ;;  %3668 = vpow2.f32 %v2198_v18  ;;  %v2210_v51 = vrot.slane %v5524_v31, 7 }
 0x1e4   : > { %v5530_v48 = vpop.eup %3658  ;;  %3670 = vpow2.f32 %v2200_v16  ;;  %v6594_v0 = vmax.f32 %v6592_v2, %v6593_v56  ;;  %v6596_v22 = vrot.slane %v6595_v15, 4 }
 0x1e5   : > { %v3661_v60 = vpop.eup %3660  ;;  %v1930_v55 = vadd.f32 %v1929_v40, %v1928_v10  ;;  %v2076_v49 = vadd.f32 %v2075_v3, %v2073_v4  ;;  %v2211_v54 = vsel %vm1754_vm1, %v2210_v51, %v5521_v58  ;;  %v2212_v37 = vrot.slane %v5530_v48, 6 }
 0x1e6   : > { %v2325_v52 = vmax.f32 %v6594_v0, %v2322_v36  ;;  %v5540_v1 = vpop.eup %3662  ;;  %v1782_v50 = vperm.slane %v3661_v60, 0  ;;  %v5549_v18 = vadd.f32 %v6596_v22, %v6595_v15 }
 0x1e7   : > { %v5551_v10 = vpop.eup %3664  ;;  %3672 = vrcp.f32 %v1930_v55  ;;  %v2077_v4 = vrot.slane %v2076_v49, 2  ;;  %v2213_v16 = vsel %vm1757_vm2, %v2212_v37, %v2211_v54  ;;  %v2214_v36 = vrot.slane %v5540_v1, 5 }
 0x1e8   : > { %v5544_v30 = vmax.f32 %v2325_v52, %v5312_v11  ;;  %v5555_v40 = vpop.eup %3666  ;;  %v1783_v3 = vmul.f32 %v5402_v53, %v1782_v50  ;;  %v1784_v11 = vmul.f32 %v5410_v17, %v1782_v50  ;;  %v1785_v51 = vmul.f32 %v5418_v59, %v1782_v50 }
 0x1e9   : > { %v1786_v0 = vmul.f32 %v5421_v27, %v1782_v50  ;;  %v5561_v52 = vpop.eup %3668  ;;  %v1787_v60 = vmul.f32 %v5424_v62, %v1782_v50  ;;  %v1788_v55 = vmul.f32 %v5429_v34, %v1782_v50  ;;  %v1789_v54 = vmul.f32 %v5433_v28, %v1782_v50 }
 0x1ea   : > { %v1790_v37 = vmul.f32 %v5437_v38, %v1782_v50  ;;  %v5567_v15 = vpop.eup %3670  ;;  %v2078_v22 = vadd.f32 %v2077_v4, %v2076_v49  ;;  %v2215_v53 = vsel %vm1760_vm3, %v2214_v36, %v2213_v16  ;;  %v2216_v17 = vrot.slane %v5551_v10, 4 }
 0x1eb   : > { %6597 = vst [vmem:[#allocation75_spill] sm:$0xff] %v5567_v15  ;;  %v2218_v59 = vrot.slane %v5555_v40, 3  ;;  %v2220_v27 = vrot.slane %v5561_v52, 2  ;;  %v2222_v19 = vrot.slane %v5567_v15, 1  ;;  %v2328_v62 = vsub.f32 %v6592_v2, %v5544_v30 }
 0x1ec   : > { %v2329_v34 = vsub.f32 %v5322_v39, %v5544_v30  ;;  %v2079_v28 = vrot.slane %v2078_v22, 1  ;;  %v2217_v38 = vsel %vm1763_vm4, %v2216_v17, %v2215_v53  ;;  %v2330_v49 = vsub.f32 %v6567_v47, %v5544_v30  ;;  %v6598_v39 = vld [vmem:[#allocation92_spill] sm:$0xff]  ;;  %v6599_v47 = vld [vmem:[#allocation49_spill] sm:$0xff] }
 0x1ed   : > { %v2331_v50 = vsub.f32 %v5258_v41, %v5544_v30  ;;  %v3673_v4 = vpop.eup %3672  ;;  %v2219_v16 = vsel %vm1766_vm5, %v2218_v59, %v2217_v38  ;;  %v2332_v36 = vsub.f32 %v6593_v56, %v5544_v30  ;;  %v2333_v2 = vsub.f32 %v5381_v29, %v5544_v30 }
 0x1ee   : > { %v2334_v43 = vsub.f32 %v6598_v39, %v5544_v30  ;;  %v1932_v5 = vperm.slane %v3673_v4, 0  ;;  %v2080_v53 = vadd.f32 %v2079_v28, %v2078_v22  ;;  %v2221_v17 = vsel %vm1769_vm6, %v2220_v27, %v2219_v16 }
 0x1ef   : > { %v2335_v46 = vsub.f32 %v6599_v47, %v5544_v30  ;;  %v2223_v41 = vsel %vm1772_vm7, %v2222_v19, %v2221_v17  ;;  %v2336_v63 = vmul.f32 1.442695, %v2328_v62  ;;  %v2338_v59 = vmul.f32 1.442695, %v2329_v34 }
 0x1f0   : > { %v2340_v38 = vmul.f32 1.442695, %v2330_v49  ;;  %v1933_v56 = vmul.f32 %v5441_v24, %v1932_v5  ;;  %v1934_v15 = vmul.f32 %v5447_v45, %v1932_v5  ;;  %v1935_v29 = vmul.f32 %v5454_v57, %v1932_v5 }
 0x1f1   : > { %v1936_v39 = vmul.f32 %v5460_v9, %v1932_v5  ;;  %v1937_v22 = vmul.f32 %v5465_v33, %v1932_v5  ;;  %v1938_v27 = vmul.f32 %v5472_v8, %v1932_v5  ;;  %v1939_v28 = vmul.f32 %v5476_v12, %v1932_v5 }
 0x1f2   : > { %v1940_v30 = vmul.f32 %v5482_v44, %v1932_v5  ;;  %v1941_v19 = vadd.f32 %v1933_v56, %v1783_v3  ;;  %v1942_v62 = vadd.f32 %v1934_v15, %v1784_v11  ;;  %v1943_v34 = vadd.f32 %v1935_v29, %v1785_v51 }
 0x1f3   : > { %v1944_v49 = vadd.f32 %v1936_v39, %v1786_v0  ;;  %v1945_v4 = vadd.f32 %v1937_v22, %v1787_v60  ;;  %v1946_v24 = vadd.f32 %v1938_v27, %v1788_v55  ;;  %v1947_v16 = vadd.f32 %v1939_v28, %v1789_v54  ;;  %v6602_v60 = vld [vmem:[#allocation52_spill] sm:$0xff] }
 0x1f4   : > { %v1948_v45 = vadd.f32 %v1940_v30, %v1790_v37  ;;  %v6600_v57 = vrot.slane %v5360_v6, 2  ;;  %3674 = vrcp.f32 %v2080_v53  ;;  %v2225_v33 = vrot.slane %v2223_v41, 4 }
 0x1f5   : > { %v2342_v8 = vmul.f32 1.442695, %v2331_v50  ;;  %3676 = vpow2.f32 %v2336_v63  ;;  %v2344_v12 = vmul.f32 1.442695, %v2332_v36  ;;  %v6601_v44 = vrot.slane %v5362_v32, 2  ;;  %v6605_v50 = vld [vmem:[#allocation103_spill] sm:$0xff] }
 0x1f6   : > { %v5605_v9 = vadd.f32 %v6600_v57, %v5360_v6  ;;  %v2582_v3 = vrot.slane %v5549_v18, 2  ;;  %v2226_v11 = vadd.f32 %v2225_v33, %v2223_v41  ;;  %3678 = vpow2.f32 %v2338_v59 }
 0x1f7   : > { %v2426_v5 = vadd.f32 %v6601_v44, %v5362_v32  ;;  %v2346_v51 = vmul.f32 1.442695, %v2333_v2  ;;  %v2348_v0 = vmul.f32 1.442695, %v2334_v43  ;;  %3680 = vpow2.f32 %v2340_v38 }
 0x1f8   : > { %v6603_v6 = vrot.slane %v6602_v60, 4  ;;  %v2446_v54 = vrot.slane %v5377_v7, 2  ;;  %v6604_v63 = vrot.slane %v5379_v23, 4  ;;  %v2227_v15 = vrot.slane %v2226_v11, 2 }
 0x1f9   : > { %3682 = vpow2.f32 %v2342_v8  ;;  %v2350_v32 = vmul.f32 1.442695, %v2335_v46  ;;  %v2458_v36 = vrot.slane %v6605_v50, 4  ;;  %v2420_v2 = vrot.slane %v5605_v9, 1 }
 0x1fa   : > { %v2438_v55 = vadd.f32 %v6603_v6, %v6602_v60  ;;  %v2452_v37 = vadd.f32 %v6604_v63, %v5379_v23  ;;  %3684 = vpow2.f32 %v2344_v12  ;;  %v2447_v43 = vadd.f32 %v2446_v54, %v5377_v7  ;;  %v3675_v17 = vpop.eup %3674 }
 0x1fb   : > { %v2228_v47 = vadd.f32 %v2227_v15, %v2226_v11  ;;  %3686 = vpow2.f32 %v2346_v51  ;;  %v2427_v41 = vrot.slane %v2426_v5, 1  ;;  %v2432_v59 = vrot.slane %v5374_v13, 2  ;;  %v5622_v38 = vpop.eup %3676 }
 0x1fc   : > { %v2453_v53 = vrot.slane %v2452_v37, 2  ;;  %v2082_v23 = vperm.slane %v3675_v17, 0  ;;  %3688 = vpow2.f32 %v2348_v0  ;;  %v2439_v56 = vrot.slane %v2438_v55, 2  ;;  %v5625_v29 = vpop.eup %3678 }
 0x1fd   : > { %v2459_v46 = vadd.f32 %v2458_v36, %v6605_v50  ;;  %v2229_v39 = vrot.slane %v2228_v47, 1  ;;  %3690 = vpow2.f32 %v2350_v32  ;;  %v2448_v22 = vrot.slane %v2447_v43, 1  ;;  %v5627_v27 = vpop.eup %3680 }
 0x1fe   : > { %v2454_v7 = vadd.f32 %v2453_v53, %v2452_v37  ;;  %v2083_v28 = vmul.f32 %v5486_v20, %v2082_v23  ;;  %v2084_v30 = vmul.f32 %v5492_v42, %v2082_v23  ;;  %v2085_v57 = vmul.f32 %v5495_v25, %v2082_v23 }
 0x1ff   : > { %v2086_v33 = vmul.f32 %v5499_v35, %v2082_v23  ;;  %v5633_v8 = vpop.eup %3682  ;;  %v2087_v12 = vmul.f32 %v5502_v26, %v2082_v23  ;;  %v2088_v44 = vmul.f32 %v5507_v14, %v2082_v23  ;;  %v2089_v11 = vmul.f32 %v5511_v21, %v2082_v23 }
 0x200   : > { %v2090_v51 = vmul.f32 %v5515_v61, %v2082_v23  ;;  %v5639_v0 = vpop.eup %3684  ;;  %v5641_v60 = vadd.f32 %v2083_v28, %v1941_v19  ;;  %v5643_v20 = vadd.f32 %v2084_v30, %v1942_v62  ;;  %v5645_v42 = vadd.f32 %v2085_v57, %v1943_v34  ;;  %v6610_v30 = vld [vmem:[#allocation59_spill] sm:$0xff]  ;;  %v6611_v57 = vld [vmem:[#allocation65_spill] sm:$0xff] }
 0x201   : > { %v5647_v25 = vadd.f32 %v2086_v33, %v1944_v49  ;;  %v5649_v35 = vpop.eup %3686  ;;  %v5651_v6 = vadd.f32 %v2087_v12, %v1945_v4  ;;  %v5653_v26 = vadd.f32 %v2088_v44, %v1946_v24  ;;  %v5655_v14 = vadd.f32 %v2089_v11, %v1947_v16 }
 0x202   : > { %v5657_v21 = vadd.f32 %v2090_v51, %v1948_v45  ;;  %v5659_v61 = vpop.eup %3688  ;;  %v2230_v19 = vadd.f32 %v2229_v39, %v2228_v47  ;;  %v2360_v62 = vrot.slane %v5625_v29, 7  ;;  %v2362_v34 = vrot.slane %v5627_v27, 6 }
 0x203   : > { %v5664_v49 = vadd.f32 %v2420_v2, %v5605_v9  ;;  %v5666_v54 = vpop.eup %3690  ;;  %v2364_v4 = vrot.slane %v5633_v8, 5  ;;  %v5669_v24 = vadd.f32 %v2427_v41, %v2426_v5  ;;  %v2433_v16 = vadd.f32 %v2432_v59, %v5374_v13  ;;  %v6606_v13 = vld [vmem:[#allocation90_spill] sm:$0xff]  ;;  %v6608_v59 = vld [vmem:[#allocation73_spill] sm:$0xff] }
 0x204   : > { %v2440_v45 = vadd.f32 %v2439_v56, %v2438_v55  ;;  %3692 = vrcp.f32 %v2230_v19  ;;  %v2361_v63 = vsel %vm1754_vm1, %v2360_v62, %v5622_v38  ;;  %v2366_v37 = vrot.slane %v5639_v0, 4  ;;  %v6607_v55 = vld [vmem:[#allocation104_spill] sm:$0xff] }
 0x205   : > { %v5675_v15 = vadd.f32 %v2448_v22, %v2447_v43  ;;  %v2363_v9 = vsel %vm1757_vm2, %v2362_v34, %v2361_v63  ;;  %v2368_v32 = vrot.slane %v5649_v35, 3  ;;  %v2455_v50 = vrot.slane %v2454_v7, 1 }
 0x206   : > { %v2460_v36 = vrot.slane %v2459_v46, 2  ;;  %v2365_v5 = vsel %vm1760_vm3, %v2364_v4, %v2363_v9  ;;  %v2370_v2 = vrot.slane %v5659_v61, 2  ;;  %v2464_v53 = vadd.f32 %v6607_v55, %v6606_v13 }
 0x207   : > { %v2471_v17 = vmax.f32 %v5664_v49, %v5675_v15  ;;  %v2367_v47 = vsel %vm1763_vm4, %v2366_v37, %v2365_v5  ;;  %v5686_v43 = vadd.f32 %v2455_v50, %v2454_v7  ;;  %v6609_v23 = vrot.slane %v6608_v59, 4 }
 0x208   : > { %v2461_v41 = vadd.f32 %v2460_v36, %v2459_v46  ;;  %v2369_v39 = vsel %vm1766_vm5, %v2368_v32, %v2367_v47  ;;  %v2372_v22 = vrot.slane %v5666_v54, 1  ;;  %v2465_v28 = vrot.slane %v2464_v53, 4 }
 0x209   : > { %v2595_v56 = vadd.f32 %v6609_v23, %v6608_v59  ;;  %v2607_v33 = vadd.f32 %v6611_v57, %v6610_v30  ;;  %v2371_v12 = vsel %vm1769_vm6, %v2370_v2, %v2369_v39  ;;  %v2472_v44 = vmax.f32 %v5669_v24, %v5686_v43  ;;  %v6612_v59 = vld [vmem:[#allocation75_spill] sm:$0xff]  ;;  %v6613_v57 = vld [vmem:[#allocation105_spill] sm:$0xff] }
 0x20a   : > { %v2583_v46 = vadd.f32 %v2582_v3, %v5549_v18  ;;  %v3693_v11 = vpop.eup %3692  ;;  %v2373_v51 = vsel %vm1772_vm7, %v2372_v22, %v2371_v12  ;;  %v2434_v19 = vrot.slane %v2433_v16, 1  ;;  %v2466_v62 = vadd.f32 %v2465_v28, %v2464_v53 }
 0x20b   : > { %v2596_v7 = vrot.slane %v2595_v56, 2  ;;  %v2608_v34 = vrot.slane %v2607_v33, 4  ;;  %v2232_v4 = vperm.slane %v3693_v11, 0  ;;  %v2441_v63 = vrot.slane %v2440_v45, 1 }
 0x20c   : > { %v2462_v37 = vrot.slane %v2461_v41, 1  ;;  %v2475_v9 = vmax.f32 %v2471_v17, %v2472_v44  ;;  %v2375_v32 = vrot.slane %v2373_v51, 4  ;;  %v2467_v50 = vrot.slane %v2466_v62, 2 }
 0x20d   : > { %v2597_v36 = vadd.f32 %v2596_v7, %v2595_v56  ;;  %v2609_v5 = vadd.f32 %v2608_v34, %v2607_v33  ;;  %v2233_v2 = vmul.f32 %v5521_v58, %v2232_v4  ;;  %v2234_v13 = vmul.f32 %v5524_v31, %v2232_v4 }
 0x20e   : > { %v2235_v18 = vmul.f32 %v5530_v48, %v2232_v4  ;;  %v2236_v3 = vmul.f32 %v5540_v1, %v2232_v4  ;;  %v2237_v55 = vmul.f32 %v5551_v10, %v2232_v4  ;;  %v2238_v53 = vmul.f32 %v5555_v40, %v2232_v4 }
 0x20f   : > { %v2239_v47 = vmul.f32 %v5561_v52, %v2232_v4  ;;  %v2240_v17 = vmul.f32 %v6612_v59, %v2232_v4  ;;  %v5711_v23 = vadd.f32 %v2233_v2, %v5641_v60  ;;  %v5714_v56 = vadd.f32 %v2234_v13, %v5643_v20  ;;  %v6615_v59 = vld [vmem:[#allocation64_spill] sm:$0xff] }
 0x210   : > { %v5717_v58 = vadd.f32 %v2235_v18, %v5645_v42  ;;  %v5720_v31 = vadd.f32 %v2236_v3, %v5647_v25  ;;  %v5723_v48 = vadd.f32 %v2237_v55, %v5651_v6  ;;  %v5726_v1 = vadd.f32 %v2238_v53, %v5653_v26  ;;  %v6614_v53 = vld [vmem:[#allocation85_spill] sm:$0xff] }
 0x211   : > { %v5729_v10 = vadd.f32 %v2239_v47, %v5655_v14  ;;  %v5732_v40 = vadd.f32 %v2240_v17, %v5657_v21  ;;  %v2376_v52 = vadd.f32 %v2375_v32, %v2373_v51  ;;  %v2435_v60 = vadd.f32 %v2434_v19, %v2433_v16 }
 0x212   : > { %v2463_v20 = vadd.f32 %v2462_v37, %v2461_v41  ;;  %v2468_v42 = vadd.f32 %v2467_v50, %v2466_v62  ;;  %v2584_v39 = vrot.slane %v2583_v46, 1  ;;  %v2598_v22 = vrot.slane %v2597_v36, 1 }
 0x213   : > { %v2610_v25 = vrot.slane %v2609_v5, 2  ;;  %v2377_v28 = vrot.slane %v2376_v52, 2  ;;  %v2442_v30 = vadd.f32 %v2441_v63, %v2440_v45  ;;  %v2570_v33 = vrot.slane %v6613_v57, 1 }
 0x214   : > { %v2469_v6 = vrot.slane %v2468_v42, 1  ;;  %v2473_v14 = vmax.f32 %v2435_v60, %v2463_v20  ;;  %v5735_v7 = vadd.f32 %v2584_v39, %v2583_v46  ;;  %v5737_v21 = vadd.f32 %v2598_v22, %v2597_v36 }
 0x215   : > { %v2611_v26 = vadd.f32 %v2610_v25, %v2609_v5  ;;  %v2378_v12 = vadd.f32 %v2377_v28, %v2376_v52  ;;  %v5740_v51 = vadd.f32 %v2570_v33, %v6613_v57  ;;  %v2573_v47 = vrot.slane %v6614_v53, 4  ;;  %v6617_v33 = vld [vmem:[#allocation102_spill] sm:$0xff] }
 0x216   : > { %v2470_v44 = vadd.f32 %v2469_v6, %v2468_v42 }
 0x217   : > { %v2612_v11 = vrot.slane %v2611_v26, 1  ;;  %v2379_v16 = vrot.slane %v2378_v12, 1  ;;  %v2621_v34 = vmax.f32 %v5740_v51, %v5737_v21 }
 0x218   : > { %v2474_v41 = vmax.f32 %v2442_v30, %v2470_v44 }
 0x219   : > { %v5742_v19 = vadd.f32 %v2612_v11, %v2611_v26  ;;  %v2380_v45 = vadd.f32 %v2379_v16, %v2378_v12  ;;  %v6618_v12 = vld [vmem:[#allocation57_spill] sm:$0xff] }
 0x21a   : > { %v2476_v62 = vmax.f32 %v2473_v14, %v2474_v41 }
 0x21b   : > { %v2623_v4 = vmax.f32 %v5735_v7, %v5742_v19  ;;  %3694 = vrcp.f32 %v2380_v45 }
 0x21c   : > { %v2477_v46 = vmax.f32 %v2475_v9, %v2476_v62  ;;  %v2587_v9 = vrot.slane %v6615_v59, 4  ;;  %v6620_v62 = vld [vmem:[#allocation38_spill] sm:$0xff] }
 0x21e   : > { %v2478_v63 = vsub.f32 %v5664_v49, %v2477_v46  ;;  %v2479_v37 = vsub.f32 %v5669_v24, %v2477_v46  ;;  %v2480_v32 = vsub.f32 %v2435_v60, %v2477_v46  ;;  %v2481_v50 = vsub.f32 %v2442_v30, %v2477_v46 }
 0x21f   : > { %v2482_v36 = vsub.f32 %v5675_v15, %v2477_v46  ;;  %v2484_v5 = vsub.f32 %v2463_v20, %v2477_v46  ;;  %v2483_v2 = vsub.f32 %v5686_v43, %v2477_v46  ;;  %v2485_v49 = vsub.f32 %v2470_v44, %v2477_v46  ;;  %v6619_v44 = vld [vmem:[#allocation100_spill] sm:$0xff] }
 0x220   : > { %v2486_v13 = vmul.f32 1.442695, %v2478_v63  ;;  %v2488_v18 = vmul.f32 1.442695, %v2479_v37  ;;  %v2490_v3 = vmul.f32 1.442695, %v2480_v32  ;;  %v2563_v14 = vmul.f32 %v6619_v44, %v6618_v12 }
 0x221   : > { %v3695_v55 = vpop.eup %3694  ;;  %v2492_v24 = vmul.f32 1.442695, %v2481_v50  ;;  %v2494_v52 = vmul.f32 1.442695, %v2482_v36  ;;  %v2496_v60 = vmul.f32 1.442695, %v2483_v2 }
 0x222   : > { %3696 = vpow2.f32 %v2486_v13  ;;  %v2382_v17 = vperm.slane %v3695_v55, 0  ;;  %v2498_v15 = vmul.f32 1.442695, %v2484_v5  ;;  %v2601_v46 = vrot.slane %v6620_v62, 4  ;;  %v6624_v12 = vld [vmem:[#allocation80_spill] sm:$0xff] }
 0x223   : > { %3698 = vpow2.f32 %v2488_v18 }
 0x224   : > { %3700 = vpow2.f32 %v2490_v3  ;;  %v2383_v20 = vmul.f32 %v5622_v38, %v2382_v17  ;;  %v2384_v43 = vmul.f32 %v5625_v29, %v2382_v17  ;;  %v2385_v42 = vmul.f32 %v5627_v27, %v2382_v17 }
 0x225   : > { %v2386_v39 = vmul.f32 %v5633_v8, %v2382_v17  ;;  %v2387_v22 = vmul.f32 %v5639_v0, %v2382_v17  ;;  %v2388_v25 = vmul.f32 %v5649_v35, %v2382_v17  ;;  %v2389_v28 = vmul.f32 %v5659_v61, %v2382_v17 }
 0x226   : > { %v2390_v30 = vmul.f32 %v5666_v54, %v2382_v17  ;;  %v5763_v6 = vadd.f32 %v2383_v20, %v5711_v23  ;;  %v5766_v57 = vadd.f32 %v2384_v43, %v5714_v56  ;;  %v5769_v38 = vadd.f32 %v2385_v42, %v5717_v58 }
 0x227   : > { %v5772_v29 = vadd.f32 %v2386_v39, %v5720_v31  ;;  %v5777_v8 = vadd.f32 %v2387_v22, %v5723_v48  ;;  %v5780_v0 = vadd.f32 %v2388_v25, %v5726_v1  ;;  %v5783_v35 = vadd.f32 %v2389_v28, %v5729_v10  ;;  %v6616_v1 = vld [vmem:[#allocation56_spill] sm:$0xff] }
 0x228   : > { %v5774_v27 = vpop.eup %3696  ;;  %v5786_v61 = vadd.f32 %v2390_v30, %v5732_v40  ;;  %v2574_v23 = vadd.f32 %v2573_v47, %v6614_v53  ;;  %3702 = vpow2.f32 %v2492_v24  ;;  %v2500_v56 = vmul.f32 1.442695, %v2485_v49  ;;  %v6621_v30 = vld [vmem:[#allocation82_spill] sm:$0xff] }
 0x229   : > { %v5788_v54 = vpop.eup %3698  ;;  %3704 = vpow2.f32 %v2494_v52  ;;  %v2588_v48 = vadd.f32 %v2587_v9, %v6615_v59  ;;  %v2564_v10 = vmul.f32 %v6617_v33, %v6616_v1  ;;  %v2602_v2 = vadd.f32 %v2601_v46, %v6620_v62  ;;  %v6627_v62 = vld [vmem:[#allocation34_spill] sm:$0xff] }
 0x22a   : > { %v5791_v58 = vpop.eup %3700  ;;  %v2510_v31 = vrot.slane %v5788_v54, 7  ;;  %3706 = vpow2.f32 %v2496_v60  ;;  %v2575_v16 = vrot.slane %v2574_v23, 2 }
 0x22b   : > { %v2512_v40 = vrot.slane %v5791_v58, 6  ;;  %3708 = vpow2.f32 %v2498_v15  ;;  %v2589_v41 = vrot.slane %v2588_v48, 2  ;;  %v2614_v63 = vadd.f32 %v2564_v10, %v2563_v14  ;;  %v6625_v14 = vld [vmem:[#allocation94_spill] sm:$0xff] }
 0x22c   : > { %v2511_v26 = vsel %vm1754_vm1, %v2510_v31, %v5774_v27  ;;  %3710 = vpow2.f32 %v2500_v56  ;;  %v2576_v5 = vadd.f32 %v2575_v16, %v2574_v23  ;;  %v2603_v17 = vrot.slane %v2602_v2, 2  ;;  %v6622_v23 = vld [vmem:[#allocation96_spill] sm:$0xff]  ;;  %v6623_v31 = vld [vmem:[#allocation39_spill] sm:$0xff]  ;;  %v6626_v16 = vld [vmem:[#allocation30_spill] sm:$0xff] }
 0x22d   : > { %v2513_v11 = vsel %vm1757_vm2, %v2512_v40, %v2511_v26  ;;  %v2615_v13 = vrot.slane %v2614_v63, 4  ;;  %v2590_v53 = vadd.f32 %v2589_v41, %v2588_v48  ;;  %v2702_v56 = vmul.f32 %v6622_v23, %v6621_v30 }
 0x22e   : > { %v5803_v45 = vpop.eup %3702  ;;  %v2577_v15 = vrot.slane %v2576_v5, 1  ;;  %v2604_v20 = vadd.f32 %v2603_v17, %v2602_v2  ;;  %v2706_v48 = vmul.f32 %v6622_v23, %v6623_v31  ;;  %v2705_v41 = vmul.f32 %v6625_v14, %v6626_v16  ;;  %v6632_v31 = vld [vmem:[#allocation98_spill] sm:$0xff] }
 0x22f   : > { %v5806_v37 = vpop.eup %3704  ;;  %v2514_v32 = vrot.slane %v5803_v45, 5  ;;  %v2616_v49 = vadd.f32 %v2615_v13, %v2614_v63  ;;  %v2591_v22 = vrot.slane %v2590_v53, 1  ;;  %v2704_v46 = vmul.f32 %v6622_v23, %v6627_v62  ;;  %v6628_v63 = vld [vmem:[#allocation60_spill] sm:$0xff] }
 0x230   : > { %v5809_v50 = vpop.eup %3706  ;;  %v2516_v36 = vrot.slane %v5806_v37, 4  ;;  %v2605_v25 = vrot.slane %v2604_v20, 1  ;;  %v2578_v10 = vadd.f32 %v2577_v15, %v2576_v5  ;;  %v6631_v15 = vld [vmem:[#allocation97_spill] sm:$0xff] }
 0x231   : > { %v5813_v18 = vpop.eup %3708  ;;  %v2515_v3 = vsel %vm1760_vm3, %v2514_v32, %v2513_v11  ;;  %v2518_v55 = vrot.slane %v5809_v50, 3  ;;  %v2617_v43 = vrot.slane %v2616_v49, 2  ;;  %v2701_v11 = vmul.f32 %v6625_v14, %v6624_v12 }
 0x232   : > { %v5817_v47 = vpop.eup %3710  ;;  %v2517_v59 = vsel %vm1763_vm4, %v2516_v36, %v2515_v3  ;;  %v2520_v9 = vrot.slane %v5813_v18, 2  ;;  %v2606_v40 = vadd.f32 %v2605_v25, %v2604_v20  ;;  %v2712_v32 = vmul.f32 %v6622_v23, %v6628_v63 }
 0x233   : > { %v2519_v24 = vsel %vm1766_vm5, %v2518_v55, %v2517_v59  ;;  %v2522_v52 = vrot.slane %v5817_v47, 1  ;;  %v2618_v28 = vadd.f32 %v2617_v43, %v2616_v49  ;;  %v2592_v2 = vadd.f32 %v2591_v22, %v2590_v53  ;;  %v6629_v55 = vld [vmem:[#allocation35_spill] sm:$0xff]  ;;  %v6630_v59 = vld [vmem:[#allocation54_spill] sm:$0xff] }
 0x234   : > { %v2521_v60 = vsel %vm1769_vm6, %v2520_v9, %v2519_v24  ;;  %v2622_v3 = vmax.f32 %v2578_v10, %v2606_v40  ;;  %v2703_v5 = vmul.f32 %v6625_v14, %v6629_v55  ;;  %v2711_v9 = vmul.f32 %v6625_v14, %v6630_v59 }
 0x235   : > { %v2523_v42 = vsel %vm1772_vm7, %v2522_v52, %v2521_v60  ;;  %v2619_v26 = vrot.slane %v2618_v28, 1  ;;  %v2722_v17 = vadd.f32 %v2702_v56, %v2701_v11  ;;  %v5844_v60 = vadd.f32 %v2706_v48, %v2705_v41 }
 0x236   : > { %v2525_v39 = vrot.slane %v2523_v42, 4  ;;  %v2625_v52 = vmax.f32 %v2621_v34, %v2622_v3  ;;  %v2716_v20 = vrot.slane %v6631_v15, 4  ;;  %v2729_v53 = vadd.f32 %v2704_v46, %v2703_v5 }
 0x237   : > { %v2620_v13 = vadd.f32 %v2619_v26, %v2618_v28  ;;  %v2757_v43 = vadd.f32 %v2712_v32, %v2711_v9  ;;  %v2723_v22 = vrot.slane %v2722_v17, 4 }
 0x238   : > { %v2526_v1 = vadd.f32 %v2525_v39, %v2523_v42  ;;  %v2717_v30 = vadd.f32 %v2716_v20, %v6631_v15  ;;  %v2730_v56 = vrot.slane %v2729_v53, 4 }
 0x239   : > { %v2624_v24 = vmax.f32 %v2592_v2, %v2620_v13  ;;  %v2758_v34 = vrot.slane %v2757_v43, 4 }
 0x23a   : > { %v2527_v36 = vrot.slane %v2526_v1, 2  ;;  %v2718_v55 = vrot.slane %v2717_v30, 2  ;;  %v2731_v59 = vadd.f32 %v2730_v56, %v2729_v53 }
 0x23b   : > { %v2626_v39 = vmax.f32 %v2623_v4, %v2624_v24  ;;  %v5866_v9 = vadd.f32 %v2758_v34, %v2757_v43 }
 0x23c   : > { %v2528_v49 = vadd.f32 %v2527_v36, %v2526_v1  ;;  %v2744_v1 = vrot.slane %v6632_v31, 4  ;;  %v2719_v20 = vadd.f32 %v2718_v55, %v2717_v30 }
 0x23d   : > { %v2627_v28 = vmax.f32 %v2625_v52, %v2626_v39 }
 0x23e   : > { %v2529_v42 = vrot.slane %v2528_v49, 1  ;;  %v2745_v5 = vadd.f32 %v2744_v1, %v6632_v31 }
 0x23f   : > { %v2628_v48 = vsub.f32 %v5740_v51, %v2627_v28  ;;  %v2629_v26 = vsub.f32 %v2578_v10, %v2627_v28  ;;  %v2630_v12 = vsub.f32 %v5735_v7, %v2627_v28  ;;  %v2631_v11 = vsub.f32 %v2592_v2, %v2627_v28  ;;  %v6633_v51 = vld [vmem:[#allocation43_spill] sm:$0xff]  ;;  %v6634_v7 = vld [vmem:[#allocation42_spill] sm:$0xff] }
 0x240   : > { %v2530_v25 = vadd.f32 %v2529_v42, %v2528_v49  ;;  %v2632_v16 = vsub.f32 %v5737_v21, %v2627_v28  ;;  %v2633_v41 = vsub.f32 %v2606_v40, %v2627_v28  ;;  %v2634_v4 = vsub.f32 %v5742_v19, %v2627_v28  ;;  %v5862_v40 = vpop.f32.mrf.mxu1 }
 0x241   : > { %v2635_v62 = vsub.f32 %v2620_v13, %v2627_v28  ;;  %v2636_v46 = vmul.f32 1.442695, %v2628_v48  ;;  %v2638_v63 = vmul.f32 1.442695, %v2629_v26  ;;  %v2640_v32 = vmul.f32 1.442695, %v2630_v12 }
 0x242   : > { %3712 = vrcp.f32 %v2530_v25  ;;  %v2642_v36 = vmul.f32 1.442695, %v2631_v11  ;;  %v2644_v3 = vmul.f32 1.442695, %v2632_v16  ;;  %v2709_v10 = vmul.f32 %v6625_v14, %v6633_v51  ;;  %6635 = vst [vmem:[#allocation77_spill] sm:$0xff] %v5862_v40 }
 0x243   : > { %3714 = vpow2.f32 %v2636_v46  ;;  %v2710_v2 = vmul.f32 %v6622_v23, %v6634_v7  ;;  %v2737_v21 = vrot.slane %v5844_v60, 4  ;;  %v5864_v13 = vadd.f32 %v2723_v22, %v2722_v17  ;;  %v5938_v7 = vpop.permute.xlu2 %1354 }
 0x244   : > { %3716 = vpow2.f32 %v2638_v63  ;;  %v2646_v24 = vmul.f32 1.442695, %v2633_v41  ;;  %v2648_v52 = vmul.f32 1.442695, %v2634_v4  ;;  %v2650_v15 = vmul.f32 1.442695, %v2635_v62  ;;  %v5927_v4 = vpop.permute.xlu1 %1359 }
 0x245   : > { %3718 = vpow2.f32 %v2640_v32  ;;  %v2746_v42 = vrot.slane %v2745_v5, 2  ;;  %v2738_v1 = vadd.f32 %v2737_v21, %v5844_v60  ;;  %v2732_v26 = vrot.slane %v2731_v59, 2 }
 0x246   : > { %3720 = vpow2.f32 %v2642_v36  ;;  %v2750_v41 = vadd.f32 %v2710_v2, %v2709_v10 }
 0x247   : > { %3722 = vpow2.f32 %v2644_v3  ;;  %v2747_v16 = vadd.f32 %v2746_v42, %v2745_v5  ;;  %v5934_v3 = vpop.f32.mrf.mxu0  ;;  %v2733_v55 = vadd.f32 %v2732_v26, %v2731_v59 }
 0x248   : > { %v3713_v19 = vpop.eup %3712  ;;  %3724 = vpow2.f32 %v2646_v24  ;;  %v5920_v12 = vpop.f32.mrf.mxu1  ;;  %6637 = vst [vmem:[#allocation84_spill] sm:$0xff] %v5934_v3  ;;  %v2751_v5 = vrot.slane %v2750_v41, 4  ;;  %v6669_v3 = vld [vmem:[#allocation95_spill] sm:$0xff] }
 0x249   : > { %v2532_v49 = vperm.slane %v3713_v19, 0  ;;  %v5872_v22 = vpop.eup %3714  ;;  %3726 = vpow2.f32 %v2648_v52  ;;  %6636 = vst [vmem:[#allocation83_spill] sm:$0xff] %v5920_v12  ;;  %v2748_v63 = vrot.slane %v2747_v16, 1 }
 0x24a   : > { %v5878_v30 = vpop.eup %3716  ;;  %3728 = vpow2.f32 %v2650_v15  ;;  %v2752_v59 = vadd.f32 %v2751_v5, %v2750_v41 }
 0x24b   : > { %v2533_v39 = vmul.f32 %v5774_v27, %v2532_v49  ;;  %v2534_v25 = vmul.f32 %v5788_v54, %v2532_v49  ;;  %v2535_v28 = vmul.f32 %v5791_v58, %v2532_v49  ;;  %v2536_v17 = vmul.f32 %v5803_v45, %v2532_v49 }
 0x24c   : > { %v2537_v53 = vmul.f32 %v5806_v37, %v2532_v49  ;;  %v2538_v43 = vmul.f32 %v5809_v50, %v2532_v49  ;;  %v2539_v56 = vmul.f32 %v5813_v18, %v2532_v49  ;;  %v2540_v31 = vmul.f32 %v5817_v47, %v2532_v49  ;;  %v5892_v37 = vpop.eup %3718 }
 0x24d   : > { %v5881_v27 = vadd.f32 %v2533_v39, %v5763_v6  ;;  %v5884_v54 = vadd.f32 %v2534_v25, %v5766_v57  ;;  %v5887_v58 = vadd.f32 %v2535_v28, %v5769_v38  ;;  %v5890_v45 = vadd.f32 %v2536_v17, %v5772_v29  ;;  %v5906_v47 = vpop.eup %3720 }
 0x24e   : > { %v5895_v50 = vadd.f32 %v2537_v53, %v5777_v8  ;;  %v5898_v18 = vadd.f32 %v2538_v43, %v5780_v0  ;;  %v5901_v6 = vadd.f32 %v2539_v56, %v5783_v35  ;;  %v5904_v57 = vadd.f32 %v2540_v31, %v5786_v61  ;;  %v5911_v8 = vpop.eup %3722 }
 0x24f   : > { %v2660_v38 = vrot.slane %v5878_v30, 7  ;;  %v2662_v29 = vrot.slane %v5892_v37, 6  ;;  %v2713_v0 = vmul.f32 %v6619_v44, %v6625_v14  ;;  %v2714_v35 = vmul.f32 %v6617_v33, %v6622_v23  ;;  %v5932_v36 = vpop.eup %3724 }
 0x250   : > { %v2720_v61 = vrot.slane %v2719_v20, 1  ;;  %v2664_v48 = vrot.slane %v5906_v47, 5  ;;  %v2666_v11 = vrot.slane %v5911_v8, 4  ;;  %v2760_v44 = vrot.slane %v5866_v9, 2  ;;  %v5936_v51 = vpop.eup %3726 }
 0x251   : > { %v2661_v34 = vsel %vm1754_vm1, %v2660_v38, %v5872_v22  ;;  %v2725_v33 = vrot.slane %v5864_v13, 2  ;;  %v2739_v23 = vrot.slane %v2738_v1, 2  ;;  %v2764_v32 = vadd.f32 %v2714_v35, %v2713_v0  ;;  %v5944_v49 = vpop.eup %3728 }
 0x252   : > { %v2663_v60 = vsel %vm1757_vm2, %v2662_v29, %v2661_v34  ;;  %v5930_v46 = vadd.f32 %v2720_v61, %v2719_v20  ;;  %v2668_v10 = vrot.slane %v5932_v36, 3  ;;  %v5941_v2 = vadd.f32 %v2748_v63, %v2747_v16  ;;  %v5954_v29 = vpop.f32.mrf.mxu1  ;;  %v5956_v34 = vpop.permute.xlu1 %1349 }
 0x253   : > { %v2665_v14 = vsel %vm1760_vm3, %v2664_v48, %v2663_v60  ;;  %v2761_v21 = vadd.f32 %v2760_v44, %v5866_v9  ;;  %v2765_v19 = vrot.slane %v2764_v32, 4  ;;  %v2670_v24 = vrot.slane %v5936_v51, 2  ;;  %6638 = vst [vmem:[#allocation76_spill] sm:$0xff] %v5954_v29  ;;  %v6667_v29 = vld [vmem:[#allocation87_spill] sm:$0xff] }
 0x254   : > { %v2667_v62 = vsel %vm1763_vm4, %v2666_v11, %v2665_v14  ;;  %v2726_v52 = vadd.f32 %v2725_v33, %v5864_v13  ;;  %v2740_v15 = vadd.f32 %v2739_v23, %v2738_v1  ;;  %v2672_v42 = vrot.slane %v5944_v49, 1  ;;  %v5958_v11 = vpop.f32.mrf.mxu0  ;;  %v5960_v33 = vpop.permute.xlu2 %1414 }
 0x255   : > { %v2669_v20 = vsel %vm1766_vm5, %v2668_v10, %v2667_v62  ;;  %v2766_v39 = vadd.f32 %v2765_v19, %v2764_v32  ;;  %v2771_v25 = vmax.f32 %v5930_v46, %v5941_v2  ;;  %v2753_v9 = vrot.slane %v2752_v59, 2  ;;  %6639 = vst [vmem:[#allocation79_spill] sm:$0xff] %v5958_v11 }
 0x256   : > { %v2671_v28 = vsel %vm1769_vm6, %v2670_v24, %v2669_v20  ;;  %v2734_v53 = vrot.slane %v2733_v55, 1  ;;  %v2762_v43 = vrot.slane %v2761_v21, 1  ;;  %v2727_v13 = vrot.slane %v2726_v52, 1 }
 0x257   : > { %v2673_v17 = vsel %vm1772_vm7, %v2672_v42, %v2671_v28  ;;  %v2767_v56 = vrot.slane %v2766_v39, 2  ;;  %v2754_v38 = vadd.f32 %v2753_v9, %v2752_v59  ;;  %v2741_v1 = vrot.slane %v2740_v15, 1 }
 0x258   : > { %v2675_v31 = vrot.slane %v2673_v17, 4  ;;  %v2735_v48 = vadd.f32 %v2734_v53, %v2733_v55  ;;  %v2763_v26 = vadd.f32 %v2762_v43, %v2761_v21  ;;  %v2728_v44 = vadd.f32 %v2727_v13, %v2726_v52 }
 0x259   : > { %v2768_v0 = vadd.f32 %v2767_v56, %v2766_v39  ;;  %v2755_v61 = vrot.slane %v2754_v38, 1  ;;  %v2742_v23 = vadd.f32 %v2741_v1, %v2740_v15 }
 0x25a   : > { %v2676_v35 = vadd.f32 %v2675_v31, %v2673_v17  ;;  %v2773_v32 = vmax.f32 %v2735_v48, %v2763_v26  ;;  %v5962_v55 = vpop.f32.mrf.mxu1  ;;  %v5964_v20 = vpop.permute.xlu1 %1344 }
 0x25b   : > { %v2769_v60 = vrot.slane %v2768_v0, 1  ;;  %v2756_v14 = vadd.f32 %v2755_v61, %v2754_v38  ;;  %6640 = vst [vmem:[#allocation88_spill] sm:$0xff] %v5962_v55  ;;  %v5972_v31 = vpop.permute.xlu0 %1419 }
 0x25c   : > { %v2677_v16 = vrot.slane %v2676_v35, 2  ;;  %v5967_v28 = vpop.f32.mrf.mxu0  ;;  %v5970_v53 = vpop.permute.xlu2 %1409 }
 0x25d   : > { %v2770_v41 = vadd.f32 %v2769_v60, %v2768_v0  ;;  %v2772_v63 = vmax.f32 %v2728_v44, %v2756_v14  ;;  %6641 = vst [vmem:[#allocation86_spill] sm:$0xff] %v5967_v28 }
 0x25e   : > { %v2678_v62 = vadd.f32 %v2677_v16, %v2676_v35 }
 0x25f   : > { %v2774_v5 = vmax.f32 %v2742_v23, %v2770_v41  ;;  %v2775_v19 = vmax.f32 %v2771_v25, %v2772_v63 }
 0x260   : > { %v2679_v10 = vrot.slane %v2678_v62, 1 }
 0x261   : > { %v2776_v24 = vmax.f32 %v2773_v32, %v2774_v5 }
 0x262   : > { %v2680_v59 = vadd.f32 %v2679_v10, %v2678_v62  ;;  %v5986_v5 = vpop.permute.xlu1 %1499 }
 0x263   : > { %v2777_v21 = vmax.f32 %v2775_v19, %v2776_v24  ;;  %v6021_v24 = vpop.permute.xlu0 %1459 }
 0x264   : > { %3730 = vrcp.f32 %v2680_v59 }
 0x265   : > { %v2778_v52 = vsub.f32 %v5930_v46, %v2777_v21  ;;  %v2779_v42 = vsub.f32 %v2728_v44, %v2777_v21  ;;  %v2780_v39 = vsub.f32 %v2735_v48, %v2777_v21  ;;  %v2781_v15 = vsub.f32 %v2742_v23, %v2777_v21 }
 0x266   : > { %v2782_v9 = vsub.f32 %v5941_v2, %v2777_v21  ;;  %v2784_v17 = vsub.f32 %v2763_v26, %v2777_v21  ;;  %v2783_v13 = vsub.f32 %v2756_v14, %v2777_v21  ;;  %v2785_v38 = vsub.f32 %v2770_v41, %v2777_v21  ;;  %v5974_v26 = vpop.f32.mrf.mxu1 }
 0x267   : > { %v2786_v25 = vmul.f32 1.442695, %v2778_v52  ;;  %v2788_v43 = vmul.f32 1.442695, %v2779_v42  ;;  %v2790_v56 = vmul.f32 1.442695, %v2780_v39 }
 0x268   : > { %v2792_v1 = vmul.f32 1.442695, %v2781_v15  ;;  %v2794_v35 = vmul.f32 1.442695, %v2782_v9  ;;  %v2796_v61 = vmul.f32 1.442695, %v2783_v13 }
 0x269   : > { %3732 = vpow2.f32 %v2786_v25  ;;  %v2798_v2 = vmul.f32 1.442695, %v2784_v17  ;;  %v2800_v48 = vmul.f32 1.442695, %v2785_v38 }
 0x26a   : > { %v3731_v46 = vpop.eup %3730  ;;  %3734 = vpow2.f32 %v2788_v43  ;;  %v6036_v9 = vpop.permute.xlu1 %1494 }
 0x26b   : > { %v2682_v0 = vperm.slane %v3731_v46, 0  ;;  %3736 = vpow2.f32 %v2790_v56 }
 0x26c   : > { %3738 = vpow2.f32 %v2792_v1 }
 0x26d   : > { %v2683_v60 = vmul.f32 %v5872_v22, %v2682_v0  ;;  %v2684_v16 = vmul.f32 %v5878_v30, %v2682_v0  ;;  %v2685_v44 = vmul.f32 %v5892_v37, %v2682_v0  ;;  %v2686_v14 = vmul.f32 %v5906_v47, %v2682_v0 }
 0x26e   : > { %v2687_v23 = vmul.f32 %v5911_v8, %v2682_v0  ;;  %v2688_v41 = vmul.f32 %v5932_v36, %v2682_v0  ;;  %v2689_v62 = vmul.f32 %v5936_v51, %v2682_v0  ;;  %v2690_v63 = vmul.f32 %v5944_v49, %v2682_v0  ;;  %v6002_v36 = vpop.f32.mrf.mxu0  ;;  %v921_v52 = vpop.f32.mrf.mxu1 }
 0x26f   : > { %v5984_v32 = vpop.eup %3732  ;;  %v5989_v22 = vadd.f32 %v2683_v60, %v5881_v27  ;;  %v5992_v30 = vadd.f32 %v2684_v16, %v5884_v54  ;;  %v5995_v37 = vadd.f32 %v2685_v44, %v5887_v58  ;;  %v5998_v47 = vadd.f32 %v2686_v14, %v5890_v45  ;;  %6642 = vst [vmem:[#allocation62_spill] sm:$0xff] %v6002_v36  ;;  %v1405_v45 = vpop.permute.xlu2 %1404  ;;  %v6662_v36 = vld [vmem:[#allocation21_spill] sm:$0xff] }
 0x270   : > { %v6000_v8 = vpop.eup %3734  ;;  %v6005_v51 = vadd.f32 %v2687_v23, %v5895_v50  ;;  %v6008_v49 = vadd.f32 %v2688_v41, %v5898_v18  ;;  %v6011_v27 = vadd.f32 %v2689_v62, %v5901_v6  ;;  %v6014_v54 = vadd.f32 %v2690_v63, %v5904_v57  ;;  %v1455_v0 = vpop.permute.xlu0 %1454 }
 0x271   : > { %v6016_v58 = vpop.eup %3736  ;;  %3740 = vpow2.f32 %v2794_v35  ;;  %v2810_v10 = vrot.slane %v6000_v8, 7 }
 0x272   : > { %v6019_v19 = vpop.eup %3738  ;;  %3742 = vpow2.f32 %v2796_v61  ;;  %v2812_v50 = vrot.slane %v6016_v58, 6  ;;  %v6046_v44 = vpop.permute.xlu1 %1489 }
 0x273   : > { %3744 = vpow2.f32 %v2798_v2  ;;  %v2811_v18 = vsel %vm1754_vm1, %v2810_v10, %v5984_v32  ;;  %v2814_v6 = vrot.slane %v6019_v19, 5 }
 0x274   : > { %3746 = vpow2.f32 %v2800_v48  ;;  %v2813_v57 = vsel %vm1757_vm2, %v2812_v50, %v2811_v18  ;;  %v6643_v18 = vld [vmem:[#allocation20_spill] sm:$0xff] }
 0x275   : > { %v2815_v59 = vsel %vm1760_vm3, %v2814_v6, %v2813_v57  ;;  %v6644_v6 = vld [vmem:[#allocation9_spill] sm:$0xff] }
 0x276   : > { %v6039_v43 = vpop.f32.mrf.mxu0  ;;  %v924_v60 = vpop.f32.mrf.mxu1  ;;  %v6050_v57 = vadd.f32 %v6644_v6, %v6643_v18  ;;  %v6653_v18 = vld [vmem:[#allocation61_spill] sm:$0xff]  ;;  %v6654_v6 = vld [vmem:[#allocation18_spill] sm:$0xff] }
 0x277   : > { %v6029_v21 = vpop.eup %3740  ;;  %v1540_v38 = vpop.permute.xlu2 %1539 }
 0x278   : > { %v6031_v42 = vpop.eup %3742  ;;  %v2816_v39 = vrot.slane %v6029_v21, 4  ;;  %v1450_v62 = vpop.permute.xlu0 %1449 }
 0x279   : > { %v6034_v15 = vpop.eup %3744  ;;  %v2818_v17 = vrot.slane %v6031_v42, 3 }
 0x27a   : > { %v3747_v25 = vpop.eup %3746  ;;  %v2817_v56 = vsel %vm1763_vm4, %v2816_v39, %v2815_v59  ;;  %v2820_v13 = vrot.slane %v6034_v15, 2  ;;  %v6645_v59 = vld [vmem:[#allocation22_spill] sm:$0xff]  ;;  %v6646_v39 = vld [vmem:[#allocation12_spill] sm:$0xff] }
 0x27b   : > { %v2819_v1 = vsel %vm1766_vm5, %v2818_v17, %v2817_v56  ;;  %v2822_v46 = vrot.slane %v3747_v25, 1  ;;  %v6054_v17 = vadd.f32 %v6646_v39, %v6645_v59  ;;  %v6647_v56 = vld [vmem:[#allocation24_spill] sm:$0xff]  ;;  %v6077_v59 = vadd.f32 %v6654_v6, %v6653_v18  ;;  %v6655_v39 = vld [vmem:[#allocation47_spill] sm:$0xff]  ;;  %v6660_v18 = vld [vmem:[#allocation13_spill] sm:$0xff] }
 0x27c   : > { %v2821_v35 = vsel %vm1769_vm6, %v2820_v13, %v2819_v1  ;;  %v6648_v13 = vld [vmem:[#allocation8_spill] sm:$0xff] }
 0x27d   : > { %v2823_v61 = vsel %vm1772_vm7, %v2822_v46, %v2821_v35  ;;  %v6058_v1 = vadd.f32 %v6648_v13, %v6647_v56  ;;  %v6649_v46 = vld [vmem:[#allocation27_spill] sm:$0xff]  ;;  %v6080_v56 = vadd.f32 %v1405_v45, %v6655_v39  ;;  %v6656_v13 = vld [vmem:[#allocation66_spill] sm:$0xff]  ;;  %v6098_v45 = vadd.f32 %v5964_v20, %v5974_v26  ;;  %v6668_v26 = vld [vmem:[#allocation89_spill] sm:$0xff] }
 0x27e   : > { %v2825_v2 = vrot.slane %v2823_v61, 4  ;;  %v885_v14 = vpop.f32.mrf.mxu0  ;;  %v927_v50 = vpop.f32.mrf.mxu1  ;;  %v6650_v35 = vld [vmem:[#allocation11_spill] sm:$0xff]  ;;  %v1637_v20 = vadd.f32 %v1540_v38, %v6667_v29 }
 0x27f   : > { %v1535_v41 = vpop.permute.xlu2 %1534 }
 0x280   : > { %v2826_v48 = vadd.f32 %v2825_v2, %v2823_v61  ;;  %v6062_v61 = vadd.f32 %v6650_v35, %v6649_v46  ;;  %v6651_v2 = vld [vmem:[#allocation53_spill] sm:$0xff]  ;;  %v1445_v28 = vpop.permute.xlu0 %1444 }
 0x281   : > { %v6657_v46 = vld [vmem:[#allocation17_spill] sm:$0xff]  ;;  %v6113_v11 = vadd.f32 %v1445_v28, %v6668_v26 }
 0x282   : > { %v2827_v16 = vrot.slane %v2826_v48, 2  ;;  %v6084_v35 = vadd.f32 %v6657_v46, %v6656_v13  ;;  %v6661_v46 = vld [vmem:[#allocation72_spill] sm:$0xff] }
 0x284   : > { %v2828_v23 = vadd.f32 %v2827_v16, %v2826_v48  ;;  %v6066_v48 = vadd.f32 %v5960_v33, %v6651_v2  ;;  %v6652_v16 = vld [vmem:[#allocation50_spill] sm:$0xff]  ;;  %v6087_v33 = vadd.f32 %v5927_v4, %v927_v50  ;;  %v6090_v2 = vadd.f32 %v5956_v34, %v921_v52  ;;  %v6663_v50 = vld [vmem:[#allocation45_spill] sm:$0xff] }
 0x285   : > { %v1577_v4 = vadd.f32 %v6662_v36, %v6661_v46  ;;  %v1629_v55 = vadd.f32 %v5986_v5, %v6663_v50  ;;  %v6664_v34 = vld [vmem:[#allocation74_spill] sm:$0xff]  ;;  %v6116_v36 = vadd.f32 %v1450_v62, %v6669_v3  ;;  %v6670_v46 = vld [vmem:[#allocation99_spill] sm:$0xff]  ;;  %v6671_v50 = vld [vmem:[#allocation101_spill] sm:$0xff] }
 0x286   : > { %v2829_v63 = vrot.slane %v2828_v23, 1  ;;  %v1620_v5 = vadd.f32 %v1455_v0, %v6670_v46 }
 0x287   : > { %v1525_v39 = vpop.permute.xlu2 %1524 }
 0x288   : > { %v2830_v10 = vadd.f32 %v2829_v63, %v2828_v23  ;;  %v6070_v23 = vadd.f32 %v5970_v53, %v6652_v16  ;;  %v6073_v63 = vadd.f32 %v5938_v7, %v924_v60  ;;  %v888_v53 = vpop.f32.mrf.mxu0  ;;  %v6658_v7 = vld [vmem:[#allocation58_spill] sm:$0xff]  ;;  %v6659_v16 = vld [vmem:[#allocation68_spill] sm:$0xff]  ;;  %v6105_v52 = vadd.f32 %v1525_v39, %v6664_v34 }
 0x289   : > { %v1613_v60 = vadd.f32 %v5972_v31, %v6658_v7  ;;  %v1576_v6 = vadd.f32 %v6660_v18, %v6659_v16  ;;  %v6665_v31 = vld [vmem:[#allocation78_spill] sm:$0xff]  ;;  %v6666_v16 = vld [vmem:[#allocation81_spill] sm:$0xff]  ;;  %v1621_v39 = vadd.f32 %v6021_v24, %v6671_v50  ;;  %v6672_v34 = vld [vmem:[#allocation28_spill] sm:$0xff] }
 0x28a   : > { %3748 = vrcp.f32 %v2830_v10  ;;  %v1530_v10 = vpop.permute.xlu1 %1529  ;;  %v1636_v18 = vadd.f32 %v1535_v41, %v6666_v16  ;;  %v1587_v40 = vadd.f32 %v6672_v34, %v885_v14 }
 0x28b   : > { %v6108_v7 = vadd.f32 %v1530_v10, %v6665_v31 }
 0x290   : > { %v3749_v13 = vpop.eup %3748 }
 0x291   : > { %v2832_v12 = vperm.slane %v3749_v13, 0 }
 0x293   : > { %v2833_v10 = vmul.f32 %v5984_v32, %v2832_v12  ;;  %v2834_v41 = vmul.f32 %v6000_v8, %v2832_v12  ;;  %v2835_v29 = vmul.f32 %v6016_v58, %v2832_v12  ;;  %v2836_v28 = vmul.f32 %v6019_v19, %v2832_v12 }
 0x294   : > { %v2837_v38 = vmul.f32 %v6029_v21, %v2832_v12  ;;  %v2838_v3 = vmul.f32 %v6031_v42, %v2832_v12  ;;  %v2839_v62 = vmul.f32 %v6034_v15, %v2832_v12  ;;  %v2840_v0 = vmul.f32 %v3747_v25, %v2832_v12  ;;  %v891_v25 = vpop.f32.mrf.mxu0 }
 0x295   : > { %v2841_v13 = vadd.f32 %v2833_v10, %v5989_v22  ;;  %v2842_v24 = vadd.f32 %v2834_v41, %v5992_v30  ;;  %v2843_v14 = vadd.f32 %v2835_v29, %v5995_v37  ;;  %v2844_v32 = vadd.f32 %v2836_v28, %v5998_v47  ;;  %v6673_v10 = vld [vmem:[#allocation23_spill] sm:$0xff] }
 0x296   : > { %v2845_v8 = vadd.f32 %v2837_v38, %v6005_v51  ;;  %v2846_v58 = vadd.f32 %v2838_v3, %v6008_v49  ;;  %v2847_v19 = vadd.f32 %v2839_v62, %v6011_v27  ;;  %v2848_v21 = vadd.f32 %v2840_v0, %v6014_v54  ;;  %v6674_v41 = vld [vmem:[#allocation31_spill] sm:$0xff] }
 0x297   : > { %v2849_v42 = vmul.f32 0.125, %v2841_v13  ;;  %v2850_v31 = vmul.f32 0.125, %v2842_v24  ;;  %v2851_v15 = vmul.f32 0.125, %v2843_v14  ;;  %v2852_v12 = vmul.f32 0.125, %v2844_v32 }
 0x298   : > { %v2853_v22 = vmul.f32 0.125, %v2845_v8  ;;  %v2854_v16 = vmul.f32 0.125, %v2846_v58  ;;  %v2855_v30 = vmul.f32 0.125, %v2847_v19  ;;  %v2856_v26 = vmul.f32 0.125, %v2848_v21 }
 0x299   : > { %v2857_v37 = vperm.slane %v2849_v42, 0  ;;  %v2866_v46 = vperm.slane %v2850_v31, 0  ;;  %v2875_v47 = vperm.slane %v2851_v15, 0  ;;  %v2884_v50 = vperm.slane %v2852_v12, 0 }
 0x29a   : > { %v2893_v51 = vperm.slane %v2853_v22, 0  ;;  %v2902_v34 = vperm.slane %v2854_v16, 0  ;;  %v6137_v49 = vperm.slane %v2855_v30, 0  ;;  %v2920_v27 = vperm.slane %v2856_v26, 0  ;;  %v6676_v30 = vld [vmem:[#allocation41_spill] sm:$0xff] }
 0x29b   : > { %v1588_v54 = vadd.f32 %v6673_v10, %v888_v53  ;;  %v1589_v29 = vadd.f32 %v6674_v41, %v891_v25  ;;  %v2861_v28 = vmul.f32 %v2857_v37, %v6062_v61  ;;  %v2870_v38 = vmul.f32 %v2866_v46, %v1577_v4  ;;  %v6675_v4 = vld [vmem:[#allocation29_spill] sm:$0xff]  ;;  %v1485_v10 = vpop.permute.xlu0 %1484 }
 0x29c   : > { %v2897_v3 = vmul.f32 %v2893_v51, %v1613_v60  ;;  %v2906_v62 = vmul.f32 %v2902_v34, %v1621_v39  ;;  %v2915_v0 = vmul.f32 %v6137_v49, %v1629_v55  ;;  %v2924_v13 = vmul.f32 %v2920_v27, %v1637_v20  ;;  %v6677_v41 = vld [vmem:[#allocation37_spill] sm:$0xff] }
 0x29d   : > { %v2874_v24 = vadd.f32 %v2870_v38, %v2861_v28  ;;  %v2879_v14 = vmul.f32 %v2875_v47, %v1589_v29  ;;  %v2860_v32 = vmul.f32 %v2857_v37, %v6058_v1  ;;  %v2869_v8 = vmul.f32 %v2866_v46, %v1576_v6  ;;  %v6678_v29 = vld [vmem:[#allocation33_spill] sm:$0xff] }
 0x29e   : > { %v2888_v58 = vmul.f32 %v2884_v50, %v6087_v33  ;;  %v2878_v19 = vmul.f32 %v2875_v47, %v1588_v54  ;;  %v2896_v53 = vmul.f32 %v2893_v51, %v6066_v48  ;;  %v2905_v21 = vmul.f32 %v2902_v34, %v1620_v5 }
 0x29f   : > { %v2883_v42 = vadd.f32 %v2879_v14, %v2874_v24  ;;  %v2873_v31 = vadd.f32 %v2869_v8, %v2860_v32  ;;  %v2923_v61 = vmul.f32 %v2920_v27, %v1636_v18  ;;  %v2859_v60 = vmul.f32 %v2857_v37, %v6054_v17  ;;  %v2930_v14 = vld [vmem:[%s6351_s4 + $0x8] sm:$0xff]  ;;  %v2932_v32 = vld [vmem:[%s6351_s4 + $0x18] sm:$0xff]  ;;  %v2933_v8 = vld [vmem:[%s6351_s4 + $0x20] sm:$0xff] }
 0x2a0   : > { %v1586_v55 = vadd.f32 %v6675_v4, %v6039_v43  ;;  %v2887_v20 = vmul.f32 %v2884_v50, %v6073_v63  ;;  %v2868_v39 = vmul.f32 %v2866_v46, %v6084_v35  ;;  %v2895_v1 = vmul.f32 %v2893_v51, %v6070_v23  ;;  %v2942_v4 = vld [vmem:[%s6351_s4 + $0x68] sm:$0xff] }
 0x2a1   : > { %v2892_v6 = vadd.f32 %v2888_v58, %v2883_v42  ;;  %v2882_v33 = vadd.f32 %v2878_v19, %v2873_v31  ;;  %v2877_v15 = vmul.f32 %v2875_v47, %v1587_v40  ;;  %v2904_v48 = vmul.f32 %v2902_v34, %v6116_v36  ;;  %v2934_v58 = vld [vmem:[%s6351_s4 + $0x28] sm:$0xff]  ;;  %v2935_v19 = vld [vmem:[%s6351_s4 + $0x30] sm:$0xff] }
 0x2a2   : > { %v2872_v5 = vadd.f32 %v2868_v39, %v2859_v60  ;;  %v2922_v12 = vmul.f32 %v2920_v27, %v6108_v7  ;;  %v2858_v18 = vmul.f32 %v2857_v37, %v6050_v57  ;;  %v2867_v17 = vmul.f32 %v2866_v46, %v6077_v59  ;;  %v2938_v42 = vld [vmem:[%s6351_s4 + $0x48] sm:$0xff]  ;;  %v2939_v31 = vld [vmem:[%s6351_s4 + $0x50] sm:$0xff]  ;;  %v2941_v60 = vld [vmem:[%s6351_s4 + $0x60] sm:$0xff] }
 0x2a3   : > { %v2901_v25 = vadd.f32 %v2897_v3, %v2892_v6  ;;  %v2891_v43 = vadd.f32 %v2887_v20, %v2882_v33  ;;  %v2886_v63 = vmul.f32 %v2884_v50, %v6090_v2  ;;  %v2876_v22 = vmul.f32 %v2875_v47, %v1586_v55  ;;  %v1325_v55 = vpop.permute.xlu0 %1324  ;;  %v6225_v20 = vpop.permute.xlu2 %1334  ;;  %v2943_v39 = vld [vmem:[%s6351_s4 + $0x70] sm:$0xff] }
 0x2a4   : > { %v2881_v35 = vadd.f32 %v2877_v15, %v2872_v5  ;;  %v2871_v16 = vadd.f32 %v2867_v17, %v2858_v18  ;;  %v2894_v23 = vmul.f32 %v2893_v51, %v6080_v56  ;;  %v2903_v40 = vmul.f32 %v2902_v34, %v6113_v11  ;;  %v2944_v15 = vld [vmem:[%s6351_s4 + $0x78] sm:$0xff]  ;;  %v6679_v17 = vld [vmem:[#allocation46_spill] sm:$0xff] }
 0x2a5   : > { %v1628_v36 = vadd.f32 %v6036_v9, %v6676_v30  ;;  %v2910_v26 = vadd.f32 %v2906_v62, %v2901_v25  ;;  %v2900_v7 = vadd.f32 %v2896_v53, %v2891_v43  ;;  %v2921_v57 = vmul.f32 %v2920_v27, %v6105_v52  ;;  %v2936_v53 = vld [vmem:[%s6351_s4 + $0x38] sm:$0xff]  ;;  %v3195_v30 = vld [vmem:[%s396_s18] sm:$0xf]  ;;  %s3329_s18 = sshll.u32 %s392_s13, 4  ;;  %s3330_s18 = int_to_ptr.vmem [resolvable:$true] %s3329_s18 }
 0x2a6   : > { %v2890_v37 = vadd.f32 %v2886_v63, %v2881_v35  ;;  %v2880_v59 = vadd.f32 %v2876_v22, %v2871_v16  ;;  %v2885_v46 = vmul.f32 %v2884_v50, %v6098_v45  ;;  %v1627_v56 = vadd.f32 %v6046_v44, %v6677_v41  ;;  %v6680_v25 = vld [vmem:[#allocation7_spill] sm:$0xff]  ;;  %v6681_v63 = vld [vmem:[#allocation77_spill] sm:$0xff]  ;;  %v6682_v35 = vld [vmem:[#allocation84_spill] sm:$0xff] }
 0x2a7   : > { %v2919_v2 = vadd.f32 %v2915_v0, %v2910_v26  ;;  %v2909_v47 = vadd.f32 %v2905_v21, %v2900_v7  ;;  %v2914_v54 = vmul.f32 %v6137_v49, %v1628_v36  ;;  %v1626_v28 = vadd.f32 %v1485_v10, %v6678_v29  ;;  %v2937_v21 = vld [vmem:[%s6351_s4 + $0x40] sm:$0xff] }
 0x2a8   : > { %v2899_v11 = vadd.f32 %v2895_v1, %v2890_v37  ;;  %v2889_v51 = vadd.f32 %v2885_v46, %v2880_v59  ;;  %v2913_v52 = vmul.f32 %v6137_v49, %v1627_v56  ;;  %v1330_v1 = vpop.permute.xlu1 %1329  ;;  %v1570_v43 = vadd.f32 %v6680_v25, %v6679_v17  ;;  %v6683_v16 = vld [vmem:[#allocation16_spill] sm:$0xff] }
 0x2a9   : > { %v2928_v34 = vadd.f32 %v2924_v13, %v2919_v2  ;;  %v2918_v9 = vadd.f32 %v2914_v54, %v2909_v47  ;;  %v2912_v62 = vmul.f32 %v6137_v49, %v1626_v28  ;;  %v2929_v13 = vld [vmem:[%s6351_s4] sm:$0xff]  ;;  %v2931_v49 = vld [vmem:[%s6351_s4 + $0x10] sm:$0xff]  ;;  %v1594_v22 = vadd.f32 %v1325_v55, %v6681_v63 }
 0x2aa   : > { %v2908_v38 = vadd.f32 %v2904_v48, %v2899_v11  ;;  %v2898_v27 = vadd.f32 %v2894_v23, %v2889_v51  ;;  %v1582_v23 = vadd.f32 %v6683_v16, %v6682_v35  ;;  %v6684_v36 = vld [vmem:[#allocation32_spill] sm:$0xff]  ;;  %v3197_v7 = vrot.slane %v3195_v30, 1  ;;  %v6695_v35 = vld [vmem:[#allocation25_spill] sm:$0xff] }
 0x2ab   : > { %3102 = vmatpush.msrb.mxu1 %v2928_v34  ;;  %v2927_v45 = vadd.f32 %v2923_v61, %v2918_v9  ;;  %v2940_v61 = vld [vmem:[%s6351_s4 + $0x58] sm:$0xff]  ;;  %v6232_v6 = vpop.permute.xlu0 %1339  ;;  %v1390_v33 = vpop.permute.xlu2 %1389  ;;  %v6248_v10 = vperm.slane %v3195_v30, 0  ;;  %v3199_v47 = vrot.slane %v3195_v30, 3 }
 0x2ac   : > { %v2917_v50 = vadd.f32 %v2913_v52, %v2908_v38  ;;  %v2907_v3 = vadd.f32 %v2903_v40, %v2898_v27  ;;  %v6250_v54 = vperm.slane %v3197_v7, 0  ;;  %v6685_v28 = vld [vmem:[#allocation48_spill] sm:$0xff]  ;;  %v6686_v38 = vld [vmem:[#allocation15_spill] sm:$0xff] }
 0x2ad   : > { %3103 = vmatpush.msrb.mxu1 %v2927_v45  ;;  %v1571_v52 = vadd.f32 %v6686_v38, %v6685_v28  ;;  %v6698_v28 = vld [vmem:[#allocation10_spill] sm:$0xff] }
 0x2ae   : > { %v2926_v0 = vadd.f32 %v2922_v12, %v2917_v50  ;;  %v2916_v24 = vadd.f32 %v2912_v62, %v2907_v3  ;;  %v6258_v3 = vperm.slane %v3199_v47, 0  ;;  %v6687_v62 = vld [vmem:[#allocation83_spill] sm:$0xff] }
 0x2b0   : > { %3104 = vmatpush.msrb.mxu1 %v2926_v0  ;;  %v2925_v44 = vadd.f32 %v2921_v57, %v2916_v24  ;;  %v1385_v48 = vpop.permute.xlu1 %1384  ;;  %v3198_v57 = vrot.slane %v3195_v30, 2  ;;  %v1595_v0 = vadd.f32 %v1330_v1, %v6687_v62  ;;  %v6688_v24 = vld [vmem:[#allocation79_spill] sm:$0xff]  ;;  %v6696_v30 = vld [vmem:[#allocation40_spill] sm:$0xff] }
 0x2b1   : > { %v1606_v26 = vadd.f32 %v1385_v48, %v6684_v36  ;;  %v6691_v48 = vld [vmem:[#allocation51_spill] sm:$0xff] }
 0x2b2   : > { %3105 = vmatpush.msrb.mxu1 %v2925_v44  ;;  %v6252_v34 = vperm.slane %v3198_v57, 0  ;;  %v6689_v44 = vld [vmem:[#allocation26_spill] sm:$0xff] }
 0x2b3   : > { %3506 = vmatmul.msk.f32.vlgmr.msrb.gmra.mxu1 %vm3041_vm8, %v2929_v13  ;;  %v1395_v5 = vpop.permute.xlu0 %1394  ;;  %v2964_v12 = vpop.permute.xlu2 %2963  ;;  %v1583_v13 = vadd.f32 %v6689_v44, %v6688_v24  ;;  %v6701_v44 = vld [vmem:[#allocation62_spill] sm:$0xff] }
 0x2b4   : > { %v1608_v36 = vadd.f32 %v1395_v5, %v6696_v30 }
 0x2b8   : > { %v1400_v11 = vpop.permute.xlu1 %1399 }
 0x2bb   : > { %3507 = vmatmul.msk.f32.gmra.mxu1 %vm3041_vm8, %v2930_v14  ;;  %v2969_v27 = vpop.permute.xlu0 %2968 }
 0x2c3   : > { %3508 = vmatmul.msk.f32.gmra.mxu1 %vm3041_vm8, %v2931_v49 }
 0x2cb   : > { %3509 = vmatmul.msk.f32.gmra.mxu1 %vm3041_vm8, %v2932_v32  ;;  %v6690_v32 = vld [vmem:[#allocation36_spill] sm:$0xff] }
 0x2d3   : > { %3510 = vmatmul.msk.f32.gmra.mxu1 %vm3041_vm8, %v2933_v8  ;;  %v1607_v8 = vadd.f32 %v1390_v33, %v6690_v32 }
 0x2db   : > { %3511 = vmatmul.msk.f32.gmra.mxu1 %vm3041_vm8, %v2934_v58 }
 0x2e3   : > { %3512 = vmatmul.msk.f32.gmra.mxu1 %vm3041_vm8, %v2935_v19 }
 0x2eb   : > { %3513 = vmatmul.msk.f32.gmra.mxu1 %vm3041_vm8, %v2936_v53 }
 0x2f3   : > { %3514 = vmatmul.msk.f32.gmra.mxu1 %vm3041_vm8, %v2937_v21 }
 0x2fb   : > { %3515 = vmatmul.msk.f32.gmra.mxu1 %vm3041_vm8, %v2938_v42 }
 0x303   : > { %3516 = vmatmul.msk.f32.gmra.mxu1 %vm3041_vm8, %v2939_v31 }
 0x30b   : > { %3517 = vmatmul.msk.f32.gmra.mxu1 %vm3041_vm8, %v2940_v61 }
 0x313   : > { %3518 = vmatmul.msk.f32.gmra.mxu1 %vm3041_vm8, %v2941_v60 }
 0x31b   : > { %3519 = vmatmul.msk.f32.gmra.mxu1 %vm3041_vm8, %v2942_v4 }
 0x323   : > { %3520 = vmatmul.msk.f32.gmra.mxu1 %vm3041_vm8, %v2943_v39 }
 0x32b   : > { %3521 = vmatmul.msk.f32.gmra.mxu1 %vm3041_vm8, %v2944_v15 }
 0x330   : > { %v3107_v18 = vpop.f32.mrf.mxu1 }
 0x331   : > { %v3108_v40 = vadd.f32 %v3107_v18, %v2964_v12  ;;  %v6692_v12 = vld [vmem:[#allocation14_spill] sm:$0xff]  ;;  %v2974_v18 = vpop.permute.xlu1 %2973 }
 0x332   : > { %v1572_v33 = vadd.f32 %v6692_v12, %v6691_v48  ;;  %v2984_v48 = vpop.permute.xlu0 %2983 }
 0x333   : > { %v3163_v37 = vadd.f32 %v3108_v40, %v1570_v43  ;;  %v3167_v59 = vadd.f32 %v3108_v40, %v1582_v23  ;;  %v3171_v46 = vadd.f32 %v3108_v40, %v1594_v22  ;;  %v3175_v2 = vadd.f32 %v3108_v40, %v1606_v26  ;;  %v6693_v43 = vld [vmem:[#allocation76_spill] sm:$0xff]  ;;  %v6694_v22 = vld [vmem:[#allocation86_spill] sm:$0xff] }
 0x334   : > { %v1596_v63 = vadd.f32 %v6225_v20, %v6693_v43  ;;  %v1584_v16 = vadd.f32 %v6695_v35, %v6694_v22  ;;  %v489_v20 = vld [vmem:[%s6349_s2 + $0x2e0] sm:$0xff]  ;;  %v491_v22 = vld [vmem:[%s6349_s2 + $0x2f0] sm:$0xff] }
 0x335   : > { %v3179_v41 = vand.u32 2147483647, %v3163_v37  ;;  %v3183_v56 = vand.u32 2147483647, %v3167_v59  ;;  %v3187_v51 = vand.u32 2147483647, %v3171_v46  ;;  %3502 = vmatmul.msk.f32.gmra.mxu3 %vm504_vm0, %v489_v20 }
 0x336   : > { %v3191_v50 = vand.u32 2147483647, %v3175_v2 }
 0x337   : > { %v3208_v9 = vmul.f32 %v6248_v10, %v3179_v41  ;;  %v3212_v29 = vmul.f32 %v6250_v54, %v3183_v56  ;;  %v3216_v58 = vmul.f32 %v6252_v34, %v3187_v51 }
 0x338   : > { %v3110_v45 = vpop.f32.mrf.mxu1  ;;  %v3220_v31 = vmul.f32 %v6258_v3, %v3191_v50 }
 0x339   : > { %v3111_v14 = vadd.f32 %v3110_v45, %v2969_v27  ;;  %v3224_v49 = vadd.f32 %v3212_v29, %v3208_v9  ;;  %v6697_v29 = vld [vmem:[#allocation55_spill] sm:$0xff]  ;;  %v6699_v27 = vld [vmem:[#allocation88_spill] sm:$0xff] }
 0x33a   : > { %v1573_v38 = vadd.f32 %v6698_v28, %v6697_v29  ;;  %v1597_v45 = vadd.f32 %v6232_v6, %v6699_v27  ;;  %v490_v6 = vld [vmem:[%s6349_s2 + $0x2e8] sm:$0xff]  ;;  %v2999_v30 = vpop.permute.xlu0 %2998 }
 0x33b   : > { %v3164_v19 = vadd.f32 %v3111_v14, %v1571_v52  ;;  %v3168_v53 = vadd.f32 %v3111_v14, %v1583_v13  ;;  %v3172_v21 = vadd.f32 %v3111_v14, %v1595_v0  ;;  %v3176_v42 = vadd.f32 %v3111_v14, %v1607_v8  ;;  %v2979_v52 = vpop.permute.xlu2 %2978  ;;  %v6700_v0 = vld [vmem:[#allocation44_spill] sm:$0xff]  ;;  %v6702_v13 = vld [vmem:[#allocation19_spill] sm:$0xff] }
 0x33c   : > { %v3225_v61 = vadd.f32 %v3224_v49, %v3216_v58  ;;  %v1609_v24 = vadd.f32 %v1400_v11, %v6700_v0  ;;  %v1585_v14 = vadd.f32 %v6702_v13, %v6701_v44 }
 0x33d   : > { %v3180_v60 = vand.u32 2147483647, %v3164_v19  ;;  %v3184_v4 = vand.u32 2147483647, %v3168_v53  ;;  %v3188_v55 = vand.u32 2147483647, %v3172_v21  ;;  %3503 = vmatmul.msk.f32.gmra.mxu3 %vm504_vm0, %v490_v6 }
 0x33e   : > { %v3226_v39 = vadd.f32 %v3225_v61, %v3220_v31  ;;  %v3192_v25 = vand.u32 2147483647, %v3176_v42 }
 0x33f   : > { %v3209_v1 = vmul.f32 %v6248_v10, %v3180_v60  ;;  %v3213_v15 = vmul.f32 %v6250_v54, %v3184_v4  ;;  %v3217_v26 = vmul.f32 %v6252_v34, %v3188_v55 }
 0x340   : > { %v3113_v17 = vpop.f32.mrf.mxu1  ;;  %v3221_v46 = vmul.f32 %v6258_v3, %v3192_v25 }
 0x341   : > { %v3114_v23 = vadd.f32 %v3113_v17, %v2974_v18  ;;  %v3227_v40 = vadd.f32 %v3213_v15, %v3209_v1 }
 0x343   : > { %v3165_v7 = vadd.f32 %v3114_v23, %v1572_v33  ;;  %v3169_v57 = vadd.f32 %v3114_v23, %v1584_v16  ;;  %v3173_v37 = vadd.f32 %v3114_v23, %v1596_v63  ;;  %v3177_v59 = vadd.f32 %v3114_v23, %v1608_v36  ;;  %v2989_v23 = vpop.permute.xlu1 %2988 }
 0x344   : > { %v3228_v2 = vadd.f32 %v3227_v40, %v3217_v26  ;;  %v2994_v40 = vpop.permute.xlu2 %2993 }
 0x345   : > { %v3181_v47 = vand.u32 2147483647, %v3165_v7  ;;  %v3185_v41 = vand.u32 2147483647, %v3169_v57  ;;  %v3189_v56 = vand.u32 2147483647, %v3173_v37  ;;  %3504 = vmatmul.msk.f32.gmra.mxu3 %vm504_vm0, %v491_v22 }
 0x346   : > { %v3229_v51 = vadd.f32 %v3228_v2, %v3221_v46  ;;  %v3193_v62 = vand.u32 2147483647, %v3177_v59  ;;  %v3024_v59 = vpop.permute.xlu0 %3023 }
 0x347   : > { %v3210_v5 = vmul.f32 %v6248_v10, %v3181_v47  ;;  %v3214_v9 = vmul.f32 %v6250_v54, %v3185_v41  ;;  %v3218_v8 = vmul.f32 %v6252_v34, %v3189_v56 }
 0x348   : > { %v3116_v50 = vpop.f32.mrf.mxu1  ;;  %v3222_v42 = vmul.f32 %v6258_v3, %v3193_v62 }
 0x349   : > { %v3117_v49 = vadd.f32 %v3116_v50, %v2979_v52  ;;  %v3230_v32 = vadd.f32 %v3214_v9, %v3210_v5 }
 0x34b   : > { %v3166_v58 = vadd.f32 %v3117_v49, %v1573_v38  ;;  %v3170_v19 = vadd.f32 %v3117_v49, %v1585_v14  ;;  %v3174_v53 = vadd.f32 %v3117_v49, %v1597_v45  ;;  %v3178_v21 = vadd.f32 %v3117_v49, %v1609_v24  ;;  %v3004_v36 = vpop.permute.xlu1 %3003 }
 0x34c   : > { %v3231_v31 = vadd.f32 %v3230_v32, %v3218_v8  ;;  %v3009_v37 = vpop.permute.xlu2 %3008 }
 0x34d   : > { %v3182_v61 = vand.u32 2147483647, %v3166_v58  ;;  %v3186_v11 = vand.u32 2147483647, %v3170_v19  ;;  %v3190_v60 = vand.u32 2147483647, %v3174_v53 }
 0x34e   : > { %v3232_v4 = vadd.f32 %v3231_v31, %v3222_v42  ;;  %v3194_v55 = vand.u32 2147483647, %v3178_v21  ;;  %v3034_v52 = vpop.permute.xlu0 %3033 }
 0x34f   : > { %v3211_v1 = vmul.f32 %v6248_v10, %v3182_v61  ;;  %v3215_v15 = vmul.f32 %v6250_v54, %v3186_v11  ;;  %v3219_v18 = vmul.f32 %v6252_v34, %v3190_v60  ;;  %v492_v54 = vld [vmem:[%s6349_s2 + $0x2f8] sm:$0xff] }
 0x350   : > { %v3119_v12 = vpop.f32.mrf.mxu1  ;;  %v3223_v43 = vmul.f32 %v6258_v3, %v3194_v55  ;;  %3505 = vmatmul.msk.f32.gmra.mxu3 %vm504_vm0, %v492_v54 }
 0x351   : > { %v3120_v33 = vadd.f32 %v3119_v12, %v2984_v48  ;;  %v3233_v17 = vadd.f32 %v3215_v15, %v3211_v1 }
 0x353   : > { %v6299_v25 = vadd.f32 %v3226_v39, %v3120_v33  ;;  %v3234_v63 = vadd.f32 %v3233_v17, %v3219_v18  ;;  %v3029_v47 = vpop.permute.xlu1 %3028 }
 0x354   : > { %v3014_v29 = vpop.permute.xlu2 %3013 }
 0x355   : > { %v3235_v35 = vadd.f32 %v3234_v63, %v3223_v43  ;;  %v3244_v46 = vmin.f32 %v6299_v25, 0.0  ;;  %vm3240_vm9 = vcmp.gt.f32.partialorder %v6299_v25, 0.0 }
 0x356   : > { %v3275_v31 = vpop.permute.xlu0 %3274 }
 0x357   : > { %v3248_v56 = vmul.f32 1.442695, %v3244_v46 }
 0x358   : > { %v3122_v10 = vpop.f32.mrf.mxu1 }
 0x359   : > { %v3123_v26 = vadd.f32 %v3122_v10, %v2989_v23  ;;  %3750 = vpow2.f32 %v3248_v56 }
 0x35b   : > { %v3237_v57 = vadd.f32 %v3229_v51, %v3123_v26  ;;  %v3019_v45 = vpop.permute.xlu1 %3018 }
 0x35c   : > { %v3039_v42 = vpop.permute.xlu2 %3038 }
 0x35d   : > { %v3245_v2 = vmin.f32 %v3237_v57, 0.0  ;;  %vm3241_vm10 = vcmp.gt.f32.partialorder %v3237_v57, 0.0 }
 0x35f   : > { %v3250_v5 = vmul.f32 1.442695, %v3245_v2  ;;  %v3751_v0 = vpop.eup %3750 }
 0x360   : > { %v3125_v34 = vpop.f32.mrf.mxu1  ;;  %v3522_v32 = vadd.f32 -1.0, %v3751_v0 }
 0x361   : > { %v3126_v20 = vadd.f32 %v3125_v34, %v2994_v40  ;;  %3752 = vpow2.f32 %v3250_v5 }
 0x363   : > { %v3238_v9 = vadd.f32 %v3232_v4, %v3126_v20  ;;  %v3280_v60 = vpop.permute.xlu1 %3279  ;;  %v3260_v4 = vsel %vm3240_vm9, %v6299_v25, %v3522_v32 }
 0x364   : > { %v3285_v34 = vpop.permute.xlu2 %3284 }
 0x365   : > { %v3246_v28 = vmin.f32 %v3238_v9, 0.0  ;;  %vm3242_vm11 = vcmp.gt.f32.partialorder %v3238_v9, 0.0 }
 0x367   : > { %v3252_v51 = vmul.f32 1.442695, %v3246_v28  ;;  %v3753_v24 = vpop.eup %3752 }
 0x368   : > { %v3128_v39 = vpop.f32.mrf.mxu1  ;;  %v3523_v8 = vadd.f32 -1.0, %v3753_v24 }
 0x369   : > { %v3129_v38 = vadd.f32 %v3128_v39, %v2999_v30  ;;  %3754 = vpow2.f32 %v3252_v51 }
 0x36a   : > { %v3261_v55 = vsel %vm3241_vm10, %v3237_v57, %v3523_v8 }
 0x36b   : > { %v3239_v50 = vadd.f32 %v3235_v35, %v3129_v38  ;;  %v3313_v28 = vpop.permute.xlu1 %3312 }
 0x36d   : > { %v3247_v14 = vmin.f32 %v3239_v50, 0.0  ;;  %vm3243_vm12 = vcmp.gt.f32.partialorder %v3239_v50, 0.0 }
 0x36f   : > { %v3254_v6 = vmul.f32 1.442695, %v3247_v14  ;;  %v3755_v1 = vpop.eup %3754 }
 0x370   : > { %v3131_v16 = vpop.f32.mrf.mxu1  ;;  %v3524_v43 = vadd.f32 -1.0, %v3755_v1 }
 0x371   : > { %v3132_v44 = vadd.f32 %v3131_v16, %v3004_v36  ;;  %3756 = vpow2.f32 %v3254_v6 }
 0x372   : > { %v3262_v39 = vsel %vm3242_vm11, %v3238_v9, %v3524_v43 }
 0x373   : > { %v3155_v19 = vand.u32 2147483647, %v3132_v44 }
 0x375   : > { %v3264_v15 = vmul.f32 %v3260_v4, %v3155_v19 }
 0x377   : > { %v3757_v16 = vpop.eup %3756 }
 0x378   : > { %v3134_v3 = vpop.f32.mrf.mxu1  ;;  %v3525_v30 = vadd.f32 -1.0, %v3757_v16 }
 0x379   : > { %v3135_v13 = vadd.f32 %v3134_v3, %v3009_v37 }
 0x37a   : > { %v3263_v46 = vsel %vm3243_vm12, %v3239_v50, %v3525_v30 }
 0x37b   : > { %v3156_v53 = vand.u32 2147483647, %v3135_v13 }
 0x37d   : > { %v3265_v48 = vmul.f32 %v3261_v55, %v3156_v53 }
 0x380   : > { %v3137_v7 = vpop.f32.mrf.mxu1 }
 0x381   : > { %v3138_v12 = vadd.f32 %v3137_v7, %v3014_v29 }
 0x383   : > { %v3157_v22 = vand.u32 2147483647, %v3138_v12 }
 0x385   : > { %v3266_v25 = vmul.f32 %v3262_v39, %v3157_v22 }
 0x388   : > { %v3140_v41 = vpop.f32.mrf.mxu1 }
 0x389   : > { %v3141_v23 = vadd.f32 %v3140_v41, %v3019_v45 }
 0x38b   : > { %v3158_v26 = vand.u32 2147483647, %v3141_v23 }
 0x38d   : > { %v3267_v2 = vmul.f32 %v3263_v46, %v3158_v26 }
 0x390   : > { %v3143_v27 = vpop.f32.mrf.mxu1 }
 0x391   : > { %v3144_v62 = vadd.f32 %v3143_v27, %v3024_v59  ;;  %v3290_v59 = vpop.permute.xlu0 %3289 }
 0x393   : > { %v3159_v49 = vmax.f32 %v3144_v62, 0.0 }
 0x395   : > { %v3292_v61 = vmul.f32 %v3275_v31, %v3159_v49 }
 0x397   : > { %v3296_v18 = vadd.f32 %v3292_v61, %v3264_v15 }
 0x398   : > { %v3146_v58 = vpop.f32.mrf.mxu1 }
 0x399   : > { %v3147_v21 = vadd.f32 %v3146_v58, %v3029_v47 }
 0x39b   : > { %v3160_v11 = vmax.f32 %v3147_v21, 0.0 }
 0x39d   : > { %v3293_v33 = vmul.f32 %v3280_v60, %v3160_v11 }
 0x39f   : > { %v3297_v17 = vadd.f32 %v3293_v33, %v3265_v48 }
 0x3a0   : > { %v3149_v63 = vpop.f32.mrf.mxu1 }
 0x3a1   : > { %v3300_v35 = vadd.f32 %v3297_v17, %v3296_v18  ;;  %v3150_v10 = vadd.f32 %v3149_v63, %v3034_v52  ;;  %v3315_v52 = vperm.slane %v3313_v28, 0 }
 0x3a3   : > { %v3161_v54 = vmax.f32 %v3150_v10, 0.0 }
 0x3a5   : > { %v3294_v3 = vmul.f32 %v3285_v34, %v3161_v54 }
 0x3a7   : > { %v3298_v40 = vadd.f32 %v3294_v3, %v3266_v25 }
 0x3a8   : > { %v3152_v36 = vpop.f32.mrf.mxu1 }
 0x3a9   : > { %v3301_v7 = vadd.f32 %v3300_v35, %v3298_v40  ;;  %v3153_v57 = vadd.f32 %v3152_v36, %v3039_v42 }
 0x3ab   : > { %v3162_v37 = vmax.f32 %v3153_v57, 0.0 }
 0x3ad   : > { %v3295_v20 = vmul.f32 %v3290_v59, %v3162_v37 }
 0x3af   : > { %v3299_v47 = vadd.f32 %v3295_v20, %v3267_v2 }
 0x3b1   : > { %v3302_v56 = vadd.f32 %v3301_v7, %v3299_v47 }
 0x3b3   : > { %v3303_v5 = vrot.slane %v3302_v56, 4 }
 0x3b5   : > { %v3304_v9 = vadd.f32 %v3303_v5, %v3302_v56 }
 0x3b7   : > { %v3305_v41 = vrot.slane %v3304_v9, 2 }
 0x3b8   : > { %v1074_v51 = vpop.f32.mrf.mxu3 }
 0x3b9   : > { %v3306_v29 = vadd.f32 %v3305_v41, %v3304_v9 }
 0x3bb   : > { %v3307_v38 = vrot.slane %v3306_v29, 1 }
 0x3bd   : > { %v3308_v27 = vadd.f32 %v3307_v38, %v3306_v29 }
 0x3bf   : > { %v3316_v45 = vadd.f32 %v3315_v52, %v3308_v27 }
 0x3c1   : > { %3317 = vst [vmem:[%s392_s13] sm:$0x1] %v3316_v45 }
 0x3c2   : > { %3785 = shalt.err (!%p3782_p7)
}
 0x3c3   : > { %3563 = dma.vmem_to_hbm [thread:$0]  (%p3910_p6), %s3330_s18, 16, %s3332_s20, %s3319_s21   ;;  %v1076_v50 = vpop.f32.mrf.mxu3 }
 0x3cb   : > { %v1078_v62 = vpop.f32.mrf.mxu3 }
 0x3d3   : > { %v1080_v0 = vpop.f32.mrf.mxu3 }
 0x3d4 PF: > { %s3343_s14 = sand.u32 1, %s3808_s29   ;;  %p3566_p10 = pnand %p3406_p9, %p3914_p8 }
 0x3d5   : > { %s3344_s27 = scalar_lea.sflag [#allocation5], %s3343_s14 }
 0x3d6   : > { %p3567_p11 = pneg %p3566_p10 }
 0x3d8   : > { %3803 = dma.done.wait (%p3567_p11), %s3344_s27, 16  }
 0x3d9   : > { %3805 = vsyncadd (%p3567_p11), %s3344_s27, 4294967280  ;;  %p20_p6 = scmp.ge.s32.totalorder %s3896_s12, 4   ;;  %s6703_s29 = smov %s3812_s30 }
 0x3da   : > { %s6704_s30 = smov %s3816_s9  ;;  %s6705_s9 = smov %s3908_s15 }
 0x3db   : > { %s6706_s10 = smov %s3896_s12  ;;  %22 = sbr.rel (!%p20_p6) target bundleno = 6 (0x6), region = 133 }
 0x3e0   :  { %3349 = vsyncpa [#allocation5], 1 }
 0x3e1   :  { %3351 = vsyncpa [#allocation5 + $0x1], 1 }

</bundles_post_ra>
